<compile_context>
chip_gen: v7x
topology: tpu7x:2x2x1
jax: 0.10.0
libtpu: 0.0.40
codegen_flags: <defaults>
</compile_context>

<pallas_src>
import jax
import jax.numpy as jnp
from jax import lax
from jax.experimental import pallas as pl
from jax.experimental.pallas import tpu as pltpu

NEG_SLOPE = 0.2   # LeakyReLU slope
EPS = 1e-5        # PyTorch InstanceNorm2d default eps


# ------------------------------ Pallas kernel ------------------------------ #
def _disc_kernel(x_ref,
                 sel1_ref, wb1_ref, bias1_ref,
                 sel2_ref, wb2_ref, gb2_ref, tm2_ref, tmt2_ref,
                 sel3_ref, wb3_ref, gb3_ref, tm3_ref, tmt3_ref,
                 sel4_ref, wb4_ref, gb4_ref, tm4_ref, tmt4_ref,
                 w5r_ref, b5_ref,
                 o_ref):
    """Whole Discriminator forward for one sample (64x64 input)."""

    def leaky(y):
        return jnp.where(y > 0, y, NEG_SLOPE * y)

    def conv(xin, sel_ref, wb_ref):
        # xin: (H_in, W_in*C_in) bf16.
        # sel_ref: (4, H_out, H_in) 0/1 row-selection (vertical taps + H pad).
        # wb_ref:  (4, W_in*C_in, W_out*C_out) block-banded weights
        #          (horizontal taps + channel mixing + W pad folded in).
        acc = None
        for ki in range(4):
            zt = jnp.dot(sel_ref[ki], xin,
                         preferred_element_type=jnp.float32)   # exact row pick
            zt = zt.astype(jnp.bfloat16)
            part = jnp.dot(zt, wb_ref[ki],
                           preferred_element_type=jnp.float32)  # K = W_in*C_in
            acc = part if acc is None else acc + part
        return acc                                   # (H_out, W_out*C_out) f32

    def inorm_lrelu(y, gb_ref, tm_ref, tmt_ref):
        # y: (H_out, W_out*C_out) f32.  tm: (W_out*C_out, C_out) channel pool,
        # tmt = tm.T (broadcast back).  gb: row0=gamma, row1=beta (1-pass stats).
        tm = tm_ref[...]
        count = y.shape[0] * (tm.shape[0] // tm.shape[1])       # H_out * W_out
        inv_cnt = 1.0 / count
        colsum = jnp.sum(y, axis=0, keepdims=True)              # (1, W*C)
        colsq = jnp.sum(y * y, axis=0, keepdims=True)
        mean = jnp.dot(colsum, tm) * inv_cnt                    # (1, C)
        ex2 = jnp.dot(colsq, tm) * inv_cnt
        var = jnp.maximum(ex2 - mean * mean, 0.0)
        scale = gb_ref[0:1, :] * lax.rsqrt(var + EPS)           # gamma / std
        shift = gb_ref[1:2, :] - mean * scale                   # beta - mean*s
        tmt = tmt_ref[...]
        y = y * jnp.dot(scale, tmt) + jnp.dot(shift, tmt)
        return leaky(y)

    x = x_ref[0]                                                # (64, 64*C0p)

    # Layer 1: Conv + bias + LeakyReLU
    y1 = leaky(conv(x, sel1_ref, wb1_ref) + bias1_ref[...])
    y1 = y1.astype(jnp.bfloat16)                                # (32, 32*fd)

    # Layers 2-4: Conv(no bias) + InstanceNorm(affine) + LeakyReLU
    y2 = inorm_lrelu(conv(y1, sel2_ref, wb2_ref), gb2_ref, tm2_ref, tmt2_ref)
    y2 = y2.astype(jnp.bfloat16)                                # (16, 16*2fd)
    y3 = inorm_lrelu(conv(y2, sel3_ref, wb3_ref), gb3_ref, tm3_ref, tmt3_ref)
    y3 = y3.astype(jnp.bfloat16)                                # (8, 8*4fd)
    y4 = inorm_lrelu(conv(y3, sel4_ref, wb4_ref), gb4_ref, tm4_ref, tmt4_ref)
    # y4: (4, 4*8fd) f32 -- the 4x4 pre-final feature map.

    # Final Conv2d(8fd, 1, k=4, s=2, p=0): full reduction over the 4x4 map.
    t = jnp.sum(y4 * w5r_ref[...], axis=0, keepdims=True)       # (1, 4*8fd)
    z = jnp.sum(t, axis=1, keepdims=True) + b5_ref[0, 0]        # (1, 1)
    o_ref[...] = z.reshape(1, 1, 1).astype(o_ref.dtype)


# --------------------------- constant construction -------------------------- #
def _sel_rows(h_in, dtype):
    """(4, H_out, H_in) 0/1 selector: sel[ki, a, i] = (i == 2a + ki - 1)."""
    h_out = h_in // 2
    ki = jnp.arange(4)[:, None, None]
    a = jnp.arange(h_out)[None, :, None]
    i = jnp.arange(h_in)[None, None, :]
    return (i == 2 * a + ki - 1).astype(dtype)


def _conv_band(w, w_in, c_in_p, dtype):
    """Block-banded conv matrix per vertical tap.

    w: (C_out, C_in, 4, 4) PyTorch weight.  Returns
    (4, W_in*C_in_p, W_out*C_out) with
      out[ki, j*C_in_p + ci, b*C_out + co] = w[co, ci, ki, j - 2b + 1]
    (zero outside the 4-wide band; W-padding handled by band clipping).
    """
    c_out, c_in, _, _ = w.shape
    w_out = w_in // 2
    jj = jnp.arange(w_in)[None, :, None]
    bb = jnp.arange(w_out)[None, None, :]
    kk = jnp.arange(4)[:, None, None]
    band = (jj == 2 * bb + kk - 1).astype(w.dtype)        # (4[kj], W_in, W_out)
    m = jnp.einsum('kjb,oiyk->yjibo', band, w)            # (4, W_in, C_in, W_out, C_out)
    if c_in_p > c_in:
        m = jnp.pad(m, ((0, 0), (0, 0), (0, c_in_p - c_in), (0, 0), (0, 0)))
    return m.reshape(4, w_in * c_in_p, w_out * c_out).astype(dtype)


def _group_sum_mat(w_out, c_out):
    """(W_out*C_out, C_out) matrix pooling the w-groups of the lane dim."""
    return jnp.tile(jnp.eye(c_out, dtype=jnp.float32), (w_out, 1))


# --------------------------------- wrapper --------------------------------- #
@jax.jit
def discriminator_forward(x_nchw, params):
    n, c0, h, w = x_nchw.shape
    assert h == 64 and w == 64, "fused kernel expects 64x64 input (4x4 pre-final map)"
    fd = params["w1"].shape[0]
    c0p = c0 + (c0 % 2)                      # even -> 64*c0p is a multiple of 128

    # Input: NCHW -> lane-dense (N, 64, 64*c0p) bf16 slab.
    x = jnp.transpose(x_nchw, (0, 2, 3, 1))
    if c0p > c0:
        x = jnp.pad(x, ((0, 0), (0, 0), (0, 0), (0, c0p - c0)))
    x = x.reshape(n, h, w * c0p).astype(jnp.bfloat16)

    bf = jnp.bfloat16
    sel1 = _sel_rows(64, bf)
    wb1 = _conv_band(params["w1"], 64, c0p, bf)
    bias1 = jnp.tile(params["b1"].reshape(1, fd), (1, 32)).astype(jnp.float32)

    sel2 = _sel_rows(32, bf)
    wb2 = _conv_band(params["w2"], 32, fd, bf)
    gb2 = jnp.stack([params["g2"].reshape(-1), params["be2"].reshape(-1)]).astype(jnp.float32)
    tm2 = _group_sum_mat(16, 2 * fd)

    sel3 = _sel_rows(16, bf)
    wb3 = _conv_band(params["w3"], 16, 2 * fd, bf)
    gb3 = jnp.stack([params["g3"].reshape(-1), params["be3"].reshape(-1)]).astype(jnp.float32)
    tm3 = _group_sum_mat(8, 4 * fd)

    sel4 = _sel_rows(8, bf)
    wb4 = _conv_band(params["w4"], 8, 4 * fd, bf)
    gb4 = jnp.stack([params["g4"].reshape(-1), params["be4"].reshape(-1)]).astype(jnp.float32)
    tm4 = _group_sum_mat(4, 8 * fd)

    # Final conv weight: (1, 8fd, 4, 4) -> (4, 4*8fd), [kh, kw*C + c] order.
    w5r = jnp.transpose(params["w5"][0], (1, 2, 0)).reshape(4, 4 * 8 * fd).astype(jnp.float32)
    b5 = params["b5"].reshape(1, 1).astype(jnp.float32)

    consts = [sel1, wb1, bias1,
              sel2, wb2, gb2, tm2, tm2.T,
              sel3, wb3, gb3, tm3, tm3.T,
              sel4, wb4, gb4, tm4, tm4.T,
              w5r]

    def cspec(a):
        zero = (0,) * a.ndim
        return pl.BlockSpec(a.shape, lambda i, z=zero: z)

    in_specs = [pl.BlockSpec((1, h, w * c0p), lambda i: (i, 0, 0))]
    in_specs += [cspec(a) for a in consts]
    in_specs += [pl.BlockSpec(memory_space=pltpu.MemorySpace.SMEM)]   # b5 scalar

    out = pl.pallas_call(
        _disc_kernel,
        out_shape=jax.ShapeDtypeStruct((n, 1, 1), jnp.float32),
        grid=(n,),
        in_specs=in_specs,
        out_specs=pl.BlockSpec((1, 1, 1), lambda i: (i, 0, 0)),
        compiler_params=pltpu.CompilerParams(
            dimension_semantics=("parallel",),
            vmem_limit_bytes=24 * 1024 * 1024),
    )(x, *consts, b5)
    return out.reshape(n, 1, 1, 1)


# --------------------------------- params ---------------------------------- #
def init_params(key, channels_img, features_d):
    ks = jax.random.split(key, 7)
    fd = features_d

    def conv_w(k_, cout, cin):
        return jax.random.normal(k_, (cout, cin, 4, 4), jnp.float32) * 0.05

    return {
        "w1": conv_w(ks[0], fd, channels_img),
        "b1": jax.random.normal(ks[1], (fd,), jnp.float32) * 0.05,
        "w2": conv_w(ks[2], fd * 2, fd),
        "g2": jnp.ones((fd * 2,), jnp.float32),
        "be2": jnp.zeros((fd * 2,), jnp.float32),
        "w3": conv_w(ks[3], fd * 4, fd * 2),
        "g3": jnp.ones((fd * 4,), jnp.float32),
        "be3": jnp.zeros((fd * 4,), jnp.float32),
        "w4": conv_w(ks[4], fd * 8, fd * 4),
        "g4": jnp.ones((fd * 8,), jnp.float32),
        "be4": jnp.zeros((fd * 8,), jnp.float32),
        "w5": conv_w(ks[5], 1, fd * 8),
        "b5": jax.random.normal(ks[6], (1,), jnp.float32) * 0.05,
    }


if __name__ == "__main__":
    key = jax.random.PRNGKey(0)
    pkey, xkey = jax.random.split(key)

    # Smallest spatial size consistent with the module: the final conv
    # (k=4, s=2, p=0) needs a 4x4 input map, so the image must be 64x64.
    batch, channels_img, features_d, spatial = 2, 3, 8, 64
    params = init_params(pkey, channels_img, features_d)
    x = jax.random.normal(xkey, (batch, channels_img, spatial, spatial),
                          jnp.float32)

    out = discriminator_forward(x, params)
    jax.block_until_ready(out)
    assert out.shape == (batch, 1, 1, 1), out.shape
    assert bool(jnp.all(jnp.isfinite(out)))
    print("KERNEL_OK")
</pallas_src>

<mosaic_0001>
module attributes {stable_mosaic.version = 11 : i64} {
  func.func @_disc_kernel(%arg0: i32, %arg1: memref<1x64x256xbf16, #tpu.memory_space<vmem>>, %arg2: memref<4x32x64xbf16, #tpu.memory_space<vmem>>, %arg3: memref<4x256x256xbf16, #tpu.memory_space<vmem>>, %arg4: memref<1x256xf32, #tpu.memory_space<vmem>>, %arg5: memref<4x16x32xbf16, #tpu.memory_space<vmem>>, %arg6: memref<4x256x256xbf16, #tpu.memory_space<vmem>>, %arg7: memref<2x16xf32, #tpu.memory_space<vmem>>, %arg8: memref<256x16xf32, #tpu.memory_space<vmem>>, %arg9: memref<16x256xf32, #tpu.memory_space<vmem>>, %arg10: memref<4x8x16xbf16, #tpu.memory_space<vmem>>, %arg11: memref<4x256x256xbf16, #tpu.memory_space<vmem>>, %arg12: memref<2x32xf32, #tpu.memory_space<vmem>>, %arg13: memref<256x32xf32, #tpu.memory_space<vmem>>, %arg14: memref<32x256xf32, #tpu.memory_space<vmem>>, %arg15: memref<4x4x8xbf16, #tpu.memory_space<vmem>>, %arg16: memref<4x256x256xbf16, #tpu.memory_space<vmem>>, %arg17: memref<2x64xf32, #tpu.memory_space<vmem>>, %arg18: memref<256x64xf32, #tpu.memory_space<vmem>>, %arg19: memref<64x256xf32, #tpu.memory_space<vmem>>, %arg20: memref<4x256xf32, #tpu.memory_space<vmem>>, %arg21: memref<1x1xf32, #tpu.memory_space<smem>>, %arg22: memref<1x1x1xf32, #tpu.memory_space<vmem>>) attributes {dimension_semantics = [#tpu.dimension_semantics<parallel>], iteration_bounds = array<i64: 2>, scalar_prefetch = 0 : i64, scratch_operands = 0 : i64, tpu.core_type = #tpu.core_type<tc>, window_params = [{transform_indices = @transform_0, window_bounds = array<i64: 1, 64, 256>}, {pipeline_mode = #tpu.pipeline_mode<synchronous>, transform_indices = @transform_1, window_bounds = array<i64: 4, 32, 64>}, {pipeline_mode = #tpu.pipeline_mode<synchronous>, transform_indices = @transform_2, window_bounds = array<i64: 4, 256, 256>}, {pipeline_mode = #tpu.pipeline_mode<synchronous>, transform_indices = @transform_3, window_bounds = array<i64: 1, 256>}, {pipeline_mode = #tpu.pipeline_mode<synchronous>, transform_indices = @transform_4, window_bounds = array<i64: 4, 16, 32>}, {pipeline_mode = #tpu.pipeline_mode<synchronous>, transform_indices = @transform_5, window_bounds = array<i64: 4, 256, 256>}, {pipeline_mode = #tpu.pipeline_mode<synchronous>, transform_indices = @transform_6, window_bounds = array<i64: 2, 16>}, {pipeline_mode = #tpu.pipeline_mode<synchronous>, transform_indices = @transform_7, window_bounds = array<i64: 256, 16>}, {pipeline_mode = #tpu.pipeline_mode<synchronous>, transform_indices = @transform_8, window_bounds = array<i64: 16, 256>}, {pipeline_mode = #tpu.pipeline_mode<synchronous>, transform_indices = @transform_9, window_bounds = array<i64: 4, 8, 16>}, {pipeline_mode = #tpu.pipeline_mode<synchronous>, transform_indices = @transform_10, window_bounds = array<i64: 4, 256, 256>}, {pipeline_mode = #tpu.pipeline_mode<synchronous>, transform_indices = @transform_11, window_bounds = array<i64: 2, 32>}, {pipeline_mode = #tpu.pipeline_mode<synchronous>, transform_indices = @transform_12, window_bounds = array<i64: 256, 32>}, {pipeline_mode = #tpu.pipeline_mode<synchronous>, transform_indices = @transform_13, window_bounds = array<i64: 32, 256>}, {pipeline_mode = #tpu.pipeline_mode<synchronous>, transform_indices = @transform_14, window_bounds = array<i64: 4, 4, 8>}, {pipeline_mode = #tpu.pipeline_mode<synchronous>, transform_indices = @transform_15, window_bounds = array<i64: 4, 256, 256>}, {pipeline_mode = #tpu.pipeline_mode<synchronous>, transform_indices = @transform_16, window_bounds = array<i64: 2, 64>}, {pipeline_mode = #tpu.pipeline_mode<synchronous>, transform_indices = @transform_17, window_bounds = array<i64: 256, 64>}, {pipeline_mode = #tpu.pipeline_mode<synchronous>, transform_indices = @transform_18, window_bounds = array<i64: 64, 256>}, {pipeline_mode = #tpu.pipeline_mode<synchronous>, transform_indices = @transform_19, window_bounds = array<i64: 4, 256>}, {transform_indices = @transform_20, window_bounds = array<i64: 1, 1>}, {transform_indices = @transform_21, window_bounds = array<i64: 1, 1, 1>}]} {
    %c0 = arith.constant 0 : index
    %c0_0 = arith.constant 0 : index
    %c0_1 = arith.constant 0 : index
    %0 = vector.load %arg1[%c0, %c0_0, %c0_1] : memref<1x64x256xbf16, #tpu.memory_space<vmem>>, vector<1x64x256xbf16>
    %1 = vector.shape_cast %0 : vector<1x64x256xbf16> to vector<64x256xbf16>
    %c0_2 = arith.constant 0 : index
    %c0_3 = arith.constant 0 : index
    %c0_4 = arith.constant 0 : index
    %2 = vector.load %arg2[%c0_2, %c0_3, %c0_4] : memref<4x32x64xbf16, #tpu.memory_space<vmem>>, vector<1x32x64xbf16>
    %3 = vector.shape_cast %2 : vector<1x32x64xbf16> to vector<32x64xbf16>
    %cst = arith.constant dense<0.000000e+00> : vector<32x256xf32>
    %4 = tpu.matmul %3, %1, %cst {dimension_numbers = #tpu.dot_dimension_numbers<[1], [0], [0], [1], [0, 0, 1, 1], [], []>} : vector<32x64xbf16>, vector<64x256xbf16>, vector<32x256xf32> -> vector<32x256xf32>
    %5 = arith.truncf %4 : vector<32x256xf32> to vector<32x256xbf16>
    %c0_5 = arith.constant 0 : index
    %c0_6 = arith.constant 0 : index
    %c0_7 = arith.constant 0 : index
    %6 = vector.load %arg3[%c0_5, %c0_6, %c0_7] : memref<4x256x256xbf16, #tpu.memory_space<vmem>>, vector<1x256x256xbf16>
    %7 = vector.shape_cast %6 : vector<1x256x256xbf16> to vector<256x256xbf16>
    %cst_8 = arith.constant dense<0.000000e+00> : vector<32x256xf32>
    %8 = tpu.matmul %5, %7, %cst_8 {dimension_numbers = #tpu.dot_dimension_numbers<[1], [0], [0], [1], [0, 0, 1, 1], [], []>} : vector<32x256xbf16>, vector<256x256xbf16>, vector<32x256xf32> -> vector<32x256xf32>
    %c1 = arith.constant 1 : index
    %c0_9 = arith.constant 0 : index
    %c0_10 = arith.constant 0 : index
    %9 = vector.load %arg2[%c1, %c0_9, %c0_10] : memref<4x32x64xbf16, #tpu.memory_space<vmem>>, vector<1x32x64xbf16>
    %10 = vector.shape_cast %9 : vector<1x32x64xbf16> to vector<32x64xbf16>
    %cst_11 = arith.constant dense<0.000000e+00> : vector<32x256xf32>
    %11 = tpu.matmul %10, %1, %cst_11 {dimension_numbers = #tpu.dot_dimension_numbers<[1], [0], [0], [1], [0, 0, 1, 1], [], []>} : vector<32x64xbf16>, vector<64x256xbf16>, vector<32x256xf32> -> vector<32x256xf32>
    %12 = arith.truncf %11 : vector<32x256xf32> to vector<32x256xbf16>
    %c1_12 = arith.constant 1 : index
    %c0_13 = arith.constant 0 : index
    %c0_14 = arith.constant 0 : index
    %13 = vector.load %arg3[%c1_12, %c0_13, %c0_14] : memref<4x256x256xbf16, #tpu.memory_space<vmem>>, vector<1x256x256xbf16>
    %14 = vector.shape_cast %13 : vector<1x256x256xbf16> to vector<256x256xbf16>
    %cst_15 = arith.constant dense<0.000000e+00> : vector<32x256xf32>
    %15 = tpu.matmul %12, %14, %cst_15 {dimension_numbers = #tpu.dot_dimension_numbers<[1], [0], [0], [1], [0, 0, 1, 1], [], []>} : vector<32x256xbf16>, vector<256x256xbf16>, vector<32x256xf32> -> vector<32x256xf32>
    %16 = arith.addf %8, %15 : vector<32x256xf32>
    %c2 = arith.constant 2 : index
    %c0_16 = arith.constant 0 : index
    %c0_17 = arith.constant 0 : index
    %17 = vector.load %arg2[%c2, %c0_16, %c0_17] : memref<4x32x64xbf16, #tpu.memory_space<vmem>>, vector<1x32x64xbf16>
    %18 = vector.shape_cast %17 : vector<1x32x64xbf16> to vector<32x64xbf16>
    %cst_18 = arith.constant dense<0.000000e+00> : vector<32x256xf32>
    %19 = tpu.matmul %18, %1, %cst_18 {dimension_numbers = #tpu.dot_dimension_numbers<[1], [0], [0], [1], [0, 0, 1, 1], [], []>} : vector<32x64xbf16>, vector<64x256xbf16>, vector<32x256xf32> -> vector<32x256xf32>
    %20 = arith.truncf %19 : vector<32x256xf32> to vector<32x256xbf16>
    %c2_19 = arith.constant 2 : index
    %c0_20 = arith.constant 0 : index
    %c0_21 = arith.constant 0 : index
    %21 = vector.load %arg3[%c2_19, %c0_20, %c0_21] : memref<4x256x256xbf16, #tpu.memory_space<vmem>>, vector<1x256x256xbf16>
    %22 = vector.shape_cast %21 : vector<1x256x256xbf16> to vector<256x256xbf16>
    %cst_22 = arith.constant dense<0.000000e+00> : vector<32x256xf32>
    %23 = tpu.matmul %20, %22, %cst_22 {dimension_numbers = #tpu.dot_dimension_numbers<[1], [0], [0], [1], [0, 0, 1, 1], [], []>} : vector<32x256xbf16>, vector<256x256xbf16>, vector<32x256xf32> -> vector<32x256xf32>
    %24 = arith.addf %16, %23 : vector<32x256xf32>
    %c3 = arith.constant 3 : index
    %c0_23 = arith.constant 0 : index
    %c0_24 = arith.constant 0 : index
    %25 = vector.load %arg2[%c3, %c0_23, %c0_24] : memref<4x32x64xbf16, #tpu.memory_space<vmem>>, vector<1x32x64xbf16>
    %26 = vector.shape_cast %25 : vector<1x32x64xbf16> to vector<32x64xbf16>
    %cst_25 = arith.constant dense<0.000000e+00> : vector<32x256xf32>
    %27 = tpu.matmul %26, %1, %cst_25 {dimension_numbers = #tpu.dot_dimension_numbers<[1], [0], [0], [1], [0, 0, 1, 1], [], []>} : vector<32x64xbf16>, vector<64x256xbf16>, vector<32x256xf32> -> vector<32x256xf32>
    %28 = arith.truncf %27 : vector<32x256xf32> to vector<32x256xbf16>
    %c3_26 = arith.constant 3 : index
    %c0_27 = arith.constant 0 : index
    %c0_28 = arith.constant 0 : index
    %29 = vector.load %arg3[%c3_26, %c0_27, %c0_28] : memref<4x256x256xbf16, #tpu.memory_space<vmem>>, vector<1x256x256xbf16>
    %30 = vector.shape_cast %29 : vector<1x256x256xbf16> to vector<256x256xbf16>
    %cst_29 = arith.constant dense<0.000000e+00> : vector<32x256xf32>
    %31 = tpu.matmul %28, %30, %cst_29 {dimension_numbers = #tpu.dot_dimension_numbers<[1], [0], [0], [1], [0, 0, 1, 1], [], []>} : vector<32x256xbf16>, vector<256x256xbf16>, vector<32x256xf32> -> vector<32x256xf32>
    %32 = arith.addf %24, %31 : vector<32x256xf32>
    %c0_30 = arith.constant 0 : index
    %c0_31 = arith.constant 0 : index
    %33 = vector.load %arg4[%c0_30, %c0_31] : memref<1x256xf32, #tpu.memory_space<vmem>>, vector<1x256xf32>
    %34 = vector.broadcast %33 : vector<1x256xf32> to vector<32x256xf32>
    %35 = arith.addf %32, %34 : vector<32x256xf32>
    %cst_32 = arith.constant 0.000000e+00 : f32
    %36 = vector.broadcast %cst_32 : f32 to vector<32x256xf32>
    %37 = arith.cmpf ogt, %35, %36 : vector<32x256xf32>
    %cst_33 = arith.constant 2.000000e-01 : f32
    %38 = vector.broadcast %cst_33 : f32 to vector<32x256xf32>
    %39 = arith.mulf %38, %35 : vector<32x256xf32>
    %40 = arith.select %37, %35, %39 : vector<32x256xi1>, vector<32x256xf32>
    %41 = arith.truncf %40 : vector<32x256xf32> to vector<32x256xbf16>
    %c0_34 = arith.constant 0 : index
    %c0_35 = arith.constant 0 : index
    %c0_36 = arith.constant 0 : index
    %42 = vector.load %arg5[%c0_34, %c0_35, %c0_36] : memref<4x16x32xbf16, #tpu.memory_space<vmem>>, vector<1x16x32xbf16>
    %43 = vector.shape_cast %42 : vector<1x16x32xbf16> to vector<16x32xbf16>
    %cst_37 = arith.constant dense<0.000000e+00> : vector<16x256xf32>
    %44 = tpu.matmul %43, %41, %cst_37 {dimension_numbers = #tpu.dot_dimension_numbers<[1], [0], [0], [1], [0, 0, 1, 1], [], []>} : vector<16x32xbf16>, vector<32x256xbf16>, vector<16x256xf32> -> vector<16x256xf32>
    %45 = arith.truncf %44 : vector<16x256xf32> to vector<16x256xbf16>
    %c0_38 = arith.constant 0 : index
    %c0_39 = arith.constant 0 : index
    %c0_40 = arith.constant 0 : index
    %46 = vector.load %arg6[%c0_38, %c0_39, %c0_40] : memref<4x256x256xbf16, #tpu.memory_space<vmem>>, vector<1x256x256xbf16>
    %47 = vector.shape_cast %46 : vector<1x256x256xbf16> to vector<256x256xbf16>
    %cst_41 = arith.constant dense<0.000000e+00> : vector<16x256xf32>
    %48 = tpu.matmul %45, %47, %cst_41 {dimension_numbers = #tpu.dot_dimension_numbers<[1], [0], [0], [1], [0, 0, 1, 1], [], []>} : vector<16x256xbf16>, vector<256x256xbf16>, vector<16x256xf32> -> vector<16x256xf32>
    %c1_42 = arith.constant 1 : index
    %c0_43 = arith.constant 0 : index
    %c0_44 = arith.constant 0 : index
    %49 = vector.load %arg5[%c1_42, %c0_43, %c0_44] : memref<4x16x32xbf16, #tpu.memory_space<vmem>>, vector<1x16x32xbf16>
    %50 = vector.shape_cast %49 : vector<1x16x32xbf16> to vector<16x32xbf16>
    %cst_45 = arith.constant dense<0.000000e+00> : vector<16x256xf32>
    %51 = tpu.matmul %50, %41, %cst_45 {dimension_numbers = #tpu.dot_dimension_numbers<[1], [0], [0], [1], [0, 0, 1, 1], [], []>} : vector<16x32xbf16>, vector<32x256xbf16>, vector<16x256xf32> -> vector<16x256xf32>
    %52 = arith.truncf %51 : vector<16x256xf32> to vector<16x256xbf16>
    %c1_46 = arith.constant 1 : index
    %c0_47 = arith.constant 0 : index
    %c0_48 = arith.constant 0 : index
    %53 = vector.load %arg6[%c1_46, %c0_47, %c0_48] : memref<4x256x256xbf16, #tpu.memory_space<vmem>>, vector<1x256x256xbf16>
    %54 = vector.shape_cast %53 : vector<1x256x256xbf16> to vector<256x256xbf16>
    %cst_49 = arith.constant dense<0.000000e+00> : vector<16x256xf32>
    %55 = tpu.matmul %52, %54, %cst_49 {dimension_numbers = #tpu.dot_dimension_numbers<[1], [0], [0], [1], [0, 0, 1, 1], [], []>} : vector<16x256xbf16>, vector<256x256xbf16>, vector<16x256xf32> -> vector<16x256xf32>
    %56 = arith.addf %48, %55 : vector<16x256xf32>
    %c2_50 = arith.constant 2 : index
    %c0_51 = arith.constant 0 : index
    %c0_52 = arith.constant 0 : index
    %57 = vector.load %arg5[%c2_50, %c0_51, %c0_52] : memref<4x16x32xbf16, #tpu.memory_space<vmem>>, vector<1x16x32xbf16>
    %58 = vector.shape_cast %57 : vector<1x16x32xbf16> to vector<16x32xbf16>
    %cst_53 = arith.constant dense<0.000000e+00> : vector<16x256xf32>
    %59 = tpu.matmul %58, %41, %cst_53 {dimension_numbers = #tpu.dot_dimension_numbers<[1], [0], [0], [1], [0, 0, 1, 1], [], []>} : vector<16x32xbf16>, vector<32x256xbf16>, vector<16x256xf32> -> vector<16x256xf32>
    %60 = arith.truncf %59 : vector<16x256xf32> to vector<16x256xbf16>
    %c2_54 = arith.constant 2 : index
    %c0_55 = arith.constant 0 : index
    %c0_56 = arith.constant 0 : index
    %61 = vector.load %arg6[%c2_54, %c0_55, %c0_56] : memref<4x256x256xbf16, #tpu.memory_space<vmem>>, vector<1x256x256xbf16>
    %62 = vector.shape_cast %61 : vector<1x256x256xbf16> to vector<256x256xbf16>
    %cst_57 = arith.constant dense<0.000000e+00> : vector<16x256xf32>
    %63 = tpu.matmul %60, %62, %cst_57 {dimension_numbers = #tpu.dot_dimension_numbers<[1], [0], [0], [1], [0, 0, 1, 1], [], []>} : vector<16x256xbf16>, vector<256x256xbf16>, vector<16x256xf32> -> vector<16x256xf32>
    %64 = arith.addf %56, %63 : vector<16x256xf32>
    %c3_58 = arith.constant 3 : index
    %c0_59 = arith.constant 0 : index
    %c0_60 = arith.constant 0 : index
    %65 = vector.load %arg5[%c3_58, %c0_59, %c0_60] : memref<4x16x32xbf16, #tpu.memory_space<vmem>>, vector<1x16x32xbf16>
    %66 = vector.shape_cast %65 : vector<1x16x32xbf16> to vector<16x32xbf16>
    %cst_61 = arith.constant dense<0.000000e+00> : vector<16x256xf32>
    %67 = tpu.matmul %66, %41, %cst_61 {dimension_numbers = #tpu.dot_dimension_numbers<[1], [0], [0], [1], [0, 0, 1, 1], [], []>} : vector<16x32xbf16>, vector<32x256xbf16>, vector<16x256xf32> -> vector<16x256xf32>
    %68 = arith.truncf %67 : vector<16x256xf32> to vector<16x256xbf16>
    %c3_62 = arith.constant 3 : index
    %c0_63 = arith.constant 0 : index
    %c0_64 = arith.constant 0 : index
    %69 = vector.load %arg6[%c3_62, %c0_63, %c0_64] : memref<4x256x256xbf16, #tpu.memory_space<vmem>>, vector<1x256x256xbf16>
    %70 = vector.shape_cast %69 : vector<1x256x256xbf16> to vector<256x256xbf16>
    %cst_65 = arith.constant dense<0.000000e+00> : vector<16x256xf32>
    %71 = tpu.matmul %68, %70, %cst_65 {dimension_numbers = #tpu.dot_dimension_numbers<[1], [0], [0], [1], [0, 0, 1, 1], [], []>} : vector<16x256xbf16>, vector<256x256xbf16>, vector<16x256xf32> -> vector<16x256xf32>
    %72 = arith.addf %64, %71 : vector<16x256xf32>
    %c0_66 = arith.constant 0 : index
    %c0_67 = arith.constant 0 : index
    %73 = vector.load %arg8[%c0_66, %c0_67] : memref<256x16xf32, #tpu.memory_space<vmem>>, vector<256x16xf32>
    %cst_68 = arith.constant dense<0.000000e+00> : vector<256xf32>
    %74 = vector.multi_reduction <add>, %72, %cst_68 [0] : vector<16x256xf32> to vector<256xf32>
    %75 = vector.shape_cast %74 : vector<256xf32> to vector<1x256xf32>
    %76 = arith.mulf %72, %72 : vector<16x256xf32>
    %cst_69 = arith.constant dense<0.000000e+00> : vector<256xf32>
    %77 = vector.multi_reduction <add>, %76, %cst_69 [0] : vector<16x256xf32> to vector<256xf32>
    %78 = vector.shape_cast %77 : vector<256xf32> to vector<1x256xf32>
    %cst_70 = arith.constant dense<0.000000e+00> : vector<1x16xf32>
    %79 = tpu.matmul %75, %73, %cst_70 {dimension_numbers = #tpu.dot_dimension_numbers<[1], [0], [0], [1], [0, 0, 1, 1], [], []>} : vector<1x256xf32>, vector<256x16xf32>, vector<1x16xf32> -> vector<1x16xf32>
    %cst_71 = arith.constant 3.906250e-03 : f32
    %80 = vector.broadcast %cst_71 : f32 to vector<1x16xf32>
    %81 = arith.mulf %79, %80 : vector<1x16xf32>
    %cst_72 = arith.constant dense<0.000000e+00> : vector<1x16xf32>
    %82 = tpu.matmul %78, %73, %cst_72 {dimension_numbers = #tpu.dot_dimension_numbers<[1], [0], [0], [1], [0, 0, 1, 1], [], []>} : vector<1x256xf32>, vector<256x16xf32>, vector<1x16xf32> -> vector<1x16xf32>
    %cst_73 = arith.constant 3.906250e-03 : f32
    %83 = vector.broadcast %cst_73 : f32 to vector<1x16xf32>
    %84 = arith.mulf %82, %83 : vector<1x16xf32>
    %85 = arith.mulf %81, %81 : vector<1x16xf32>
    %86 = arith.subf %84, %85 : vector<1x16xf32>
    %cst_74 = arith.constant 0.000000e+00 : f32
    %87 = vector.broadcast %cst_74 : f32 to vector<1x16xf32>
    %88 = arith.maximumf %86, %87 : vector<1x16xf32>
    %c0_75 = arith.constant 0 : index
    %c0_76 = arith.constant 0 : index
    %89 = vector.load %arg7[%c0_75, %c0_76] : memref<2x16xf32, #tpu.memory_space<vmem>>, vector<1x16xf32>
    %cst_77 = arith.constant 9.99999974E-6 : f32
    %90 = vector.broadcast %cst_77 : f32 to vector<1x16xf32>
    %91 = arith.addf %88, %90 : vector<1x16xf32>
    %92 = math.rsqrt %91 : vector<1x16xf32>
    %93 = arith.mulf %89, %92 : vector<1x16xf32>
    %c1_78 = arith.constant 1 : index
    %c0_79 = arith.constant 0 : index
    %94 = vector.load %arg7[%c1_78, %c0_79] : memref<2x16xf32, #tpu.memory_space<vmem>>, vector<1x16xf32>
    %95 = arith.mulf %81, %93 : vector<1x16xf32>
    %96 = arith.subf %94, %95 : vector<1x16xf32>
    %c0_80 = arith.constant 0 : index
    %c0_81 = arith.constant 0 : index
    %97 = vector.load %arg9[%c0_80, %c0_81] : memref<16x256xf32, #tpu.memory_space<vmem>>, vector<16x256xf32>
    %cst_82 = arith.constant dense<0.000000e+00> : vector<1x256xf32>
    %98 = tpu.matmul %93, %97, %cst_82 {dimension_numbers = #tpu.dot_dimension_numbers<[1], [0], [0], [1], [0, 0, 1, 1], [], []>} : vector<1x16xf32>, vector<16x256xf32>, vector<1x256xf32> -> vector<1x256xf32>
    %99 = vector.broadcast %98 : vector<1x256xf32> to vector<16x256xf32>
    %100 = arith.mulf %72, %99 : vector<16x256xf32>
    %cst_83 = arith.constant dense<0.000000e+00> : vector<1x256xf32>
    %101 = tpu.matmul %96, %97, %cst_83 {dimension_numbers = #tpu.dot_dimension_numbers<[1], [0], [0], [1], [0, 0, 1, 1], [], []>} : vector<1x16xf32>, vector<16x256xf32>, vector<1x256xf32> -> vector<1x256xf32>
    %102 = vector.broadcast %101 : vector<1x256xf32> to vector<16x256xf32>
    %103 = arith.addf %100, %102 : vector<16x256xf32>
    %cst_84 = arith.constant 0.000000e+00 : f32
    %104 = vector.broadcast %cst_84 : f32 to vector<16x256xf32>
    %105 = arith.cmpf ogt, %103, %104 : vector<16x256xf32>
    %cst_85 = arith.constant 2.000000e-01 : f32
    %106 = vector.broadcast %cst_85 : f32 to vector<16x256xf32>
    %107 = arith.mulf %106, %103 : vector<16x256xf32>
    %108 = arith.select %105, %103, %107 : vector<16x256xi1>, vector<16x256xf32>
    %109 = arith.truncf %108 : vector<16x256xf32> to vector<16x256xbf16>
    %c0_86 = arith.constant 0 : index
    %c0_87 = arith.constant 0 : index
    %c0_88 = arith.constant 0 : index
    %110 = vector.load %arg10[%c0_86, %c0_87, %c0_88] : memref<4x8x16xbf16, #tpu.memory_space<vmem>>, vector<1x8x16xbf16>
    %111 = vector.shape_cast %110 : vector<1x8x16xbf16> to vector<8x16xbf16>
    %cst_89 = arith.constant dense<0.000000e+00> : vector<8x256xf32>
    %112 = tpu.matmul %111, %109, %cst_89 {dimension_numbers = #tpu.dot_dimension_numbers<[1], [0], [0], [1], [0, 0, 1, 1], [], []>} : vector<8x16xbf16>, vector<16x256xbf16>, vector<8x256xf32> -> vector<8x256xf32>
    %113 = arith.truncf %112 : vector<8x256xf32> to vector<8x256xbf16>
    %c0_90 = arith.constant 0 : index
    %c0_91 = arith.constant 0 : index
    %c0_92 = arith.constant 0 : index
    %114 = vector.load %arg11[%c0_90, %c0_91, %c0_92] : memref<4x256x256xbf16, #tpu.memory_space<vmem>>, vector<1x256x256xbf16>
    %115 = vector.shape_cast %114 : vector<1x256x256xbf16> to vector<256x256xbf16>
    %cst_93 = arith.constant dense<0.000000e+00> : vector<8x256xf32>
    %116 = tpu.matmul %113, %115, %cst_93 {dimension_numbers = #tpu.dot_dimension_numbers<[1], [0], [0], [1], [0, 0, 1, 1], [], []>} : vector<8x256xbf16>, vector<256x256xbf16>, vector<8x256xf32> -> vector<8x256xf32>
    %c1_94 = arith.constant 1 : index
    %c0_95 = arith.constant 0 : index
    %c0_96 = arith.constant 0 : index
    %117 = vector.load %arg10[%c1_94, %c0_95, %c0_96] : memref<4x8x16xbf16, #tpu.memory_space<vmem>>, vector<1x8x16xbf16>
    %118 = vector.shape_cast %117 : vector<1x8x16xbf16> to vector<8x16xbf16>
    %cst_97 = arith.constant dense<0.000000e+00> : vector<8x256xf32>
    %119 = tpu.matmul %118, %109, %cst_97 {dimension_numbers = #tpu.dot_dimension_numbers<[1], [0], [0], [1], [0, 0, 1, 1], [], []>} : vector<8x16xbf16>, vector<16x256xbf16>, vector<8x256xf32> -> vector<8x256xf32>
    %120 = arith.truncf %119 : vector<8x256xf32> to vector<8x256xbf16>
    %c1_98 = arith.constant 1 : index
    %c0_99 = arith.constant 0 : index
    %c0_100 = arith.constant 0 : index
    %121 = vector.load %arg11[%c1_98, %c0_99, %c0_100] : memref<4x256x256xbf16, #tpu.memory_space<vmem>>, vector<1x256x256xbf16>
    %122 = vector.shape_cast %121 : vector<1x256x256xbf16> to vector<256x256xbf16>
    %cst_101 = arith.constant dense<0.000000e+00> : vector<8x256xf32>
    %123 = tpu.matmul %120, %122, %cst_101 {dimension_numbers = #tpu.dot_dimension_numbers<[1], [0], [0], [1], [0, 0, 1, 1], [], []>} : vector<8x256xbf16>, vector<256x256xbf16>, vector<8x256xf32> -> vector<8x256xf32>
    %124 = arith.addf %116, %123 : vector<8x256xf32>
    %c2_102 = arith.constant 2 : index
    %c0_103 = arith.constant 0 : index
    %c0_104 = arith.constant 0 : index
    %125 = vector.load %arg10[%c2_102, %c0_103, %c0_104] : memref<4x8x16xbf16, #tpu.memory_space<vmem>>, vector<1x8x16xbf16>
    %126 = vector.shape_cast %125 : vector<1x8x16xbf16> to vector<8x16xbf16>
    %cst_105 = arith.constant dense<0.000000e+00> : vector<8x256xf32>
    %127 = tpu.matmul %126, %109, %cst_105 {dimension_numbers = #tpu.dot_dimension_numbers<[1], [0], [0], [1], [0, 0, 1, 1], [], []>} : vector<8x16xbf16>, vector<16x256xbf16>, vector<8x256xf32> -> vector<8x256xf32>
    %128 = arith.truncf %127 : vector<8x256xf32> to vector<8x256xbf16>
    %c2_106 = arith.constant 2 : index
    %c0_107 = arith.constant 0 : index
    %c0_108 = arith.constant 0 : index
    %129 = vector.load %arg11[%c2_106, %c0_107, %c0_108] : memref<4x256x256xbf16, #tpu.memory_space<vmem>>, vector<1x256x256xbf16>
    %130 = vector.shape_cast %129 : vector<1x256x256xbf16> to vector<256x256xbf16>
    %cst_109 = arith.constant dense<0.000000e+00> : vector<8x256xf32>
    %131 = tpu.matmul %128, %130, %cst_109 {dimension_numbers = #tpu.dot_dimension_numbers<[1], [0], [0], [1], [0, 0, 1, 1], [], []>} : vector<8x256xbf16>, vector<256x256xbf16>, vector<8x256xf32> -> vector<8x256xf32>
    %132 = arith.addf %124, %131 : vector<8x256xf32>
    %c3_110 = arith.constant 3 : index
    %c0_111 = arith.constant 0 : index
    %c0_112 = arith.constant 0 : index
    %133 = vector.load %arg10[%c3_110, %c0_111, %c0_112] : memref<4x8x16xbf16, #tpu.memory_space<vmem>>, vector<1x8x16xbf16>
    %134 = vector.shape_cast %133 : vector<1x8x16xbf16> to vector<8x16xbf16>
    %cst_113 = arith.constant dense<0.000000e+00> : vector<8x256xf32>
    %135 = tpu.matmul %134, %109, %cst_113 {dimension_numbers = #tpu.dot_dimension_numbers<[1], [0], [0], [1], [0, 0, 1, 1], [], []>} : vector<8x16xbf16>, vector<16x256xbf16>, vector<8x256xf32> -> vector<8x256xf32>
    %136 = arith.truncf %135 : vector<8x256xf32> to vector<8x256xbf16>
    %c3_114 = arith.constant 3 : index
    %c0_115 = arith.constant 0 : index
    %c0_116 = arith.constant 0 : index
    %137 = vector.load %arg11[%c3_114, %c0_115, %c0_116] : memref<4x256x256xbf16, #tpu.memory_space<vmem>>, vector<1x256x256xbf16>
    %138 = vector.shape_cast %137 : vector<1x256x256xbf16> to vector<256x256xbf16>
    %cst_117 = arith.constant dense<0.000000e+00> : vector<8x256xf32>
    %139 = tpu.matmul %136, %138, %cst_117 {dimension_numbers = #tpu.dot_dimension_numbers<[1], [0], [0], [1], [0, 0, 1, 1], [], []>} : vector<8x256xbf16>, vector<256x256xbf16>, vector<8x256xf32> -> vector<8x256xf32>
    %140 = arith.addf %132, %139 : vector<8x256xf32>
    %c0_118 = arith.constant 0 : index
    %c0_119 = arith.constant 0 : index
    %141 = vector.load %arg13[%c0_118, %c0_119] : memref<256x32xf32, #tpu.memory_space<vmem>>, vector<256x32xf32>
    %cst_120 = arith.constant dense<0.000000e+00> : vector<256xf32>
    %142 = vector.multi_reduction <add>, %140, %cst_120 [0] : vector<8x256xf32> to vector<256xf32>
    %143 = vector.shape_cast %142 : vector<256xf32> to vector<1x256xf32>
    %144 = arith.mulf %140, %140 : vector<8x256xf32>
    %cst_121 = arith.constant dense<0.000000e+00> : vector<256xf32>
    %145 = vector.multi_reduction <add>, %144, %cst_121 [0] : vector<8x256xf32> to vector<256xf32>
    %146 = vector.shape_cast %145 : vector<256xf32> to vector<1x256xf32>
    %cst_122 = arith.constant dense<0.000000e+00> : vector<1x32xf32>
    %147 = tpu.matmul %143, %141, %cst_122 {dimension_numbers = #tpu.dot_dimension_numbers<[1], [0], [0], [1], [0, 0, 1, 1], [], []>} : vector<1x256xf32>, vector<256x32xf32>, vector<1x32xf32> -> vector<1x32xf32>
    %cst_123 = arith.constant 1.562500e-02 : f32
    %148 = vector.broadcast %cst_123 : f32 to vector<1x32xf32>
    %149 = arith.mulf %147, %148 : vector<1x32xf32>
    %cst_124 = arith.constant dense<0.000000e+00> : vector<1x32xf32>
    %150 = tpu.matmul %146, %141, %cst_124 {dimension_numbers = #tpu.dot_dimension_numbers<[1], [0], [0], [1], [0, 0, 1, 1], [], []>} : vector<1x256xf32>, vector<256x32xf32>, vector<1x32xf32> -> vector<1x32xf32>
    %cst_125 = arith.constant 1.562500e-02 : f32
    %151 = vector.broadcast %cst_125 : f32 to vector<1x32xf32>
    %152 = arith.mulf %150, %151 : vector<1x32xf32>
    %153 = arith.mulf %149, %149 : vector<1x32xf32>
    %154 = arith.subf %152, %153 : vector<1x32xf32>
    %cst_126 = arith.constant 0.000000e+00 : f32
    %155 = vector.broadcast %cst_126 : f32 to vector<1x32xf32>
    %156 = arith.maximumf %154, %155 : vector<1x32xf32>
    %c0_127 = arith.constant 0 : index
    %c0_128 = arith.constant 0 : index
    %157 = vector.load %arg12[%c0_127, %c0_128] : memref<2x32xf32, #tpu.memory_space<vmem>>, vector<1x32xf32>
    %cst_129 = arith.constant 9.99999974E-6 : f32
    %158 = vector.broadcast %cst_129 : f32 to vector<1x32xf32>
    %159 = arith.addf %156, %158 : vector<1x32xf32>
    %160 = math.rsqrt %159 : vector<1x32xf32>
    %161 = arith.mulf %157, %160 : vector<1x32xf32>
    %c1_130 = arith.constant 1 : index
    %c0_131 = arith.constant 0 : index
    %162 = vector.load %arg12[%c1_130, %c0_131] : memref<2x32xf32, #tpu.memory_space<vmem>>, vector<1x32xf32>
    %163 = arith.mulf %149, %161 : vector<1x32xf32>
    %164 = arith.subf %162, %163 : vector<1x32xf32>
    %c0_132 = arith.constant 0 : index
    %c0_133 = arith.constant 0 : index
    %165 = vector.load %arg14[%c0_132, %c0_133] : memref<32x256xf32, #tpu.memory_space<vmem>>, vector<32x256xf32>
    %cst_134 = arith.constant dense<0.000000e+00> : vector<1x256xf32>
    %166 = tpu.matmul %161, %165, %cst_134 {dimension_numbers = #tpu.dot_dimension_numbers<[1], [0], [0], [1], [0, 0, 1, 1], [], []>} : vector<1x32xf32>, vector<32x256xf32>, vector<1x256xf32> -> vector<1x256xf32>
    %167 = vector.broadcast %166 : vector<1x256xf32> to vector<8x256xf32>
    %168 = arith.mulf %140, %167 : vector<8x256xf32>
    %cst_135 = arith.constant dense<0.000000e+00> : vector<1x256xf32>
    %169 = tpu.matmul %164, %165, %cst_135 {dimension_numbers = #tpu.dot_dimension_numbers<[1], [0], [0], [1], [0, 0, 1, 1], [], []>} : vector<1x32xf32>, vector<32x256xf32>, vector<1x256xf32> -> vector<1x256xf32>
    %170 = vector.broadcast %169 : vector<1x256xf32> to vector<8x256xf32>
    %171 = arith.addf %168, %170 : vector<8x256xf32>
    %cst_136 = arith.constant 0.000000e+00 : f32
    %172 = vector.broadcast %cst_136 : f32 to vector<8x256xf32>
    %173 = arith.cmpf ogt, %171, %172 : vector<8x256xf32>
    %cst_137 = arith.constant 2.000000e-01 : f32
    %174 = vector.broadcast %cst_137 : f32 to vector<8x256xf32>
    %175 = arith.mulf %174, %171 : vector<8x256xf32>
    %176 = arith.select %173, %171, %175 : vector<8x256xi1>, vector<8x256xf32>
    %177 = arith.truncf %176 : vector<8x256xf32> to vector<8x256xbf16>
    %c0_138 = arith.constant 0 : index
    %c0_139 = arith.constant 0 : index
    %c0_140 = arith.constant 0 : index
    %178 = vector.load %arg15[%c0_138, %c0_139, %c0_140] : memref<4x4x8xbf16, #tpu.memory_space<vmem>>, vector<1x4x8xbf16>
    %179 = vector.shape_cast %178 : vector<1x4x8xbf16> to vector<4x8xbf16>
    %cst_141 = arith.constant dense<0.000000e+00> : vector<4x256xf32>
    %180 = tpu.matmul %179, %177, %cst_141 {dimension_numbers = #tpu.dot_dimension_numbers<[1], [0], [0], [1], [0, 0, 1, 1], [], []>} : vector<4x8xbf16>, vector<8x256xbf16>, vector<4x256xf32> -> vector<4x256xf32>
    %181 = arith.truncf %180 : vector<4x256xf32> to vector<4x256xbf16>
    %c0_142 = arith.constant 0 : index
    %c0_143 = arith.constant 0 : index
    %c0_144 = arith.constant 0 : index
    %182 = vector.load %arg16[%c0_142, %c0_143, %c0_144] : memref<4x256x256xbf16, #tpu.memory_space<vmem>>, vector<1x256x256xbf16>
    %183 = vector.shape_cast %182 : vector<1x256x256xbf16> to vector<256x256xbf16>
    %cst_145 = arith.constant dense<0.000000e+00> : vector<4x256xf32>
    %184 = tpu.matmul %181, %183, %cst_145 {dimension_numbers = #tpu.dot_dimension_numbers<[1], [0], [0], [1], [0, 0, 1, 1], [], []>} : vector<4x256xbf16>, vector<256x256xbf16>, vector<4x256xf32> -> vector<4x256xf32>
    %c1_146 = arith.constant 1 : index
    %c0_147 = arith.constant 0 : index
    %c0_148 = arith.constant 0 : index
    %185 = vector.load %arg15[%c1_146, %c0_147, %c0_148] : memref<4x4x8xbf16, #tpu.memory_space<vmem>>, vector<1x4x8xbf16>
    %186 = vector.shape_cast %185 : vector<1x4x8xbf16> to vector<4x8xbf16>
    %cst_149 = arith.constant dense<0.000000e+00> : vector<4x256xf32>
    %187 = tpu.matmul %186, %177, %cst_149 {dimension_numbers = #tpu.dot_dimension_numbers<[1], [0], [0], [1], [0, 0, 1, 1], [], []>} : vector<4x8xbf16>, vector<8x256xbf16>, vector<4x256xf32> -> vector<4x256xf32>
    %188 = arith.truncf %187 : vector<4x256xf32> to vector<4x256xbf16>
    %c1_150 = arith.constant 1 : index
    %c0_151 = arith.constant 0 : index
    %c0_152 = arith.constant 0 : index
    %189 = vector.load %arg16[%c1_150, %c0_151, %c0_152] : memref<4x256x256xbf16, #tpu.memory_space<vmem>>, vector<1x256x256xbf16>
    %190 = vector.shape_cast %189 : vector<1x256x256xbf16> to vector<256x256xbf16>
    %cst_153 = arith.constant dense<0.000000e+00> : vector<4x256xf32>
    %191 = tpu.matmul %188, %190, %cst_153 {dimension_numbers = #tpu.dot_dimension_numbers<[1], [0], [0], [1], [0, 0, 1, 1], [], []>} : vector<4x256xbf16>, vector<256x256xbf16>, vector<4x256xf32> -> vector<4x256xf32>
    %192 = arith.addf %184, %191 : vector<4x256xf32>
    %c2_154 = arith.constant 2 : index
    %c0_155 = arith.constant 0 : index
    %c0_156 = arith.constant 0 : index
    %193 = vector.load %arg15[%c2_154, %c0_155, %c0_156] : memref<4x4x8xbf16, #tpu.memory_space<vmem>>, vector<1x4x8xbf16>
    %194 = vector.shape_cast %193 : vector<1x4x8xbf16> to vector<4x8xbf16>
    %cst_157 = arith.constant dense<0.000000e+00> : vector<4x256xf32>
    %195 = tpu.matmul %194, %177, %cst_157 {dimension_numbers = #tpu.dot_dimension_numbers<[1], [0], [0], [1], [0, 0, 1, 1], [], []>} : vector<4x8xbf16>, vector<8x256xbf16>, vector<4x256xf32> -> vector<4x256xf32>
    %196 = arith.truncf %195 : vector<4x256xf32> to vector<4x256xbf16>
    %c2_158 = arith.constant 2 : index
    %c0_159 = arith.constant 0 : index
    %c0_160 = arith.constant 0 : index
    %197 = vector.load %arg16[%c2_158, %c0_159, %c0_160] : memref<4x256x256xbf16, #tpu.memory_space<vmem>>, vector<1x256x256xbf16>
    %198 = vector.shape_cast %197 : vector<1x256x256xbf16> to vector<256x256xbf16>
    %cst_161 = arith.constant dense<0.000000e+00> : vector<4x256xf32>
    %199 = tpu.matmul %196, %198, %cst_161 {dimension_numbers = #tpu.dot_dimension_numbers<[1], [0], [0], [1], [0, 0, 1, 1], [], []>} : vector<4x256xbf16>, vector<256x256xbf16>, vector<4x256xf32> -> vector<4x256xf32>
    %200 = arith.addf %192, %199 : vector<4x256xf32>
    %c3_162 = arith.constant 3 : index
    %c0_163 = arith.constant 0 : index
    %c0_164 = arith.constant 0 : index
    %201 = vector.load %arg15[%c3_162, %c0_163, %c0_164] : memref<4x4x8xbf16, #tpu.memory_space<vmem>>, vector<1x4x8xbf16>
    %202 = vector.shape_cast %201 : vector<1x4x8xbf16> to vector<4x8xbf16>
    %cst_165 = arith.constant dense<0.000000e+00> : vector<4x256xf32>
    %203 = tpu.matmul %202, %177, %cst_165 {dimension_numbers = #tpu.dot_dimension_numbers<[1], [0], [0], [1], [0, 0, 1, 1], [], []>} : vector<4x8xbf16>, vector<8x256xbf16>, vector<4x256xf32> -> vector<4x256xf32>
    %204 = arith.truncf %203 : vector<4x256xf32> to vector<4x256xbf16>
    %c3_166 = arith.constant 3 : index
    %c0_167 = arith.constant 0 : index
    %c0_168 = arith.constant 0 : index
    %205 = vector.load %arg16[%c3_166, %c0_167, %c0_168] : memref<4x256x256xbf16, #tpu.memory_space<vmem>>, vector<1x256x256xbf16>
    %206 = vector.shape_cast %205 : vector<1x256x256xbf16> to vector<256x256xbf16>
    %cst_169 = arith.constant dense<0.000000e+00> : vector<4x256xf32>
    %207 = tpu.matmul %204, %206, %cst_169 {dimension_numbers = #tpu.dot_dimension_numbers<[1], [0], [0], [1], [0, 0, 1, 1], [], []>} : vector<4x256xbf16>, vector<256x256xbf16>, vector<4x256xf32> -> vector<4x256xf32>
    %208 = arith.addf %200, %207 : vector<4x256xf32>
    %c0_170 = arith.constant 0 : index
    %c0_171 = arith.constant 0 : index
    %209 = vector.load %arg18[%c0_170, %c0_171] : memref<256x64xf32, #tpu.memory_space<vmem>>, vector<256x64xf32>
    %cst_172 = arith.constant dense<0.000000e+00> : vector<256xf32>
    %210 = vector.multi_reduction <add>, %208, %cst_172 [0] : vector<4x256xf32> to vector<256xf32>
    %211 = vector.shape_cast %210 : vector<256xf32> to vector<1x256xf32>
    %212 = arith.mulf %208, %208 : vector<4x256xf32>
    %cst_173 = arith.constant dense<0.000000e+00> : vector<256xf32>
    %213 = vector.multi_reduction <add>, %212, %cst_173 [0] : vector<4x256xf32> to vector<256xf32>
    %214 = vector.shape_cast %213 : vector<256xf32> to vector<1x256xf32>
    %cst_174 = arith.constant dense<0.000000e+00> : vector<1x64xf32>
    %215 = tpu.matmul %211, %209, %cst_174 {dimension_numbers = #tpu.dot_dimension_numbers<[1], [0], [0], [1], [0, 0, 1, 1], [], []>} : vector<1x256xf32>, vector<256x64xf32>, vector<1x64xf32> -> vector<1x64xf32>
    %cst_175 = arith.constant 6.250000e-02 : f32
    %216 = vector.broadcast %cst_175 : f32 to vector<1x64xf32>
    %217 = arith.mulf %215, %216 : vector<1x64xf32>
    %cst_176 = arith.constant dense<0.000000e+00> : vector<1x64xf32>
    %218 = tpu.matmul %214, %209, %cst_176 {dimension_numbers = #tpu.dot_dimension_numbers<[1], [0], [0], [1], [0, 0, 1, 1], [], []>} : vector<1x256xf32>, vector<256x64xf32>, vector<1x64xf32> -> vector<1x64xf32>
    %cst_177 = arith.constant 6.250000e-02 : f32
    %219 = vector.broadcast %cst_177 : f32 to vector<1x64xf32>
    %220 = arith.mulf %218, %219 : vector<1x64xf32>
    %221 = arith.mulf %217, %217 : vector<1x64xf32>
    %222 = arith.subf %220, %221 : vector<1x64xf32>
    %cst_178 = arith.constant 0.000000e+00 : f32
    %223 = vector.broadcast %cst_178 : f32 to vector<1x64xf32>
    %224 = arith.maximumf %222, %223 : vector<1x64xf32>
    %c0_179 = arith.constant 0 : index
    %c0_180 = arith.constant 0 : index
    %225 = vector.load %arg17[%c0_179, %c0_180] : memref<2x64xf32, #tpu.memory_space<vmem>>, vector<1x64xf32>
    %cst_181 = arith.constant 9.99999974E-6 : f32
    %226 = vector.broadcast %cst_181 : f32 to vector<1x64xf32>
    %227 = arith.addf %224, %226 : vector<1x64xf32>
    %228 = math.rsqrt %227 : vector<1x64xf32>
    %229 = arith.mulf %225, %228 : vector<1x64xf32>
    %c1_182 = arith.constant 1 : index
    %c0_183 = arith.constant 0 : index
    %230 = vector.load %arg17[%c1_182, %c0_183] : memref<2x64xf32, #tpu.memory_space<vmem>>, vector<1x64xf32>
    %231 = arith.mulf %217, %229 : vector<1x64xf32>
    %232 = arith.subf %230, %231 : vector<1x64xf32>
    %c0_184 = arith.constant 0 : index
    %c0_185 = arith.constant 0 : index
    %233 = vector.load %arg19[%c0_184, %c0_185] : memref<64x256xf32, #tpu.memory_space<vmem>>, vector<64x256xf32>
    %cst_186 = arith.constant dense<0.000000e+00> : vector<1x256xf32>
    %234 = tpu.matmul %229, %233, %cst_186 {dimension_numbers = #tpu.dot_dimension_numbers<[1], [0], [0], [1], [0, 0, 1, 1], [], []>} : vector<1x64xf32>, vector<64x256xf32>, vector<1x256xf32> -> vector<1x256xf32>
    %235 = vector.broadcast %234 : vector<1x256xf32> to vector<4x256xf32>
    %236 = arith.mulf %208, %235 : vector<4x256xf32>
    %cst_187 = arith.constant dense<0.000000e+00> : vector<1x256xf32>
    %237 = tpu.matmul %232, %233, %cst_187 {dimension_numbers = #tpu.dot_dimension_numbers<[1], [0], [0], [1], [0, 0, 1, 1], [], []>} : vector<1x64xf32>, vector<64x256xf32>, vector<1x256xf32> -> vector<1x256xf32>
    %238 = vector.broadcast %237 : vector<1x256xf32> to vector<4x256xf32>
    %239 = arith.addf %236, %238 : vector<4x256xf32>
    %cst_188 = arith.constant 0.000000e+00 : f32
    %240 = vector.broadcast %cst_188 : f32 to vector<4x256xf32>
    %241 = arith.cmpf ogt, %239, %240 : vector<4x256xf32>
    %cst_189 = arith.constant 2.000000e-01 : f32
    %242 = vector.broadcast %cst_189 : f32 to vector<4x256xf32>
    %243 = arith.mulf %242, %239 : vector<4x256xf32>
    %244 = arith.select %241, %239, %243 : vector<4x256xi1>, vector<4x256xf32>
    %c0_190 = arith.constant 0 : index
    %c0_191 = arith.constant 0 : index
    %245 = vector.load %arg20[%c0_190, %c0_191] : memref<4x256xf32, #tpu.memory_space<vmem>>, vector<4x256xf32>
    %246 = arith.mulf %244, %245 : vector<4x256xf32>
    %cst_192 = arith.constant dense<0.000000e+00> : vector<256xf32>
    %247 = vector.multi_reduction <add>, %246, %cst_192 [0] : vector<4x256xf32> to vector<256xf32>
    %248 = vector.shape_cast %247 : vector<256xf32> to vector<1x256xf32>
    %cst_193 = arith.constant dense<0.000000e+00> : vector<1xf32>
    %249 = vector.multi_reduction <add>, %248, %cst_193 [1] : vector<1x256xf32> to vector<1xf32>
    %250 = vector.shape_cast %249 : vector<1xf32> to vector<1x1xf32>
    %c0_194 = arith.constant 0 : index
    %c0_195 = arith.constant 0 : index
    %251 = memref.load %arg21[%c0_194, %c0_195] : memref<1x1xf32, #tpu.memory_space<smem>>
    %252 = vector.broadcast %251 : f32 to vector<1x1xf32>
    %253 = arith.addf %250, %252 : vector<1x1xf32>
    %254 = vector.shape_cast %253 : vector<1x1xf32> to vector<1x1x1xf32>
    %c0_196 = arith.constant 0 : index
    %c0_197 = arith.constant 0 : index
    %c0_198 = arith.constant 0 : index
    %255 = vector.load %arg22[%c0_196, %c0_197, %c0_198] : memref<1x1x1xf32, #tpu.memory_space<vmem>>, vector<1x1x1xf32>
    tpu.vector_store %arg22[%c0_196, %c0_197, %c0_198], %254 {strides = array<i32>} : memref<1x1x1xf32, #tpu.memory_space<vmem>>, vector<1x1x1xf32>,
    return
  }
  func.func @transform_0(%arg0: i32) -> (i32, i32, i32) {
    %c0_i32 = arith.constant 0 : i32
    %c0_i32_0 = arith.constant 0 : i32
    %c0_i32_1 = arith.constant 0 : i32
    return %arg0, %c0_i32, %c0_i32_0 : i32, i32, i32
  }
  func.func @transform_1(%arg0: i32) -> (i32, i32, i32) {
    %c0_i32 = arith.constant 0 : i32
    %c0_i32_0 = arith.constant 0 : i32
    %c0_i32_1 = arith.constant 0 : i32
    %c0_i32_2 = arith.constant 0 : i32
    return %c0_i32, %c0_i32_0, %c0_i32_1 : i32, i32, i32
  }
  func.func @transform_2(%arg0: i32) -> (i32, i32, i32) {
    %c0_i32 = arith.constant 0 : i32
    %c0_i32_0 = arith.constant 0 : i32
    %c0_i32_1 = arith.constant 0 : i32
    %c0_i32_2 = arith.constant 0 : i32
    return %c0_i32, %c0_i32_0, %c0_i32_1 : i32, i32, i32
  }
  func.func @transform_3(%arg0: i32) -> (i32, i32) {
    %c0_i32 = arith.constant 0 : i32
    %c0_i32_0 = arith.constant 0 : i32
    %c0_i32_1 = arith.constant 0 : i32
    return %c0_i32, %c0_i32_0 : i32, i32
  }
  func.func @transform_4(%arg0: i32) -> (i32, i32, i32) {
    %c0_i32 = arith.constant 0 : i32
    %c0_i32_0 = arith.constant 0 : i32
    %c0_i32_1 = arith.constant 0 : i32
    %c0_i32_2 = arith.constant 0 : i32
    return %c0_i32, %c0_i32_0, %c0_i32_1 : i32, i32, i32
  }
  func.func @transform_5(%arg0: i32) -> (i32, i32, i32) {
    %c0_i32 = arith.constant 0 : i32
    %c0_i32_0 = arith.constant 0 : i32
    %c0_i32_1 = arith.constant 0 : i32
    %c0_i32_2 = arith.constant 0 : i32
    return %c0_i32, %c0_i32_0, %c0_i32_1 : i32, i32, i32
  }
  func.func @transform_6(%arg0: i32) -> (i32, i32) {
    %c0_i32 = arith.constant 0 : i32
    %c0_i32_0 = arith.constant 0 : i32
    %c0_i32_1 = arith.constant 0 : i32
    return %c0_i32, %c0_i32_0 : i32, i32
  }
  func.func @transform_7(%arg0: i32) -> (i32, i32) {
    %c0_i32 = arith.constant 0 : i32
    %c0_i32_0 = arith.constant 0 : i32
    %c0_i32_1 = arith.constant 0 : i32
    return %c0_i32, %c0_i32_0 : i32, i32
  }
  func.func @transform_8(%arg0: i32) -> (i32, i32) {
    %c0_i32 = arith.constant 0 : i32
    %c0_i32_0 = arith.constant 0 : i32
    %c0_i32_1 = arith.constant 0 : i32
    return %c0_i32, %c0_i32_0 : i32, i32
  }
  func.func @transform_9(%arg0: i32) -> (i32, i32, i32) {
    %c0_i32 = arith.constant 0 : i32
    %c0_i32_0 = arith.constant 0 : i32
    %c0_i32_1 = arith.constant 0 : i32
    %c0_i32_2 = arith.constant 0 : i32
    return %c0_i32, %c0_i32_0, %c0_i32_1 : i32, i32, i32
  }
  func.func @transform_10(%arg0: i32) -> (i32, i32, i32) {
    %c0_i32 = arith.constant 0 : i32
    %c0_i32_0 = arith.constant 0 : i32
    %c0_i32_1 = arith.constant 0 : i32
    %c0_i32_2 = arith.constant 0 : i32
    return %c0_i32, %c0_i32_0, %c0_i32_1 : i32, i32, i32
  }
  func.func @transform_11(%arg0: i32) -> (i32, i32) {
    %c0_i32 = arith.constant 0 : i32
    %c0_i32_0 = arith.constant 0 : i32
    %c0_i32_1 = arith.constant 0 : i32
    return %c0_i32, %c0_i32_0 : i32, i32
  }
  func.func @transform_12(%arg0: i32) -> (i32, i32) {
    %c0_i32 = arith.constant 0 : i32
    %c0_i32_0 = arith.constant 0 : i32
    %c0_i32_1 = arith.constant 0 : i32
    return %c0_i32, %c0_i32_0 : i32, i32
  }
  func.func @transform_13(%arg0: i32) -> (i32, i32) {
    %c0_i32 = arith.constant 0 : i32
    %c0_i32_0 = arith.constant 0 : i32
    %c0_i32_1 = arith.constant 0 : i32
    return %c0_i32, %c0_i32_0 : i32, i32
  }
  func.func @transform_14(%arg0: i32) -> (i32, i32, i32) {
    %c0_i32 = arith.constant 0 : i32
    %c0_i32_0 = arith.constant 0 : i32
    %c0_i32_1 = arith.constant 0 : i32
    %c0_i32_2 = arith.constant 0 : i32
    return %c0_i32, %c0_i32_0, %c0_i32_1 : i32, i32, i32
  }
  func.func @transform_15(%arg0: i32) -> (i32, i32, i32) {
    %c0_i32 = arith.constant 0 : i32
    %c0_i32_0 = arith.constant 0 : i32
    %c0_i32_1 = arith.constant 0 : i32
    %c0_i32_2 = arith.constant 0 : i32
    return %c0_i32, %c0_i32_0, %c0_i32_1 : i32, i32, i32
  }
  func.func @transform_16(%arg0: i32) -> (i32, i32) {
    %c0_i32 = arith.constant 0 : i32
    %c0_i32_0 = arith.constant 0 : i32
    %c0_i32_1 = arith.constant 0 : i32
    return %c0_i32, %c0_i32_0 : i32, i32
  }
  func.func @transform_17(%arg0: i32) -> (i32, i32) {
    %c0_i32 = arith.constant 0 : i32
    %c0_i32_0 = arith.constant 0 : i32
    %c0_i32_1 = arith.constant 0 : i32
    return %c0_i32, %c0_i32_0 : i32, i32
  }
  func.func @transform_18(%arg0: i32) -> (i32, i32) {
    %c0_i32 = arith.constant 0 : i32
    %c0_i32_0 = arith.constant 0 : i32
    %c0_i32_1 = arith.constant 0 : i32
    return %c0_i32, %c0_i32_0 : i32, i32
  }
  func.func @transform_19(%arg0: i32) -> (i32, i32) {
    %c0_i32 = arith.constant 0 : i32
    %c0_i32_0 = arith.constant 0 : i32
    %c0_i32_1 = arith.constant 0 : i32
    return %c0_i32, %c0_i32_0 : i32, i32
  }
  func.func @transform_20(%arg0: i32) -> (i32, i32) {
    %c0_i32 = arith.constant 0 : i32
    %c0_i32_0 = arith.constant 0 : i32
    %c0_i32_1 = arith.constant 0 : i32
    return %c0_i32, %c0_i32_0 : i32, i32
  }
  func.func @transform_21(%arg0: i32) -> (i32, i32, i32) {
    %c0_i32 = arith.constant 0 : i32
    %c0_i32_0 = arith.constant 0 : i32
    %c0_i32_1 = arith.constant 0 : i32
    return %arg0, %c0_i32, %c0_i32_0 : i32, i32, i32
  }
}

</mosaic_0001>

<bundles_post_ra>
// kernel: tile.37
= control target key start
LH: loop header
LB: loop body
LE: loop exit
PB: predicated region body
PF: predicated region fallthrough
CT: control target
= control target key end

     0   :  { %s1116_s22 = smov 3  ;;  %vm322_vm0 = vcmask 523264   ;;  %s1118_s23 = smov 3  ;;  %vm706_vm1 = vcmask 1047556   ;;  %vm710_vm2 = vcmask 1048064   ;;  %s1702_s0 = inlined_call_operand.vmem [shape: f32[4,64,64], index: 0, kind: input, shape index: {}]   ;;  %s1703_s1 = inlined_call_operand.vmem [shape: f32[256,64], index: 1, kind: output, shape index: {}]  }
   0x1   :  { %v995_v0 = vld [vmem:[%s1702_s0 + $0x1c] sm:$0xf]  ;;  %v996_v1 = vld [vmem:[%s1702_s0 + $0x18] sm:$0xf]  ;;  %v997_v2 = vld [vmem:[%s1702_s0 + $0x14] sm:$0xf] }
   0x2   :  { %288 = vst [vmem:[#allocation0 + $0x38] sm:$0xf] %v995_v0  ;;  %293 = vst [vmem:[#allocation0 + $0x30] sm:$0xf] %v996_v1  ;;  %v998_v3 = vld [vmem:[%s1702_s0 + $0x10] sm:$0xf] }
   0x3   :  { %298 = vst [vmem:[#allocation0 + $0x28] sm:$0xf] %v997_v2  ;;  %v999_v4 = vld [vmem:[%s1702_s0 + $0xc] sm:$0xf]  ;;  %v1000_v5 = vld [vmem:[%s1702_s0 + $0x8] sm:$0xf] }
   0x4   :  { %303 = vst [vmem:[#allocation0 + $0x20] sm:$0xf] %v998_v3  ;;  %308 = vst [vmem:[#allocation0 + $0x18] sm:$0xf] %v999_v4  ;;  %v1001_v6 = vld [vmem:[%s1702_s0 + $0x4] sm:$0xf] }
   0x5   :  { %313 = vst [vmem:[#allocation0 + $0x10] sm:$0xf] %v1000_v5  ;;  %v318_v7 = vld [vmem:[%s1702_s0] sm:$0xf]  ;;  %317 = vst [vmem:[#allocation0 + $0x8] sm:$0xf] %v1001_v6 }
   0x6   :  { %319 = vst [vmem:[#allocation0] sm:$0xf] %v318_v7  ;;  %s1120_s24 = smov 3  ;;  %v994_v8 = vld [vmem:[%s1702_s0 + $0x20] sm:$0xf]  ;;  %s337_s27 = smov 3 }
   0x7   :  { %s343_s28 = smov 3  ;;  %283 = vst [vmem:[#allocation0 + $0x40] sm:$0xf] %v994_v8  ;;  %v963_v9 = vld [vmem:[%s1702_s0 + $0x9c] sm:$0xf]  ;;  %s349_s4 = smov 3 }
   0x8   :  { %v964_v10 = vld [vmem:[%s1702_s0 + $0x98] sm:$0xf]  ;;  %s355_s5 = smov 3  ;;  %128 = vst [vmem:[#allocation0 + $0x138] sm:$0xf] %v963_v9  ;;  %s1137_s10 = smov 3 }
   0x9   :  { %133 = vst [vmem:[#allocation0 + $0x130] sm:$0xf] %v964_v10  ;;  %v965_v11 = vld [vmem:[%s1702_s0 + $0x94] sm:$0xf]  ;;  %v966_v12 = vld [vmem:[%s1702_s0 + $0x90] sm:$0xf] }
   0xa   :  { %138 = vst [vmem:[#allocation0 + $0x128] sm:$0xf] %v965_v11  ;;  %143 = vst [vmem:[#allocation0 + $0x120] sm:$0xf] %v966_v12  ;;  %v967_v13 = vld [vmem:[%s1702_s0 + $0x8c] sm:$0xf] }
   0xb   :  { %v968_v14 = vld [vmem:[%s1702_s0 + $0x88] sm:$0xf]  ;;  %148 = vst [vmem:[#allocation0 + $0x118] sm:$0xf] %v967_v13  ;;  %v969_v15 = vld [vmem:[%s1702_s0 + $0x84] sm:$0xf] }
   0xc   :  { %153 = vst [vmem:[#allocation0 + $0x110] sm:$0xf] %v968_v14  ;;  %v970_v16 = vld [vmem:[%s1702_s0 + $0x80] sm:$0xf]  ;;  %v971_v17 = vld [vmem:[%s1702_s0 + $0x7c] sm:$0xf] }
   0xd   :  { %v350_v18 = vld [vmem:[#allocation0 + $0x28] ss:$2 sm:%s349_s4]   ;;  %158 = vst [vmem:[#allocation0 + $0x108] sm:$0xf] %v969_v15  ;;  %163 = vst [vmem:[#allocation0 + $0x100] sm:$0xf] %v970_v16 }
   0xe   :  { %v356_v19 = vld [vmem:[#allocation0 + $0x30] ss:$2 sm:%s355_s5]   ;;  %168 = vst [vmem:[#allocation0 + $0xf8] sm:$0xf] %v971_v17  ;;  %s1154_s21 = smov 3  ;;  %s1156_s25 = smov 3 }
   0xf   :  { %v332_v20 = vld [vmem:[#allocation0 + $0x10] ss:$2 sm:%s1120_s24]   ;;  %v344_v22 = vld [vmem:[#allocation0 + $0x20] ss:$2 sm:%s343_s28]   ;;  %s517_s4 = smov 3  ;;  %s523_s5 = smov 3 }
  0x10   :  { %v338_v21 = vld [vmem:[#allocation0 + $0x18] ss:$2 sm:%s337_s27]   ;;  %1006 = vst.msk [vmem:[%s1703_s1 + $0x5] ss:$8 sm:$0x3] %vm322_vm0, %v350_v18   ;;  %s535_s11 = smov 3 }
  0x11   :  { %1007 = vst.msk [vmem:[%s1703_s1 + $0x6] ss:$8 sm:$0x3] %vm322_vm0, %v356_v19   ;;  %v321_v23 = vld [vmem:[#allocation0] ss:$2 sm:%s1116_s22]   ;;  %s1081_s14 = smov 64  }
  0x12   :  { %v326_v24 = vld [vmem:[#allocation0 + $0x8] ss:$2 sm:%s1118_s23]   ;;  %1003 = vst.msk [vmem:[%s1703_s1 + $0x2] ss:$8 sm:$0x3] %vm322_vm0, %v332_v20   ;;  %s541_s17 = smov 3 }
  0x13   :  { %1004 = vst.msk [vmem:[%s1703_s1 + $0x3] ss:$8 sm:$0x3] %vm322_vm0, %v338_v21   ;;  %1005 = vst.msk [vmem:[%s1703_s1 + $0x4] ss:$8 sm:$0x3] %vm322_vm0, %v344_v22  }
  0x14   :  { %323 = vst.msk [vmem:[%s1703_s1] ss:$8 sm:$0x3] %vm322_vm0, %v321_v23   ;;  %1002 = vst.msk [vmem:[%s1703_s1 + $0x1] ss:$8 sm:$0x3] %vm322_vm0, %v326_v24  }
  0x15   :  { %v703_v25 = vld [vmem:[#allocation0 + $0x1] ss:$8 sm:$0xf]   ;;  %v362_v28 = vld [vmem:[#allocation0 + $0x38] ss:$2 sm:%s1137_s10]   ;;  %s529_s10 = smov 3 }
  0x16   :  { %v705_v26 = vld [vmem:[#allocation0 + $0x1] ss:$8 sm:$0xf0]   ;;  %1008 = vst.msk [vmem:[%s1703_s1 + $0x7] ss:$8 sm:$0x3] %vm322_vm0, %v362_v28  }
  0x17   :  { %v707_v27 = vsel %vm706_vm1, %v705_v26, %v703_v25  ;;  %v962_v29 = vld [vmem:[%s1702_s0 + $0xa0] sm:$0xf]  ;;  %s547_s18 = smov 3  ;;  %v979_v31 = vld [vmem:[%s1702_s0 + $0x5c] sm:$0xf]  ;;  %s553_s6 = smov 3 }
  0x18   :  { %708 = vrot.lane.b32.xlu0 %v707_v27, %s1081_s14  ;;  %v536_v30 = vld [vmem:[#allocation0 + $0x120] ss:$2 sm:%s535_s11]   ;;  %123 = vst [vmem:[#allocation0 + $0x140] sm:$0xf] %v962_v29  ;;  %v524_v32 = vld [vmem:[#allocation0 + $0x110] ss:$2 sm:%s523_s5]  }
  0x19   :  { %v530_v33 = vld [vmem:[#allocation0 + $0x118] ss:$2 sm:%s529_s10]   ;;  %1037 = vst.msk [vmem:[%s1703_s1 + $0x44] ss:$8 sm:$0x3] %vm322_vm0, %v536_v30   ;;  %s1239_s11 = smov 3 }
  0x1a   :  { %v542_v34 = vld [vmem:[#allocation0 + $0x128] ss:$2 sm:%s541_s17]   ;;  %208 = vst [vmem:[#allocation0 + $0xb8] sm:$0xf] %v979_v31  ;;  %v506_v35 = vld [vmem:[#allocation0 + $0xf8] ss:$2 sm:%s1154_s21]  }
  0x1b   :  { %v512_v36 = vld [vmem:[#allocation0 + $0x100] ss:$2 sm:%s1156_s25]   ;;  %1035 = vst.msk [vmem:[%s1703_s1 + $0x42] ss:$8 sm:$0x3] %vm322_vm0, %v524_v32   ;;  %s1261_s27 = smov 3 }
  0x1c   :  { %v518_v37 = vld [vmem:[#allocation0 + $0x108] ss:$2 sm:%s517_s4]   ;;  %1036 = vst.msk [vmem:[%s1703_s1 + $0x43] ss:$8 sm:$0x3] %vm322_vm0, %v530_v33   ;;  %s1263_s28 = smov 3 }
  0x1d   :  { %1038 = vst.msk [vmem:[%s1703_s1 + $0x45] ss:$8 sm:$0x3] %vm322_vm0, %v542_v34   ;;  %1032 = vst.msk [vmem:[%s1703_s1 + $0x37] ss:$8 sm:$0x3] %vm322_vm0, %v506_v35  }
  0x1e   :  { %1033 = vst.msk [vmem:[%s1703_s1 + $0x40] ss:$8 sm:$0x3] %vm322_vm0, %v512_v36   ;;  %1034 = vst.msk [vmem:[%s1703_s1 + $0x41] ss:$8 sm:$0x3] %vm322_vm0, %v518_v37  }
  0x1f   :  { %v724_v38 = vld [vmem:[#allocation0 + $0x101] ss:$8 sm:$0xf]   ;;  %v548_v39 = vld [vmem:[#allocation0 + $0x130] ss:$2 sm:%s547_s18]   ;;  %s433_s2 = smov 3 }
  0x20   :  { %v726_v40 = vld [vmem:[#allocation0 + $0x101] ss:$8 sm:$0xf0]   ;;  %1039 = vst.msk [vmem:[%s1703_s1 + $0x46] ss:$8 sm:$0x3] %vm322_vm0, %v548_v39  }
  0x21   :  { %v980_v41 = vld [vmem:[%s1702_s0 + $0x58] sm:$0xf]  ;;  %v728_v42 = vsel %vm706_vm1, %v726_v40, %v724_v38  ;;  %v981_v43 = vld [vmem:[%s1702_s0 + $0x54] sm:$0xf]  ;;  %v982_v44 = vld [vmem:[%s1702_s0 + $0x50] sm:$0xf] }
  0x22   :  { %213 = vst [vmem:[#allocation0 + $0xb0] sm:$0xf] %v980_v41  ;;  %v983_v45 = vld [vmem:[%s1702_s0 + $0x4c] sm:$0xf]  ;;  %729 = vrot.lane.b32.xlu1 %v728_v42, %s1081_s14  ;;  %218 = vst [vmem:[#allocation0 + $0xa8] sm:$0xf] %v981_v43 }
  0x23   :  { %223 = vst [vmem:[#allocation0 + $0xa0] sm:$0xf] %v982_v44  ;;  %228 = vst [vmem:[#allocation0 + $0x98] sm:$0xf] %v983_v45  ;;  %v984_v46 = vld [vmem:[%s1702_s0 + $0x48] sm:$0xf] }
  0x24   :  { %v985_v47 = vld [vmem:[%s1702_s0 + $0x44] sm:$0xf]  ;;  %v986_v48 = vld [vmem:[%s1702_s0 + $0x40] sm:$0xf]  ;;  %233 = vst [vmem:[#allocation0 + $0x90] sm:$0xf] %v984_v46 }
  0x25   :  { %v554_v49 = vld [vmem:[#allocation0 + $0x138] ss:$2 sm:%s553_s6]   ;;  %238 = vst [vmem:[#allocation0 + $0x88] sm:$0xf] %v985_v47  ;;  %243 = vst [vmem:[#allocation0 + $0x80] sm:$0xf] %v986_v48 }
  0x26   :  { %v978_v50 = vld [vmem:[%s1702_s0 + $0x60] sm:$0xf]  ;;  %1040 = vst.msk [vmem:[%s1703_s1 + $0x47] ss:$8 sm:$0x3] %vm322_vm0, %v554_v49   ;;  %s439_s3 = smov 3 }
  0x27   :  { %203 = vst [vmem:[#allocation0 + $0xc0] sm:$0xf] %v978_v50  ;;  %v947_v51 = vld [vmem:[%s1702_s0 + $0xdc] sm:$0xf]  ;;  %v948_v52 = vld [vmem:[%s1702_s0 + $0xd8] sm:$0xf] }
  0x28   :  { %s445_s8 = smov 3  ;;  %s451_s9 = smov 3  ;;  %48 = vst [vmem:[#allocation0 + $0x1b8] sm:$0xf] %v947_v51  ;;  %53 = vst [vmem:[#allocation0 + $0x1b0] sm:$0xf] %v948_v52 }
  0x29   :  { %v949_v53 = vld [vmem:[%s1702_s0 + $0xd4] sm:$0xf]  ;;  %v950_v54 = vld [vmem:[%s1702_s0 + $0xd0] sm:$0xf]  ;;  %s1284_s16 = smov 3  ;;  %s1292_s24 = smov 3 }
  0x2a   :  { %58 = vst [vmem:[#allocation0 + $0x1a8] sm:$0xf] %v949_v53  ;;  %63 = vst [vmem:[#allocation0 + $0x1a0] sm:$0xf] %v950_v54  ;;  %v951_v55 = vld [vmem:[%s1702_s0 + $0xcc] sm:$0xf] }
  0x2b   :  { %v952_v56 = vld [vmem:[%s1702_s0 + $0xc8] sm:$0xf]  ;;  %68 = vst [vmem:[#allocation0 + $0x198] sm:$0xf] %v951_v55  ;;  %v953_v57 = vld [vmem:[%s1702_s0 + $0xc4] sm:$0xf] }
  0x2c   :  { %73 = vst [vmem:[#allocation0 + $0x190] sm:$0xf] %v952_v56  ;;  %v954_v58 = vld [vmem:[%s1702_s0 + $0xc0] sm:$0xf]  ;;  %v955_v59 = vld [vmem:[%s1702_s0 + $0xbc] sm:$0xf] }
  0x2d   :  { %v452_v60 = vld [vmem:[#allocation0 + $0xb0] ss:$2 sm:%s451_s9]   ;;  %78 = vst [vmem:[#allocation0 + $0x188] sm:$0xf] %v953_v57  ;;  %83 = vst [vmem:[#allocation0 + $0x180] sm:$0xf] %v954_v58 }
  0x2e   :  { %88 = vst [vmem:[#allocation0 + $0x178] sm:$0xf] %v955_v59  ;;  %s1303_s30 = smov 3  ;;  %s1305_s4 = smov 3  ;;  %v946_v61 = vld [vmem:[%s1702_s0 + $0xe0] sm:$0xf] }
  0x2f   :  { %v434_v62 = vld [vmem:[#allocation0 + $0x98] ss:$2 sm:%s433_s2]   ;;  %v446_v0 = vld [vmem:[#allocation0 + $0xa8] ss:$2 sm:%s445_s8]   ;;  %43 = vst [vmem:[#allocation0 + $0x1c0] sm:$0xf] %v946_v61 }
  0x30   :  { %v440_v63 = vld [vmem:[#allocation0 + $0xa0] ss:$2 sm:%s439_s3]   ;;  %1023 = vst.msk [vmem:[%s1703_s1 + $0x26] ss:$8 sm:$0x3] %vm322_vm0, %v452_v60   ;;  %s625_s19 = smov 3 }
  0x31   :  { %v416_v1 = vld [vmem:[#allocation0 + $0x80] ss:$2 sm:%s1239_s11]   ;;  %v428_v3 = vld [vmem:[#allocation0 + $0x90] ss:$2 sm:%s1263_s28]   ;;  %s631_s22 = smov 3  ;;  %s637_s23 = smov 3 }
  0x32   :  { %v422_v2 = vld [vmem:[#allocation0 + $0x88] ss:$2 sm:%s1261_s27]   ;;  %1020 = vst.msk [vmem:[%s1703_s1 + $0x23] ss:$8 sm:$0x3] %vm322_vm0, %v434_v62   ;;  %s643_s8 = smov 3 }
  0x33   :  { %1021 = vst.msk [vmem:[%s1703_s1 + $0x24] ss:$8 sm:$0x3] %vm322_vm0, %v440_v63   ;;  %1022 = vst.msk [vmem:[%s1703_s1 + $0x25] ss:$8 sm:$0x3] %vm322_vm0, %v446_v0  }
  0x34   :  { %1017 = vst.msk [vmem:[%s1703_s1 + $0x20] ss:$8 sm:$0x3] %vm322_vm0, %v416_v1   ;;  %1018 = vst.msk [vmem:[%s1703_s1 + $0x21] ss:$8 sm:$0x3] %vm322_vm0, %v422_v2  }
  0x35   :  { %1019 = vst.msk [vmem:[%s1703_s1 + $0x22] ss:$8 sm:$0x3] %vm322_vm0, %v428_v3   ;;  %v713_v4 = vld [vmem:[#allocation0 + $0x81] ss:$8 sm:$0xf]  }
  0x36   :  { %v715_v5 = vld [vmem:[#allocation0 + $0x81] ss:$8 sm:$0xf0]   ;;  %v458_v7 = vld [vmem:[#allocation0 + $0xb8] ss:$2 sm:%s1284_s16]   ;;  %s619_s16 = smov 3 }
  0x37   :  { %v717_v6 = vsel %vm706_vm1, %v715_v5, %v713_v4  ;;  %v987_v8 = vld [vmem:[%s1702_s0 + $0x3c] sm:$0xf]  ;;  %1024 = vst.msk [vmem:[%s1703_s1 + $0x27] ss:$8 sm:$0x3] %vm322_vm0, %v458_v7   ;;  %s649_s9 = smov 3 }
  0x38   :  { %718 = vrot.lane.b32.xlu0 %v717_v6, %s1081_s14  ;;  %v737_v9 = vld [vmem:[#allocation0 + $0x181] ss:$8 sm:$0xf0]   ;;  %248 = vst [vmem:[#allocation0 + $0x78] sm:$0xf] %v987_v8  ;;  %s1385_s17 = smov 3 }
  0x39   :  { %v620_v10 = vld [vmem:[#allocation0 + $0x190] ss:$2 sm:%s619_s16]   ;;  %v632_v12 = vld [vmem:[#allocation0 + $0x1a0] ss:$2 sm:%s631_s22]   ;;  %s1406_s22 = smov 3  ;;  %s1422_s3 = smov 3 }
  0x3a   :  { %v626_v11 = vld [vmem:[#allocation0 + $0x198] ss:$2 sm:%s625_s19]   ;;  %v614_v15 = vld [vmem:[#allocation0 + $0x188] ss:$2 sm:%s1305_s4]   ;;  %s1392_s19 = smov 3  ;;  %s1424_s11 = smov 3 }
  0x3b   :  { %v602_v13 = vld [vmem:[#allocation0 + $0x178] ss:$2 sm:%s1292_s24]   ;;  %1051 = vst.msk [vmem:[%s1703_s1 + $0x62] ss:$8 sm:$0x3] %vm322_vm0, %v620_v10   ;;  %s1430_s7 = smov 3 }
  0x3c   :  { %v608_v14 = vld [vmem:[#allocation0 + $0x180] ss:$2 sm:%s1303_s30]   ;;  %1052 = vst.msk [vmem:[%s1703_s1 + $0x63] ss:$8 sm:$0x3] %vm322_vm0, %v626_v11   ;;  %s409_s15 = smov 3 }
  0x3d   :  { %1053 = vst.msk [vmem:[%s1703_s1 + $0x64] ss:$8 sm:$0x3] %vm322_vm0, %v632_v12   ;;  %1048 = vst.msk [vmem:[%s1703_s1 + $0x57] ss:$8 sm:$0x3] %vm322_vm0, %v602_v13  }
  0x3e   :  { %1049 = vst.msk [vmem:[%s1703_s1 + $0x60] ss:$8 sm:$0x3] %vm322_vm0, %v608_v14   ;;  %1050 = vst.msk [vmem:[%s1703_s1 + $0x61] ss:$8 sm:$0x3] %vm322_vm0, %v614_v15  }
  0x3f   :  { %v638_v16 = vld [vmem:[#allocation0 + $0x1a8] ss:$2 sm:%s637_s23]   ;;  %v988_v17 = vld [vmem:[%s1702_s0 + $0x38] sm:$0xf]  ;;  %v993_v38 = vld [vmem:[%s1702_s0 + $0x24] sm:$0xf] }
  0x40   :  { %1054 = vst.msk [vmem:[%s1703_s1 + $0x65] ss:$8 sm:$0x3] %vm322_vm0, %v638_v16   ;;  %v735_v18 = vld [vmem:[#allocation0 + $0x181] ss:$8 sm:$0xf]  }
  0x41   :  { %v644_v19 = vld [vmem:[#allocation0 + $0x1b0] ss:$2 sm:%s643_s8]   ;;  %253 = vst [vmem:[#allocation0 + $0x70] sm:$0xf] %v988_v17  ;;  %v739_v20 = vsel %vm706_vm1, %v737_v9, %v735_v18  ;;  %v991_v35 = vld [vmem:[%s1702_s0 + $0x2c] sm:$0xf] }
  0x42   :  { %1055 = vst.msk [vmem:[%s1703_s1 + $0x66] ss:$8 sm:$0x3] %vm322_vm0, %v644_v19   ;;  %v650_v21 = vld [vmem:[#allocation0 + $0x1b8] ss:$2 sm:%s649_s9]   ;;  %740 = vrot.lane.b32.xlu1 %v739_v20, %s1081_s14  ;;  %s403_s8 = smov 3 }
  0x43   :  { %v746_v22 = vld [vmem:[#allocation0 + $0x3] ss:$8 sm:$0xf]   ;;  %1056 = vst.msk [vmem:[%s1703_s1 + $0x67] ss:$8 sm:$0x3] %vm322_vm0, %v650_v21  }
  0x44   :  { %v748_v23 = vld [vmem:[#allocation0 + $0x3] ss:$8 sm:$0xf0]   ;;  %v989_v33 = vld [vmem:[%s1702_s0 + $0x34] sm:$0xf]  ;;  %s1441_s20 = smov 3 }
  0x45   :  { %v757_v24 = vld [vmem:[#allocation0 + $0x83] ss:$8 sm:$0xf]   ;;  %v750_v25 = vsel %vm706_vm1, %v748_v23, %v746_v22  ;;  %258 = vst [vmem:[#allocation0 + $0x68] sm:$0xf] %v989_v33  ;;  %s1458_s5 = smov 3 }
  0x46   :  { %v759_v26 = vld [vmem:[#allocation0 + $0x83] ss:$8 sm:$0xf0]   ;;  %751 = vrot.lane.b32.xlu0 %v750_v25, %s1081_s14  ;;  %268 = vst [vmem:[#allocation0 + $0x58] sm:$0xf] %v991_v35  ;;  %s1460_s6 = smov 3 }
  0x47   :  { %v768_v27 = vld [vmem:[#allocation0 + $0x103] ss:$8 sm:$0xf]   ;;  %v761_v28 = vsel %vm706_vm1, %v759_v26, %v757_v24  ;;  %278 = vst [vmem:[#allocation0 + $0x48] sm:$0xf] %v993_v38  ;;  %s481_s9 = smov 3 }
  0x48   :  { %v770_v29 = vld [vmem:[#allocation0 + $0x103] ss:$8 sm:$0xf0]   ;;  %762 = vrot.lane.b32.xlu1 %v761_v28, %s1081_s14  ;;  %v973_v40 = vld [vmem:[%s1702_s0 + $0x74] sm:$0xf]  ;;  %s487_s10 = smov 3 }
  0x49   :  { %v779_v30 = vld [vmem:[#allocation0 + $0x183] ss:$8 sm:$0xf]   ;;  %v772_v31 = vsel %vm706_vm1, %v770_v29, %v768_v27  ;;  %v404_v42 = vld [vmem:[#allocation0 + $0x70] ss:$2 sm:%s403_s8]   ;;  %s499_s16 = smov 3 }
  0x4a   :  { %v781_v32 = vld [vmem:[#allocation0 + $0x183] ss:$8 sm:$0xf0]   ;;  %773 = vrot.lane.b32.xlu0 %v772_v31, %s1081_s14  ;;  %178 = vst [vmem:[#allocation0 + $0xe8] sm:$0xf] %v973_v40  ;;  %s565_s18 = smov 3 }
  0x4b   :  { %v990_v34 = vld [vmem:[%s1702_s0 + $0x30] sm:$0xf]  ;;  %v992_v36 = vld [vmem:[%s1702_s0 + $0x28] sm:$0xf]  ;;  %v783_v37 = vsel %vm706_vm1, %v781_v32, %v779_v30  ;;  %v972_v39 = vld [vmem:[%s1702_s0 + $0x78] sm:$0xf] }
  0x4c   :  { %263 = vst [vmem:[#allocation0 + $0x60] sm:$0xf] %v990_v34  ;;  %273 = vst [vmem:[#allocation0 + $0x50] sm:$0xf] %v992_v36  ;;  %v974_v41 = vld [vmem:[%s1702_s0 + $0x70] sm:$0xf]  ;;  %784 = vrot.lane.b32.xlu1 %v783_v37, %s1081_s14 }
  0x4d   :  { %173 = vst [vmem:[#allocation0 + $0xf0] sm:$0xf] %v972_v39  ;;  %183 = vst [vmem:[#allocation0 + $0xe0] sm:$0xf] %v974_v41  ;;  %v975_v43 = vld [vmem:[%s1702_s0 + $0x6c] sm:$0xf] }
  0x4e   :  { %1015 = vst.msk [vmem:[%s1703_s1 + $0x16] ss:$8 sm:$0x3] %vm322_vm0, %v404_v42   ;;  %v410_v44 = vld [vmem:[#allocation0 + $0x78] ss:$2 sm:%s409_s15]   ;;  %s655_s26 = smov 3 }
  0x4f   :  { %188 = vst [vmem:[#allocation0 + $0xd8] sm:$0xf] %v975_v43  ;;  %v976_v45 = vld [vmem:[%s1702_s0 + $0x68] sm:$0xf]  ;;  %v977_v46 = vld [vmem:[%s1702_s0 + $0x64] sm:$0xf] }
  0x50   :  { %1016 = vst.msk [vmem:[%s1703_s1 + $0x17] ss:$8 sm:$0x3] %vm322_vm0, %v410_v44   ;;  %193 = vst [vmem:[#allocation0 + $0xd0] sm:$0xf] %v976_v45  ;;  %s661_s24 = smov 3 }
  0x51   :  { %198 = vst [vmem:[#allocation0 + $0xc8] sm:$0xf] %v977_v46  ;;  %v956_v47 = vld [vmem:[%s1702_s0 + $0xb8] sm:$0xf]  ;;  %v957_v48 = vld [vmem:[%s1702_s0 + $0xb4] sm:$0xf] }
  0x52   :  { %93 = vst [vmem:[#allocation0 + $0x170] sm:$0xf] %v956_v47  ;;  %98 = vst [vmem:[#allocation0 + $0x168] sm:$0xf] %v957_v48  ;;  %v958_v49 = vld [vmem:[%s1702_s0 + $0xb0] sm:$0xf] }
  0x53   :  { %v959_v50 = vld [vmem:[%s1702_s0 + $0xac] sm:$0xf]  ;;  %103 = vst [vmem:[#allocation0 + $0x160] sm:$0xf] %v958_v49  ;;  %v960_v52 = vld [vmem:[%s1702_s0 + $0xa8] sm:$0xf] }
  0x54   :  { %v398_v51 = vld [vmem:[#allocation0 + $0x68] ss:$2 sm:%s1430_s7]   ;;  %s493_s7 = smov 3  ;;  %108 = vst [vmem:[#allocation0 + $0x158] sm:$0xf] %v959_v50  ;;  %s667_s29 = smov 3 }
  0x55   :  { %v380_v53 = vld [vmem:[#allocation0 + $0x50] ss:$2 sm:%s1406_s22]   ;;  %v392_v55 = vld [vmem:[#allocation0 + $0x60] ss:$2 sm:%s1424_s11]   ;;  %113 = vst [vmem:[#allocation0 + $0x150] sm:$0xf] %v960_v52 }
  0x56   :  { %v386_v54 = vld [vmem:[#allocation0 + $0x58] ss:$2 sm:%s1422_s3]   ;;  %1014 = vst.msk [vmem:[%s1703_s1 + $0x15] ss:$8 sm:$0x3] %vm322_vm0, %v398_v51   ;;  %s583_s22 = smov 3 }
  0x57   :  { %v368_v56 = vld [vmem:[#allocation0 + $0x40] ss:$2 sm:%s1385_s17]   ;;  %1011 = vst.msk [vmem:[%s1703_s1 + $0x12] ss:$8 sm:$0x3] %vm322_vm0, %v380_v53   ;;  %s589_s3 = smov 3 }
  0x58   :  { %v374_v57 = vld [vmem:[#allocation0 + $0x48] ss:$2 sm:%s1392_s19]   ;;  %1012 = vst.msk [vmem:[%s1703_s1 + $0x13] ss:$8 sm:$0x3] %vm322_vm0, %v386_v54   ;;  %s595_s11 = smov 3 }
  0x59   :  { %1013 = vst.msk [vmem:[%s1703_s1 + $0x14] ss:$8 sm:$0x3] %vm322_vm0, %v392_v55   ;;  %v500_v58 = vld [vmem:[#allocation0 + $0xf0] ss:$2 sm:%s499_s16]   ;;  %s577_s16 = smov 3 }
  0x5a   :  { %1009 = vst.msk [vmem:[%s1703_s1 + $0x10] ss:$8 sm:$0x3] %vm322_vm0, %v368_v56   ;;  %1010 = vst.msk [vmem:[%s1703_s1 + $0x11] ss:$8 sm:$0x3] %vm322_vm0, %v374_v57  }
  0x5b   :  { %v790_v59 = vld [vmem:[#allocation0 + $0x41] ss:$8 sm:$0xf]   ;;  %1031 = vst.msk [vmem:[%s1703_s1 + $0x36] ss:$8 sm:$0x3] %vm322_vm0, %v500_v58  }
  0x5c   :  { %v792_v60 = vld [vmem:[#allocation0 + $0x41] ss:$8 sm:$0xf0]   ;;  %v482_v62 = vld [vmem:[#allocation0 + $0xd8] ss:$2 sm:%s481_s9]   ;;  %s673_s30 = smov 3 }
  0x5d   :  { %v794_v61 = vsel %vm706_vm1, %v792_v60, %v790_v59  ;;  %v488_v63 = vld [vmem:[#allocation0 + $0xe0] ss:$2 sm:%s487_s10]   ;;  %v476_v3 = vld [vmem:[#allocation0 + $0xd0] ss:$2 sm:%s1460_s6]   ;;  %s679_s4 = smov 3  ;;  %s685_s2 = smov 3 }
  0x5e   :  { %v494_v0 = vld [vmem:[#allocation0 + $0xe8] ss:$2 sm:%s493_s7]   ;;  %795 = vrot.lane.b32.xlu0 %v794_v61, %s1081_s14  ;;  %1028 = vst.msk [vmem:[%s1703_s1 + $0x33] ss:$8 sm:$0x3] %vm322_vm0, %v482_v62   ;;  %s571_s7 = smov 3 }
  0x5f   :  { %v464_v1 = vld [vmem:[#allocation0 + $0xc0] ss:$2 sm:%s1441_s20]   ;;  %1029 = vst.msk [vmem:[%s1703_s1 + $0x34] ss:$8 sm:$0x3] %vm322_vm0, %v488_v63   ;;  %s691_s12 = smov 3 }
  0x60   :  { %v470_v2 = vld [vmem:[#allocation0 + $0xc8] ss:$2 sm:%s1458_s5]   ;;  %1030 = vst.msk [vmem:[%s1703_s1 + $0x35] ss:$8 sm:$0x3] %vm322_vm0, %v494_v0   ;;  %s697_s13 = smov 3 }
  0x61   :  { %1025 = vst.msk [vmem:[%s1703_s1 + $0x30] ss:$8 sm:$0x3] %vm322_vm0, %v464_v1   ;;  %1026 = vst.msk [vmem:[%s1703_s1 + $0x31] ss:$8 sm:$0x3] %vm322_vm0, %v470_v2  }
  0x62   :  { %1027 = vst.msk [vmem:[%s1703_s1 + $0x32] ss:$8 sm:$0x3] %vm322_vm0, %v476_v3   ;;  %v801_v4 = vld [vmem:[#allocation0 + $0xc1] ss:$8 sm:$0xf]  }
  0x63   :  { %v803_v5 = vld [vmem:[#allocation0 + $0xc1] ss:$8 sm:$0xf0]   ;;  %v961_v7 = vld [vmem:[%s1702_s0 + $0xa4] sm:$0xf] }
  0x64   :  { %v805_v6 = vsel %vm706_vm1, %v803_v5, %v801_v4  ;;  %v939_v8 = vld [vmem:[%s1702_s0 + $0xfc] sm:$0xf]  ;;  %118 = vst [vmem:[#allocation0 + $0x148] sm:$0xf] %v961_v7  ;;  %v584_v9 = vld [vmem:[#allocation0 + $0x160] ss:$2 sm:%s583_s22]  }
  0x65   :  { %806 = vrot.lane.b32.xlu1 %v805_v6, %s1081_s14  ;;  %v590_v10 = vld [vmem:[#allocation0 + $0x168] ss:$2 sm:%s589_s3]   ;;  %8 = vst [vmem:[#allocation0 + $0x1f8] sm:$0xf] %v939_v8  ;;  %v940_v12 = vld [vmem:[%s1702_s0 + $0xf8] sm:$0xf] }
  0x66   :  { %1045 = vst.msk [vmem:[%s1703_s1 + $0x54] ss:$8 sm:$0x3] %vm322_vm0, %v584_v9   ;;  %1046 = vst.msk [vmem:[%s1703_s1 + $0x55] ss:$8 sm:$0x3] %vm322_vm0, %v590_v10  }
  0x67   :  { %v596_v11 = vld [vmem:[#allocation0 + $0x170] ss:$2 sm:%s595_s11]   ;;  %13 = vst [vmem:[#allocation0 + $0x1f0] sm:$0xf] %v940_v12  ;;  %v943_v15 = vld [vmem:[%s1702_s0 + $0xec] sm:$0xf] }
  0x68   :  { %1047 = vst.msk [vmem:[%s1703_s1 + $0x56] ss:$8 sm:$0x3] %vm322_vm0, %v596_v11   ;;  %v941_v13 = vld [vmem:[%s1702_s0 + $0xf4] sm:$0xf] }
  0x69   :  { %v942_v14 = vld [vmem:[%s1702_s0 + $0xf0] sm:$0xf]  ;;  %18 = vst [vmem:[#allocation0 + $0x1e8] sm:$0xf] %v941_v13  ;;  %v944_v16 = vld [vmem:[%s1702_s0 + $0xe8] sm:$0xf] }
  0x6a   :  { %23 = vst [vmem:[#allocation0 + $0x1e0] sm:$0xf] %v942_v14  ;;  %v945_v17 = vld [vmem:[%s1702_s0 + $0xe4] sm:$0xf]  ;;  %28 = vst [vmem:[#allocation0 + $0x1d8] sm:$0xf] %v943_v15 }
  0x6b   :  { %v814_v18 = vld [vmem:[#allocation0 + $0x141] ss:$8 sm:$0xf0]   ;;  %33 = vst [vmem:[#allocation0 + $0x1d0] sm:$0xf] %v944_v16  ;;  %s559_s0 = smov 3 }
  0x6c   :  { %38 = vst [vmem:[#allocation0 + $0x1c8] sm:$0xf] %v945_v17  ;;  %v834_v19 = vld [vmem:[#allocation0 + $0x43] ss:$8 sm:$0xf]  }
  0x6d   :  { %v836_v20 = vld [vmem:[#allocation0 + $0x43] ss:$8 sm:$0xf0]   ;;  %v812_v21 = vld [vmem:[#allocation0 + $0x141] ss:$8 sm:$0xf]  }
  0x6e   :  { %v560_v22 = vld [vmem:[#allocation0 + $0x140] ss:$2 sm:%s559_s0]   ;;  %v816_v23 = vsel %vm706_vm1, %v814_v18, %v812_v21  ;;  %v572_v25 = vld [vmem:[#allocation0 + $0x150] ss:$2 sm:%s571_s7]   ;;  %v838_v32 = vsel %vm706_vm1, %v836_v20, %v834_v19 }
  0x6f   :  { %1041 = vst.msk [vmem:[%s1703_s1 + $0x50] ss:$8 sm:$0x3] %vm322_vm0, %v560_v22   ;;  %v566_v24 = vld [vmem:[#allocation0 + $0x148] ss:$2 sm:%s565_s18]   ;;  %817 = vrot.lane.b32.xlu0 %v816_v23, %s1081_s14 }
  0x70   :  { %v578_v26 = vld [vmem:[#allocation0 + $0x158] ss:$2 sm:%s577_s16]   ;;  %v845_v27 = vld [vmem:[#allocation0 + $0xc3] ss:$8 sm:$0xf]  }
  0x71   :  { %v847_v28 = vld [vmem:[#allocation0 + $0xc3] ss:$8 sm:$0xf0]   ;;  %1042 = vst.msk [vmem:[%s1703_s1 + $0x51] ss:$8 sm:$0x3] %vm322_vm0, %v566_v24  }
  0x72   :  { %1043 = vst.msk [vmem:[%s1703_s1 + $0x52] ss:$8 sm:$0x3] %vm322_vm0, %v572_v25   ;;  %1044 = vst.msk [vmem:[%s1703_s1 + $0x53] ss:$8 sm:$0x3] %vm322_vm0, %v578_v26   ;;  %v849_v41 = vsel %vm706_vm1, %v847_v28, %v845_v27 }
  0x73   :  { %v856_v29 = vld [vmem:[#allocation0 + $0x143] ss:$8 sm:$0xf]   ;;  %v825_v31 = vld [vmem:[#allocation0 + $0x1c1] ss:$8 sm:$0xf0]   ;;  %839 = vrot.lane.b32.xlu0 %v838_v32, %s1081_s14 }
  0x74   :  { %v858_v30 = vld [vmem:[#allocation0 + $0x143] ss:$8 sm:$0xf0]   ;;  %v823_v33 = vld [vmem:[#allocation0 + $0x1c1] ss:$8 sm:$0xf]  }
  0x75   :  { %v656_v34 = vld [vmem:[#allocation0 + $0x1c0] ss:$2 sm:%s655_s26]   ;;  %v827_v35 = vsel %vm706_vm1, %v825_v31, %v823_v33  ;;  %v668_v37 = vld [vmem:[#allocation0 + $0x1d0] ss:$2 sm:%s667_s29]   ;;  %v860_v42 = vsel %vm706_vm1, %v858_v30, %v856_v29 }
  0x76   :  { %1057 = vst.msk [vmem:[%s1703_s1 + $0x70] ss:$8 sm:$0x3] %vm322_vm0, %v656_v34   ;;  %v662_v36 = vld [vmem:[#allocation0 + $0x1c8] ss:$2 sm:%s661_s24]   ;;  %828 = vrot.lane.b32.xlu1 %v827_v35, %s1081_s14 }
  0x77   :  { %v674_v38 = vld [vmem:[#allocation0 + $0x1d8] ss:$2 sm:%s673_s30]   ;;  %1058 = vst.msk [vmem:[%s1703_s1 + $0x71] ss:$8 sm:$0x3] %vm322_vm0, %v662_v36   ;;  %861 = vrot.lane.b32.xlu0 %v860_v42, %s1081_s14 }
  0x78   :  { %1059 = vst.msk [vmem:[%s1703_s1 + $0x72] ss:$8 sm:$0x3] %vm322_vm0, %v668_v37   ;;  %1060 = vst.msk [vmem:[%s1703_s1 + $0x73] ss:$8 sm:$0x3] %vm322_vm0, %v674_v38  }
  0x79   :  { %v680_v39 = vld [vmem:[#allocation0 + $0x1e0] ss:$2 sm:%s679_s4]   ;;  %v867_v43 = vld [vmem:[#allocation0 + $0x1c3] ss:$8 sm:$0xf]  }
  0x7a   :  { %v686_v40 = vld [vmem:[#allocation0 + $0x1e8] ss:$2 sm:%s685_s2]   ;;  %1061 = vst.msk [vmem:[%s1703_s1 + $0x74] ss:$8 sm:$0x3] %vm322_vm0, %v680_v39   ;;  %850 = vrot.lane.b32.xlu1 %v849_v41, %s1081_s14 }
  0x7b   :  { %1062 = vst.msk [vmem:[%s1703_s1 + $0x75] ss:$8 sm:$0x3] %vm322_vm0, %v686_v40   ;;  %v869_v44 = vld [vmem:[#allocation0 + $0x1c3] ss:$8 sm:$0xf0]  }
  0x7c   :  { %v692_v45 = vld [vmem:[#allocation0 + $0x1f0] ss:$2 sm:%s691_s12]   ;;  %v871_v47 = vsel %vm706_vm1, %v869_v44, %v867_v43 }
  0x7d   :  { %v698_v46 = vld [vmem:[#allocation0 + $0x1f8] ss:$2 sm:%s697_s13]   ;;  %1063 = vst.msk [vmem:[%s1703_s1 + $0x76] ss:$8 sm:$0x3] %vm322_vm0, %v692_v45  }
  0x7e   :  { %1064 = vst.msk [vmem:[%s1703_s1 + $0x77] ss:$8 sm:$0x3] %vm322_vm0, %v698_v46   ;;  %872 = vrot.lane.b32.xlu1 %v871_v47, %s1081_s14 }
  0x8a   :  { %v709_v48 = vpop.permute.xlu0 %708  }
  0x8b   :  { %711 = vst.msk [vmem:[%s1703_s1] sm:$0xff] %vm710_vm2, %v709_v48  }
  0x94   :  { %v730_v49 = vpop.permute.xlu1 %729  }
  0x95   :  { %1066 = vst.msk [vmem:[%s1703_s1 + $0x40] sm:$0xff] %vm710_vm2, %v730_v49  }
  0xaa   :  { %v719_v50 = vpop.permute.xlu0 %718  }
  0xab   :  { %1065 = vst.msk [vmem:[%s1703_s1 + $0x20] sm:$0xff] %vm710_vm2, %v719_v50  }
  0xb4   :  { %v741_v51 = vpop.permute.xlu1 %740  }
  0xb5   :  { %1067 = vst.msk [vmem:[%s1703_s1 + $0x60] sm:$0xff] %vm710_vm2, %v741_v51  }
  0xb8   :  { %v752_v52 = vpop.permute.xlu0 %751  }
  0xb9   :  { %1068 = vst.msk [vmem:[%s1703_s1 + $0x8] sm:$0xff] %vm710_vm2, %v752_v52  }
  0xba   :  { %v763_v53 = vpop.permute.xlu1 %762  }
  0xbb   :  { %1069 = vst.msk [vmem:[%s1703_s1 + $0x28] sm:$0xff] %vm710_vm2, %v763_v53  }
  0xbc   :  { %v774_v54 = vpop.permute.xlu0 %773  }
  0xbd   :  { %1070 = vst.msk [vmem:[%s1703_s1 + $0x48] sm:$0xff] %vm710_vm2, %v774_v54  }
  0xbe   :  { %v785_v55 = vpop.permute.xlu1 %784  }
  0xbf   :  { %1071 = vst.msk [vmem:[%s1703_s1 + $0x68] sm:$0xff] %vm710_vm2, %v785_v55  }
  0xd0   :  { %v796_v56 = vpop.permute.xlu0 %795  }
  0xd1   :  { %1072 = vst.msk [vmem:[%s1703_s1 + $0x10] sm:$0xff] %vm710_vm2, %v796_v56  }
  0xd7   :  { %v807_v57 = vpop.permute.xlu1 %806  }
  0xd8   :  { %1073 = vst.msk [vmem:[%s1703_s1 + $0x30] sm:$0xff] %vm710_vm2, %v807_v57  }
  0xe1   :  { %v818_v58 = vpop.permute.xlu0 %817  }
  0xe2   :  { %1074 = vst.msk [vmem:[%s1703_s1 + $0x50] sm:$0xff] %vm710_vm2, %v818_v58  }
  0xe5   :  { %v840_v60 = vpop.permute.xlu0 %839  }
  0xe6   :  { %1076 = vst.msk [vmem:[%s1703_s1 + $0x18] sm:$0xff] %vm710_vm2, %v840_v60  }
  0xe8   :  { %v829_v59 = vpop.permute.xlu1 %828  }
  0xe9   :  { %1075 = vst.msk [vmem:[%s1703_s1 + $0x70] sm:$0xff] %vm710_vm2, %v829_v59   ;;  %v862_v62 = vpop.permute.xlu0 %861  }
  0xea   :  { %1078 = vst.msk [vmem:[%s1703_s1 + $0x58] sm:$0xff] %vm710_vm2, %v862_v62  }
  0xec   :  { %v851_v61 = vpop.permute.xlu1 %850  }
  0xed   :  { %1077 = vst.msk [vmem:[%s1703_s1 + $0x38] sm:$0xff] %vm710_vm2, %v851_v61  }
  0xf0   :  { %v873_v63 = vpop.permute.xlu1 %872  }
  0xf1   :  { %1079 = vst.msk [vmem:[%s1703_s1 + $0x78] sm:$0xff] %vm710_vm2, %v873_v63  }

// kernel: tile.32
= control target key start
LH: loop header
LB: loop body
LE: loop exit
PB: predicated region body
PF: predicated region fallthrough
CT: control target
= control target key end

     0   :  { %vm92_vm0 = vcmask 1047556   ;;  %s459_s14 = smov 96   ;;  %s460_s26 = smov 64   ;;  %vm3_vm1 = vcmask 261120   ;;  %vm96_vm2 = vcmask 1048320   ;;  %vm183_vm3 = vcmask 785920   ;;  %s904_s0 = inlined_call_operand.vmem [shape: f32[8,32,32], index: 0, kind: input, shape index: {}]   ;;  %s905_s1 = inlined_call_operand.vmem [shape: f32[256,32], index: 1, kind: output, shape index: {}]  }
   0x1   :  { %v392_v0 = vld [vmem:[%s904_s0 + $0x7] ss:$8 sm:$0xf]   ;;  %v387_v3 = vld [vmem:[%s904_s0 + $0x3] ss:$8 sm:$0xf]  }
   0x2   :  { %v393_v1 = vld [vmem:[%s904_s0 + $0x7] ss:$8 sm:$0xf0]   ;;  %v388_v4 = vld [vmem:[%s904_s0 + $0x3] ss:$8 sm:$0xf0]  }
   0x3   :  { %v114_v2 = vsel %vm92_vm0, %v393_v1, %v392_v0  ;;  %v93_v5 = vsel %vm92_vm0, %v388_v4, %v387_v3  ;;  %v395_v6 = vld [vmem:[%s904_s0 + $0x87] ss:$8 sm:$0xf]   ;;  %v389_v9 = vld [vmem:[%s904_s0 + $0x83] ss:$8 sm:$0xf]  }
   0x4   :  { %115 = vrot.lane.b32.xlu1 %v114_v2, %s459_s14  ;;  %v396_v7 = vld [vmem:[%s904_s0 + $0x87] ss:$8 sm:$0xf0]   ;;  %94 = vrot.lane.b32.xlu0 %v93_v5, %s459_s14  ;;  %v390_v10 = vld [vmem:[%s904_s0 + $0x83] ss:$8 sm:$0xf0]  }
   0x5   :  { %v125_v8 = vsel %vm92_vm0, %v396_v7, %v395_v6  ;;  %v103_v11 = vsel %vm92_vm0, %v390_v10, %v389_v9  ;;  %v401_v12 = vld [vmem:[%s904_s0 + $0xc3] ss:$8 sm:$0xf]   ;;  %v407_v18 = vld [vmem:[%s904_s0 + $0xc7] ss:$8 sm:$0xf]  }
   0x6   :  { %v402_v13 = vld [vmem:[%s904_s0 + $0xc3] ss:$8 sm:$0xf0]   ;;  %v408_v19 = vld [vmem:[%s904_s0 + $0xc7] ss:$8 sm:$0xf0]  }
   0x7   :  { %v398_v14 = vld [vmem:[%s904_s0 + $0x43] ss:$8 sm:$0xf]   ;;  %v147_v16 = vsel %vm92_vm0, %v402_v13, %v401_v12  ;;  %v404_v20 = vld [vmem:[%s904_s0 + $0x47] ss:$8 sm:$0xf]   ;;  %v169_v22 = vsel %vm92_vm0, %v408_v19, %v407_v18 }
   0x8   :  { %v399_v15 = vld [vmem:[%s904_s0 + $0x43] ss:$8 sm:$0xf0]   ;;  %126 = vrot.lane.b32.xlu1 %v125_v8, %s459_s14  ;;  %104 = vrot.lane.b32.xlu0 %v103_v11, %s459_s14  ;;  %v405_v21 = vld [vmem:[%s904_s0 + $0x47] ss:$8 sm:$0xf0]  }
   0x9   :  { %v136_v17 = vsel %vm92_vm0, %v399_v15, %v398_v14  ;;  %v158_v23 = vsel %vm92_vm0, %v405_v21, %v404_v20  ;;  %v412_v24 = vld [vmem:[%s904_s0 + $0x82] ss:$8 sm:$0xf]   ;;  %v418_v30 = vld [vmem:[%s904_s0 + $0x86] ss:$8 sm:$0xf]  }
   0xa   :  { %v413_v25 = vld [vmem:[%s904_s0 + $0x82] ss:$8 sm:$0xf0]   ;;  %v419_v31 = vld [vmem:[%s904_s0 + $0x86] ss:$8 sm:$0xf0]  }
   0xb   :  { %v410_v26 = vld [vmem:[%s904_s0 + $0x2] ss:$8 sm:$0xf]   ;;  %v190_v28 = vsel %vm92_vm0, %v413_v25, %v412_v24  ;;  %v415_v32 = vld [vmem:[%s904_s0 + $0x6] ss:$8 sm:$0xf]   ;;  %v212_v34 = vsel %vm92_vm0, %v419_v31, %v418_v30 }
   0xc   :  { %148 = vrot.lane.b32.xlu1 %v147_v16, %s459_s14  ;;  %137 = vrot.lane.b32.xlu0 %v136_v17, %s459_s14  ;;  %v411_v27 = vld [vmem:[%s904_s0 + $0x2] ss:$8 sm:$0xf0]   ;;  %v416_v33 = vld [vmem:[%s904_s0 + $0x6] ss:$8 sm:$0xf0]  }
   0xd   :  { %v180_v29 = vsel %vm92_vm0, %v411_v27, %v410_v26  ;;  %v201_v35 = vsel %vm92_vm0, %v416_v33, %v415_v32  ;;  %v424_v36 = vld [vmem:[%s904_s0 + $0xc2] ss:$8 sm:$0xf]   ;;  %v430_v40 = vld [vmem:[%s904_s0 + $0xc6] ss:$8 sm:$0xf]  }
   0xe   :  { %v425_v37 = vld [vmem:[%s904_s0 + $0xc2] ss:$8 sm:$0xf0]   ;;  %v431_v42 = vld [vmem:[%s904_s0 + $0xc6] ss:$8 sm:$0xf0]  }
   0xf   :  { %v421_v38 = vld [vmem:[%s904_s0 + $0x42] ss:$8 sm:$0xf]   ;;  %v234_v41 = vsel %vm92_vm0, %v425_v37, %v424_v36  ;;  %v427_v43 = vld [vmem:[%s904_s0 + $0x46] ss:$8 sm:$0xf]   ;;  %v256_v53 = vsel %vm92_vm0, %v431_v42, %v430_v40 }
  0x10   :  { %170 = vrot.lane.b32.xlu1 %v169_v22, %s459_s14  ;;  %159 = vrot.lane.b32.xlu0 %v158_v23, %s459_s14  ;;  %v422_v39 = vld [vmem:[%s904_s0 + $0x42] ss:$8 sm:$0xf0]   ;;  %v428_v45 = vld [vmem:[%s904_s0 + $0x46] ss:$8 sm:$0xf0]  }
  0x11   :  { %v223_v44 = vsel %vm92_vm0, %v422_v39, %v421_v38  ;;  %v367_v46 = vld [vmem:[%s904_s0 + $0x80] ss:$4 sm:$0xff]   ;;  %v245_v55 = vsel %vm92_vm0, %v428_v45, %v427_v43  ;;  %v435_v56 = vld [vmem:[%s904_s0 + $0x81] ss:$8 sm:$0xf]   ;;  %s461_s25 = smov 32  }
  0x12   :  { %368 = vst.msk [vmem:[%s905_s1 + $0x20] ss:$8 sm:$0x3] %vm3_vm1, %v367_v46   ;;  %369 = vst.msk [vmem:[%s905_s1 + $0x11] ss:$8 sm:$0xc] %vm3_vm1, %v367_v46  }
  0x13   :  { %370 = vst.msk [vmem:[%s905_s1 + $0x2] ss:$8 sm:$0x30] %vm3_vm1, %v367_v46   ;;  %371 = vst.msk [vmem:[%s905_s1 - $0xd] ss:$8 sm:$0xc0] %vm3_vm1, %v367_v46  }
  0x14   :  { %191 = vrot.lane.b32.xlu1 %v190_v28, %s460_s26  ;;  %181 = vrot.lane.b32.xlu0 %v180_v29, %s460_s26  ;;  %v372_v47 = vld [vmem:[%s904_s0 + $0xa0] ss:$4 sm:$0xff]   ;;  %v436_v57 = vld [vmem:[%s904_s0 + $0x81] ss:$8 sm:$0xf0]   ;;  %vm270_vm4 = vcmask 523520  }
  0x15   :  { %v2_v48 = vld [vmem:[%s904_s0] ss:$4 sm:$0xff]   ;;  %373 = vst.msk [vmem:[%s905_s1 + $0x24] ss:$8 sm:$0x3] %vm3_vm1, %v372_v47   ;;  %v277_v60 = vsel %vm92_vm0, %v436_v57, %v435_v56 }
  0x16   :  { %v352_v49 = vld [vmem:[%s904_s0 + $0x20] ss:$4 sm:$0xff]   ;;  %374 = vst.msk [vmem:[%s905_s1 + $0x15] ss:$8 sm:$0xc] %vm3_vm1, %v372_v47  }
  0x17   :  { %375 = vst.msk [vmem:[%s905_s1 + $0x6] ss:$8 sm:$0x30] %vm3_vm1, %v372_v47   ;;  %376 = vst.msk [vmem:[%s905_s1 - $0x9] ss:$8 sm:$0xc0] %vm3_vm1, %v372_v47  }
  0x18   :  { %213 = vrot.lane.b32.xlu1 %v212_v34, %s460_s26  ;;  %202 = vrot.lane.b32.xlu0 %v201_v35, %s460_s26  ;;  %4 = vst.msk [vmem:[%s905_s1] ss:$8 sm:$0x3] %vm3_vm1, %v2_v48   ;;  %349 = vst.msk [vmem:[%s905_s1 - $0xf] ss:$8 sm:$0xc] %vm3_vm1, %v2_v48  }
  0x19   :  { %350 = vst.msk [vmem:[%s905_s1 - $0x1e] ss:$8 sm:$0x30] %vm3_vm1, %v2_v48   ;;  %351 = vst.msk [vmem:[%s905_s1 - $0x2d] ss:$8 sm:$0xc0] %vm3_vm1, %v2_v48  }
  0x1a   :  { %353 = vst.msk [vmem:[%s905_s1 + $0x4] ss:$8 sm:$0x3] %vm3_vm1, %v352_v49   ;;  %354 = vst.msk [vmem:[%s905_s1 - $0xb] ss:$8 sm:$0xc] %vm3_vm1, %v352_v49  }
  0x1b   :  { %355 = vst.msk [vmem:[%s905_s1 - $0x1a] ss:$8 sm:$0x30] %vm3_vm1, %v352_v49   ;;  %356 = vst.msk [vmem:[%s905_s1 - $0x29] ss:$8 sm:$0xc0] %vm3_vm1, %v352_v49  }
  0x1c   :  { %235 = vrot.lane.b32.xlu1 %v234_v41, %s460_s26  ;;  %v377_v50 = vld [vmem:[%s904_s0 + $0xc0] ss:$4 sm:$0xff]   ;;  %224 = vrot.lane.b32.xlu0 %v223_v44, %s460_s26  ;;  %v433_v58 = vld [vmem:[%s904_s0 + $0x1] ss:$8 sm:$0xf]  }
  0x1d   :  { %v382_v51 = vld [vmem:[%s904_s0 + $0xe0] ss:$4 sm:$0xff]   ;;  %378 = vst.msk [vmem:[%s905_s1 + $0x30] ss:$8 sm:$0x3] %vm3_vm1, %v377_v50  }
  0x1e   :  { %v357_v52 = vld [vmem:[%s904_s0 + $0x40] ss:$4 sm:$0xff]   ;;  %379 = vst.msk [vmem:[%s905_s1 + $0x21] ss:$8 sm:$0xc] %vm3_vm1, %v377_v50  }
  0x1f   :  { %380 = vst.msk [vmem:[%s905_s1 + $0x12] ss:$8 sm:$0x30] %vm3_vm1, %v377_v50   ;;  %381 = vst.msk [vmem:[%s905_s1 + $0x3] ss:$8 sm:$0xc0] %vm3_vm1, %v377_v50  }
  0x20   :  { %383 = vst.msk [vmem:[%s905_s1 + $0x34] ss:$8 sm:$0x3] %vm3_vm1, %v382_v51   ;;  %384 = vst.msk [vmem:[%s905_s1 + $0x25] ss:$8 sm:$0xc] %vm3_vm1, %v382_v51   ;;  %257 = vrot.lane.b32.xlu1 %v256_v53, %s460_s26  ;;  %246 = vrot.lane.b32.xlu0 %v245_v55, %s460_s26 }
  0x21   :  { %385 = vst.msk [vmem:[%s905_s1 + $0x16] ss:$8 sm:$0x30] %vm3_vm1, %v382_v51   ;;  %386 = vst.msk [vmem:[%s905_s1 + $0x7] ss:$8 sm:$0xc0] %vm3_vm1, %v382_v51  }
  0x22   :  { %358 = vst.msk [vmem:[%s905_s1 + $0x10] ss:$8 sm:$0x3] %vm3_vm1, %v357_v52   ;;  %359 = vst.msk [vmem:[%s905_s1 + $0x1] ss:$8 sm:$0xc] %vm3_vm1, %v357_v52  }
  0x23   :  { %360 = vst.msk [vmem:[%s905_s1 - $0xe] ss:$8 sm:$0x30] %vm3_vm1, %v357_v52   ;;  %361 = vst.msk [vmem:[%s905_s1 - $0x1d] ss:$8 sm:$0xc0] %vm3_vm1, %v357_v52  }
  0x24   :  { %v362_v54 = vld [vmem:[%s904_s0 + $0x60] ss:$4 sm:$0xff]   ;;  %v434_v59 = vld [vmem:[%s904_s0 + $0x1] ss:$8 sm:$0xf0]   ;;  %278 = vrot.lane.b32.xlu1 %v277_v60, %s461_s25 }
  0x25   :  { %363 = vst.msk [vmem:[%s905_s1 + $0x14] ss:$8 sm:$0x3] %vm3_vm1, %v362_v54   ;;  %364 = vst.msk [vmem:[%s905_s1 + $0x5] ss:$8 sm:$0xc] %vm3_vm1, %v362_v54   ;;  %v267_v61 = vsel %vm92_vm0, %v434_v59, %v433_v58 }
  0x26   :  { %365 = vst.msk [vmem:[%s905_s1 - $0xa] ss:$8 sm:$0x30] %vm3_vm1, %v362_v54   ;;  %366 = vst.msk [vmem:[%s905_s1 - $0x19] ss:$8 sm:$0xc0] %vm3_vm1, %v362_v54   ;;  %268 = vrot.lane.b32.xlu0 %v267_v61, %s461_s25 }
  0x27   :  { %v441_v62 = vld [vmem:[%s904_s0 + $0x85] ss:$8 sm:$0xf]   ;;  %v447_v4 = vld [vmem:[%s904_s0 + $0xc1] ss:$8 sm:$0xf]  }
  0x28   :  { %v442_v63 = vld [vmem:[%s904_s0 + $0x85] ss:$8 sm:$0xf0]   ;;  %v448_v5 = vld [vmem:[%s904_s0 + $0xc1] ss:$8 sm:$0xf0]  }
  0x29   :  { %v438_v0 = vld [vmem:[%s904_s0 + $0x5] ss:$8 sm:$0xf]   ;;  %v299_v2 = vsel %vm92_vm0, %v442_v63, %v441_v62  ;;  %v444_v6 = vld [vmem:[%s904_s0 + $0x41] ss:$8 sm:$0xf]   ;;  %v321_v8 = vsel %vm92_vm0, %v448_v5, %v447_v4 }
  0x2a   :  { %v439_v1 = vld [vmem:[%s904_s0 + $0x5] ss:$8 sm:$0xf0]   ;;  %v445_v7 = vld [vmem:[%s904_s0 + $0x41] ss:$8 sm:$0xf0]   ;;  %300 = vrot.lane.b32.xlu1 %v299_v2, %s461_s25 }
  0x2b   :  { %v288_v3 = vsel %vm92_vm0, %v439_v1, %v438_v0  ;;  %v310_v9 = vsel %vm92_vm0, %v445_v7, %v444_v6  ;;  %v453_v10 = vld [vmem:[%s904_s0 + $0xc5] ss:$8 sm:$0xf]  }
  0x2c   :  { %289 = vrot.lane.b32.xlu0 %v288_v3, %s461_s25  ;;  %v454_v11 = vld [vmem:[%s904_s0 + $0xc5] ss:$8 sm:$0xf0]  }
  0x2d   :  { %v450_v12 = vld [vmem:[%s904_s0 + $0x45] ss:$8 sm:$0xf]   ;;  %v343_v14 = vsel %vm92_vm0, %v454_v11, %v453_v10 }
  0x2e   :  { %v451_v13 = vld [vmem:[%s904_s0 + $0x45] ss:$8 sm:$0xf0]   ;;  %322 = vrot.lane.b32.xlu1 %v321_v8, %s461_s25 }
  0x2f   :  { %v332_v15 = vsel %vm92_vm0, %v451_v13, %v450_v12 }
  0x30   :  { %311 = vrot.lane.b32.xlu0 %v310_v9, %s461_s25 }
  0x32   :  { %344 = vrot.lane.b32.xlu1 %v343_v14, %s461_s25 }
  0x34   :  { %333 = vrot.lane.b32.xlu0 %v332_v15, %s461_s25 }
  0x76   :  { %v116_v16 = vpop.permute.xlu1 %115   ;;  %v95_v17 = vpop.permute.xlu0 %94  }
  0x77   :  { %394 = vst.msk [vmem:[%s905_s1 + $0x8] sm:$0xff] %vm96_vm2, %v116_v16   ;;  %97 = vst.msk [vmem:[%s905_s1] sm:$0xff] %vm96_vm2, %v95_v17  }
  0x7a   :  { %v127_v18 = vpop.permute.xlu1 %126   ;;  %v105_v19 = vpop.permute.xlu0 %104  }
  0x7b   :  { %397 = vst.msk [vmem:[%s905_s1 + $0x28] sm:$0xff] %vm96_vm2, %v127_v18   ;;  %391 = vst.msk [vmem:[%s905_s1 + $0x20] sm:$0xff] %vm96_vm2, %v105_v19  }
  0x7e   :  { %v149_v20 = vpop.permute.xlu1 %148   ;;  %v138_v21 = vpop.permute.xlu0 %137  }
  0x7f   :  { %403 = vst.msk [vmem:[%s905_s1 + $0x30] sm:$0xff] %vm96_vm2, %v149_v20   ;;  %400 = vst.msk [vmem:[%s905_s1 + $0x10] sm:$0xff] %vm96_vm2, %v138_v21  }
  0x82   :  { %v171_v22 = vpop.permute.xlu1 %170   ;;  %v160_v23 = vpop.permute.xlu0 %159  }
  0x83   :  { %409 = vst.msk [vmem:[%s905_s1 + $0x38] sm:$0xff] %vm96_vm2, %v171_v22   ;;  %406 = vst.msk [vmem:[%s905_s1 + $0x18] sm:$0xff] %vm96_vm2, %v160_v23  }
  0x86   :  { %v192_v24 = vpop.permute.xlu1 %191   ;;  %v182_v25 = vpop.permute.xlu0 %181  }
  0x87   :  { %414 = vst.msk [vmem:[%s905_s1 + $0x20] sm:$0xff] %vm183_vm3, %v192_v24   ;;  %184 = vst.msk [vmem:[%s905_s1] sm:$0xff] %vm183_vm3, %v182_v25  }
  0x8a   :  { %v214_v26 = vpop.permute.xlu1 %213   ;;  %v203_v27 = vpop.permute.xlu0 %202  }
  0x8b   :  { %420 = vst.msk [vmem:[%s905_s1 + $0x28] sm:$0xff] %vm183_vm3, %v214_v26   ;;  %417 = vst.msk [vmem:[%s905_s1 + $0x8] sm:$0xff] %vm183_vm3, %v203_v27  }
  0x8e   :  { %v236_v28 = vpop.permute.xlu1 %235   ;;  %v225_v29 = vpop.permute.xlu0 %224  }
  0x8f   :  { %426 = vst.msk [vmem:[%s905_s1 + $0x30] sm:$0xff] %vm183_vm3, %v236_v28   ;;  %423 = vst.msk [vmem:[%s905_s1 + $0x10] sm:$0xff] %vm183_vm3, %v225_v29  }
  0x92   :  { %v258_v30 = vpop.permute.xlu1 %257   ;;  %v247_v31 = vpop.permute.xlu0 %246  }
  0x93   :  { %432 = vst.msk [vmem:[%s905_s1 + $0x38] sm:$0xff] %vm183_vm3, %v258_v30   ;;  %429 = vst.msk [vmem:[%s905_s1 + $0x18] sm:$0xff] %vm183_vm3, %v247_v31  }
  0x96   :  { %v279_v32 = vpop.permute.xlu1 %278  }
  0x97   :  { %437 = vst.msk [vmem:[%s905_s1 + $0x20] sm:$0xff] %vm270_vm4, %v279_v32  }
  0x98   :  { %v269_v33 = vpop.permute.xlu0 %268  }
  0x99   :  { %271 = vst.msk [vmem:[%s905_s1] sm:$0xff] %vm270_vm4, %v269_v33  }
  0x9c   :  { %v301_v34 = vpop.permute.xlu1 %300  }
  0x9d   :  { %443 = vst.msk [vmem:[%s905_s1 + $0x28] sm:$0xff] %vm270_vm4, %v301_v34  }
  0x9e   :  { %v290_v35 = vpop.permute.xlu0 %289  }
  0x9f   :  { %440 = vst.msk [vmem:[%s905_s1 + $0x8] sm:$0xff] %vm270_vm4, %v290_v35  }
  0xa0   :  { %v323_v36 = vpop.permute.xlu1 %322  }
  0xa1   :  { %449 = vst.msk [vmem:[%s905_s1 + $0x30] sm:$0xff] %vm270_vm4, %v323_v36  }
  0xa2   :  { %v312_v37 = vpop.permute.xlu0 %311  }
  0xa3   :  { %446 = vst.msk [vmem:[%s905_s1 + $0x10] sm:$0xff] %vm270_vm4, %v312_v37  }
  0xa4   :  { %v345_v38 = vpop.permute.xlu1 %344  }
  0xa5   :  { %455 = vst.msk [vmem:[%s905_s1 + $0x38] sm:$0xff] %vm270_vm4, %v345_v38  }
  0xa6   :  { %v334_v39 = vpop.permute.xlu0 %333  }
  0xa7   :  { %452 = vst.msk [vmem:[%s905_s1 + $0x18] sm:$0xff] %vm270_vm4, %v334_v39  }

// kernel: tile.27
= control target key start
LH: loop header
LB: loop body
LE: loop exit
PB: predicated region body
PF: predicated region fallthrough
CT: control target
= control target key end

     0   :  { %vm65_vm0 = vcmask 1043458   ;;  %s105_s6 = smov 3  ;;  %vm70_vm1 = vcmask 1045508   ;;  %vm75_vm2 = vcmask 1047558   ;;  %s108_s9 = smov 12  ;;  %vm4_vm3 = vcmask 1047556   ;;  %s1498_s0 = inlined_call_operand.vmem [shape: f32[16,16,16], index: 0, kind: input, shape index: {}]   ;;  %s1499_s1 = inlined_call_operand.vmem [shape: f32[256,16], index: 1, kind: output, shape index: {}]  }
   0x1   :  { %v726_v0 = vld [vmem:[%s1498_s0 + $0x87] ss:$16 sm:%s105_s6]   ;;  %s113_s10 = smov 48  ;;  %s118_s15 = smov 192  ;;  %vm6_vm4 = vcmask 130048   ;;  %vm79_vm5 = vcmask 1048448  }
   0x2   :  { %v727_v1 = vld [vmem:[%s1498_s0 + $0x87] ss:$16 sm:%s108_s9]   ;;  %s60_s16 = smov 3  ;;  %s63_s21 = smov 12  ;;  %vm170_vm6 = vcmask 917248   ;;  %vm261_vm7 = vcmask 786048  }
   0x3   :  { %v728_v2 = vld [vmem:[%s1498_s0 + $0x87] ss:$16 sm:%s113_s10]   ;;  %v111_v3 = vsel %vm65_vm0, %v727_v1, %v726_v0  ;;  %s68_s22 = smov 48  ;;  %s73_s27 = smov 192  ;;  %vm352_vm8 = vcmask 654848   ;;  %vm443_vm9 = vcmask 523648  }
   0x4   :  { %v729_v4 = vld [vmem:[%s1498_s0 + $0x87] ss:$16 sm:%s118_s15]   ;;  %v116_v6 = vsel %vm70_vm1, %v728_v2, %v111_v3  ;;  %s128_s28 = smov 3  ;;  %s131_s4 = smov 12  ;;  %vm534_vm10 = vcmask 392448   ;;  %vm625_vm11 = vcmask 261248  }
   0x5   :  { %v717_v5 = vld [vmem:[%s1498_s0 + $0x7] ss:$16 sm:%s60_s16]   ;;  %v121_v9 = vsel %vm75_vm2, %v729_v4, %v116_v6  ;;  %v731_v12 = vld [vmem:[%s1498_s0 + $0x8f] ss:$16 sm:%s128_s28]   ;;  %s136_s5 = smov 48  ;;  %s857_s6 = smov 112  }
   0x6   :  { %v718_v7 = vld [vmem:[%s1498_s0 + $0x7] ss:$16 sm:%s63_s21]   ;;  %122 = vrot.lane.b32.xlu1 %v121_v9, %s857_s6  ;;  %s141_s9 = smov 192  ;;  %s82_s10 = smov 3 }
   0x7   :  { %v719_v8 = vld [vmem:[%s1498_s0 + $0x7] ss:$16 sm:%s68_s22]   ;;  %v66_v10 = vsel %vm65_vm0, %v718_v7, %v717_v5  ;;  %v732_v14 = vld [vmem:[%s1498_s0 + $0x8f] ss:$16 sm:%s131_s4]   ;;  %s85_s15 = smov 12  ;;  %s90_s16 = smov 48 }
   0x8   :  { %v720_v11 = vld [vmem:[%s1498_s0 + $0x7] ss:$16 sm:%s73_s27]   ;;  %v71_v13 = vsel %vm70_vm1, %v719_v8, %v66_v10  ;;  %v134_v16 = vsel %vm65_vm0, %v732_v14, %v731_v12  ;;  %v733_v17 = vld [vmem:[%s1498_s0 + $0x8f] ss:$16 sm:%s136_s5]   ;;  %s95_s19 = smov 192  ;;  %s173_s24 = smov 3 }
   0x9   :  { %v76_v15 = vsel %vm75_vm2, %v720_v11, %v71_v13  ;;  %v734_v18 = vld [vmem:[%s1498_s0 + $0x8f] ss:$16 sm:%s141_s9]   ;;  %v139_v19 = vsel %vm70_vm1, %v733_v17, %v134_v16  ;;  %s176_s25 = smov 12  ;;  %s181_s28 = smov 48  ;;  %v740_v27 = vld [vmem:[%s1498_s0 + $0xe] ss:$16 sm:%s173_s24]  }
   0xa   :  { %77 = vrot.lane.b32.xlu0 %v76_v15, %s857_s6  ;;  %v721_v20 = vld [vmem:[%s1498_s0 + $0xf] ss:$16 sm:%s82_s10]   ;;  %v144_v21 = vsel %vm75_vm2, %v734_v18, %v139_v19  ;;  %s186_s29 = smov 192  ;;  %s151_s5 = smov 3 }
   0xb   :  { %v722_v22 = vld [vmem:[%s1498_s0 + $0xf] ss:$16 sm:%s85_s15]   ;;  %145 = vrot.lane.b32.xlu1 %v144_v21, %s857_s6  ;;  %s154_s7 = smov 12  ;;  %s159_s12 = smov 48 }
   0xc   :  { %v723_v23 = vld [vmem:[%s1498_s0 + $0xf] ss:$16 sm:%s90_s16]   ;;  %v88_v24 = vsel %vm65_vm0, %v722_v22, %v721_v20  ;;  %v741_v28 = vld [vmem:[%s1498_s0 + $0xe] ss:$16 sm:%s176_s25]   ;;  %s164_s13 = smov 192  ;;  %s219_s15 = smov 3 }
   0xd   :  { %v724_v25 = vld [vmem:[%s1498_s0 + $0xf] ss:$16 sm:%s95_s19]   ;;  %v93_v26 = vsel %vm70_vm1, %v723_v23, %v88_v24  ;;  %v179_v30 = vsel %vm65_vm0, %v741_v28, %v740_v27  ;;  %v742_v31 = vld [vmem:[%s1498_s0 + $0xe] ss:$16 sm:%s181_s28]   ;;  %s222_s16 = smov 12  ;;  %s227_s21 = smov 48 }
   0xe   :  { %v98_v29 = vsel %vm75_vm2, %v724_v25, %v93_v26  ;;  %v743_v32 = vld [vmem:[%s1498_s0 + $0xe] ss:$16 sm:%s186_s29]   ;;  %v184_v33 = vsel %vm70_vm1, %v742_v31, %v179_v30  ;;  %v736_v34 = vld [vmem:[%s1498_s0 + $0x6] ss:$16 sm:%s151_s5]   ;;  %s232_s22 = smov 192  ;;  %s858_s23 = smov 96  }
   0xf   :  { %99 = vrot.lane.b32.xlu0 %v98_v29, %s857_s6  ;;  %v189_v35 = vsel %vm75_vm2, %v743_v32, %v184_v33  ;;  %v737_v36 = vld [vmem:[%s1498_s0 + $0x6] ss:$16 sm:%s154_s7]   ;;  %s196_s26 = smov 3  ;;  %s199_s2 = smov 12 }
  0x10   :  { %v738_v37 = vld [vmem:[%s1498_s0 + $0x6] ss:$16 sm:%s159_s12]   ;;  %190 = vrot.lane.b32.xlu1 %v189_v35, %s858_s23  ;;  %v157_v38 = vsel %vm65_vm0, %v737_v36, %v736_v34  ;;  %s204_s3 = smov 48  ;;  %s209_s9 = smov 192 }
  0x11   :  { %v739_v39 = vld [vmem:[%s1498_s0 + $0x6] ss:$16 sm:%s164_s13]   ;;  %v162_v40 = vsel %vm70_vm1, %v738_v37, %v157_v38  ;;  %v750_v41 = vld [vmem:[%s1498_s0 + $0x8e] ss:$16 sm:%s219_s15]   ;;  %s264_s12 = smov 3  ;;  %s267_s13 = smov 12 }
  0x12   :  { %v751_v42 = vld [vmem:[%s1498_s0 + $0x8e] ss:$16 sm:%s222_s16]   ;;  %v167_v43 = vsel %vm75_vm2, %v739_v39, %v162_v40  ;;  %v745_v48 = vld [vmem:[%s1498_s0 + $0x86] ss:$16 sm:%s196_s26]   ;;  %s272_s17 = smov 48  ;;  %s277_s18 = smov 192 }
  0x13   :  { %v225_v44 = vsel %vm65_vm0, %v751_v42, %v750_v41  ;;  %v752_v45 = vld [vmem:[%s1498_s0 + $0x8e] ss:$16 sm:%s227_s21]   ;;  %168 = vrot.lane.b32.xlu0 %v167_v43, %s858_s23  ;;  %s242_s21 = smov 3  ;;  %s245_s27 = smov 12 }
  0x14   :  { %v753_v46 = vld [vmem:[%s1498_s0 + $0x8e] ss:$16 sm:%s232_s22]   ;;  %v230_v47 = vsel %vm70_vm1, %v752_v45, %v225_v44  ;;  %v746_v50 = vld [vmem:[%s1498_s0 + $0x86] ss:$16 sm:%s199_s2]   ;;  %s250_s28 = smov 48  ;;  %s255_s4 = smov 192 }
  0x15   :  { %v235_v49 = vsel %vm75_vm2, %v753_v46, %v230_v47  ;;  %v747_v51 = vld [vmem:[%s1498_s0 + $0x86] ss:$16 sm:%s204_s3]   ;;  %v202_v52 = vsel %vm65_vm0, %v746_v50, %v745_v48  ;;  %v759_v55 = vld [vmem:[%s1498_s0 + $0xd] ss:$16 sm:%s264_s12]   ;;  %s310_s7 = smov 3  ;;  %s313_s8 = smov 12 }
  0x16   :  { %236 = vrot.lane.b32.xlu1 %v235_v49, %s858_s23  ;;  %v748_v53 = vld [vmem:[%s1498_s0 + $0x86] ss:$16 sm:%s209_s9]   ;;  %v207_v54 = vsel %vm70_vm1, %v747_v51, %v202_v52  ;;  %s323_s6 = smov 192  ;;  %s859_s14 = smov 80  }
  0x17   :  { %v760_v56 = vld [vmem:[%s1498_s0 + $0xd] ss:$16 sm:%s267_s13]   ;;  %v212_v57 = vsel %vm75_vm2, %v748_v53, %v207_v54  ;;  %v755_v62 = vld [vmem:[%s1498_s0 + $0x5] ss:$16 sm:%s242_s21]   ;;  %s318_s13 = smov 48  ;;  %s290_s22 = smov 12 }
  0x18   :  { %v270_v58 = vsel %vm65_vm0, %v760_v56, %v759_v55  ;;  %v761_v59 = vld [vmem:[%s1498_s0 + $0xd] ss:$16 sm:%s272_s17]   ;;  %213 = vrot.lane.b32.xlu0 %v212_v57, %s858_s23  ;;  %s287_s17 = smov 3  ;;  %s295_s24 = smov 48 }
  0x19   :  { %v762_v60 = vld [vmem:[%s1498_s0 + $0xd] ss:$16 sm:%s277_s18]   ;;  %v275_v61 = vsel %vm70_vm1, %v761_v59, %v270_v58  ;;  %v756_v0 = vld [vmem:[%s1498_s0 + $0x5] ss:$16 sm:%s245_s27]   ;;  %s300_s29 = smov 192  ;;  %s355_s3 = smov 3 }
  0x1a   :  { %v280_v63 = vsel %vm75_vm2, %v762_v60, %v275_v61  ;;  %v757_v1 = vld [vmem:[%s1498_s0 + $0x5] ss:$16 sm:%s250_s28]   ;;  %v248_v2 = vsel %vm65_vm0, %v756_v0, %v755_v62  ;;  %v769_v5 = vld [vmem:[%s1498_s0 + $0x8d] ss:$16 sm:%s310_s7]   ;;  %s363_s9 = smov 48  ;;  %s368_s10 = smov 192 }
  0x1b   :  { %281 = vrot.lane.b32.xlu1 %v280_v63, %s859_s14  ;;  %v758_v3 = vld [vmem:[%s1498_s0 + $0x5] ss:$16 sm:%s255_s4]   ;;  %v253_v4 = vsel %vm70_vm1, %v757_v1, %v248_v2  ;;  %s358_s4 = smov 12  ;;  %s336_s18 = smov 12 }
  0x1c   :  { %v770_v6 = vld [vmem:[%s1498_s0 + $0x8d] ss:$16 sm:%s313_s8]   ;;  %v258_v7 = vsel %vm75_vm2, %v758_v3, %v253_v4  ;;  %v764_v12 = vld [vmem:[%s1498_s0 + $0x85] ss:$16 sm:%s287_s17]   ;;  %s341_s19 = smov 48  ;;  %s346_s25 = smov 192 }
  0x1d   :  { %v316_v8 = vsel %vm65_vm0, %v770_v6, %v769_v5  ;;  %v771_v9 = vld [vmem:[%s1498_s0 + $0x8d] ss:$16 sm:%s318_s13]   ;;  %259 = vrot.lane.b32.xlu0 %v258_v7, %s859_s14  ;;  %s333_s13 = smov 3  ;;  %s401_s27 = smov 3 }
  0x1e   :  { %v772_v10 = vld [vmem:[%s1498_s0 + $0x8d] ss:$16 sm:%s323_s6]   ;;  %v321_v11 = vsel %vm70_vm1, %v771_v9, %v316_v8  ;;  %v765_v14 = vld [vmem:[%s1498_s0 + $0x85] ss:$16 sm:%s290_s22]   ;;  %s404_s28 = smov 12  ;;  %s414_s23 = smov 192 }
  0x1f   :  { %v326_v13 = vsel %vm75_vm2, %v772_v10, %v321_v11  ;;  %v766_v15 = vld [vmem:[%s1498_s0 + $0x85] ss:$16 sm:%s295_s24]   ;;  %v293_v16 = vsel %vm65_vm0, %v765_v14, %v764_v12  ;;  %v778_v19 = vld [vmem:[%s1498_s0 + $0xc] ss:$16 sm:%s355_s3]   ;;  %s860_s5 = smov 64   ;;  %s381_s6 = smov 12 }
  0x20   :  { %327 = vrot.lane.b32.xlu1 %v326_v13, %s859_s14  ;;  %v767_v17 = vld [vmem:[%s1498_s0 + $0x85] ss:$16 sm:%s300_s29]   ;;  %v298_v18 = vsel %vm70_vm1, %v766_v15, %v293_v16  ;;  %s386_s15 = smov 48  ;;  %s391_s20 = smov 192 }
  0x21   :  { %v779_v20 = vld [vmem:[%s1498_s0 + $0xc] ss:$16 sm:%s358_s4]   ;;  %v303_v21 = vsel %vm75_vm2, %v767_v17, %v298_v18  ;;  %v774_v26 = vld [vmem:[%s1498_s0 + $0x4] ss:$16 sm:%s333_s13]   ;;  %s409_s4 = smov 48  ;;  %s446_s24 = smov 3 }
  0x22   :  { %v361_v22 = vsel %vm65_vm0, %v779_v20, %v778_v19  ;;  %v780_v23 = vld [vmem:[%s1498_s0 + $0xc] ss:$16 sm:%s363_s9]   ;;  %304 = vrot.lane.b32.xlu0 %v303_v21, %s859_s14  ;;  %s378_s9 = smov 3  ;;  %s454_s29 = smov 48 }
  0x23   :  { %v781_v24 = vld [vmem:[%s1498_s0 + $0xc] ss:$16 sm:%s368_s10]   ;;  %v366_v25 = vsel %vm70_vm1, %v780_v23, %v361_v22  ;;  %v775_v28 = vld [vmem:[%s1498_s0 + $0x4] ss:$16 sm:%s336_s18]   ;;  %s459_s30 = smov 192  ;;  %s427_s10 = smov 12 }
  0x24   :  { %v371_v27 = vsel %vm75_vm2, %v781_v24, %v366_v25  ;;  %v776_v29 = vld [vmem:[%s1498_s0 + $0x4] ss:$16 sm:%s341_s19]   ;;  %v339_v30 = vsel %vm65_vm0, %v775_v28, %v774_v26  ;;  %v788_v33 = vld [vmem:[%s1498_s0 + $0x8c] ss:$16 sm:%s401_s27]   ;;  %s432_s11 = smov 48  ;;  %s437_s16 = smov 192 }
  0x25   :  { %372 = vrot.lane.b32.xlu1 %v371_v27, %s860_s5  ;;  %v777_v31 = vld [vmem:[%s1498_s0 + $0x4] ss:$16 sm:%s346_s25]   ;;  %v344_v32 = vsel %vm70_vm1, %v776_v29, %v339_v30  ;;  %s449_s25 = smov 12  ;;  %s492_s18 = smov 3 }
  0x26   :  { %v789_v34 = vld [vmem:[%s1498_s0 + $0x8c] ss:$16 sm:%s404_s28]   ;;  %v349_v35 = vsel %vm75_vm2, %v777_v31, %v344_v32  ;;  %v783_v40 = vld [vmem:[%s1498_s0 + $0x84] ss:$16 sm:%s378_s9]   ;;  %s495_s19 = smov 12  ;;  %s505_s14 = smov 192 }
  0x27   :  { %v407_v36 = vsel %vm65_vm0, %v789_v34, %v788_v33  ;;  %v790_v37 = vld [vmem:[%s1498_s0 + $0x8c] ss:$16 sm:%s409_s4]   ;;  %350 = vrot.lane.b32.xlu0 %v349_v35, %s860_s5  ;;  %s424_s4 = smov 3  ;;  %s861_s26 = smov 48  }
  0x28   :  { %v791_v38 = vld [vmem:[%s1498_s0 + $0x8c] ss:$16 sm:%s414_s23]   ;;  %v412_v39 = vsel %vm70_vm1, %v790_v37, %v407_v36  ;;  %v784_v42 = vld [vmem:[%s1498_s0 + $0x84] ss:$16 sm:%s381_s6]   ;;  %s472_s23 = smov 12  ;;  %s477_s7 = smov 48 }
  0x29   :  { %v417_v41 = vsel %vm75_vm2, %v791_v38, %v412_v39  ;;  %v785_v43 = vld [vmem:[%s1498_s0 + $0x84] ss:$16 sm:%s386_s15]   ;;  %v384_v44 = vsel %vm65_vm0, %v784_v42, %v783_v40  ;;  %v797_v47 = vld [vmem:[%s1498_s0 + $0xb] ss:$16 sm:%s446_s24]   ;;  %s482_s12 = smov 192  ;;  %s537_s15 = smov 3 }
  0x2a   :  { %418 = vrot.lane.b32.xlu1 %v417_v41, %s860_s5  ;;  %v786_v45 = vld [vmem:[%s1498_s0 + $0x84] ss:$16 sm:%s391_s20]   ;;  %v389_v46 = vsel %vm70_vm1, %v785_v43, %v384_v44  ;;  %s545_s20 = smov 48  ;;  %s550_s21 = smov 192 }
  0x2b   :  { %v798_v48 = vld [vmem:[%s1498_s0 + $0xb] ss:$16 sm:%s449_s25]   ;;  %v394_v49 = vsel %vm75_vm2, %v786_v45, %v389_v46  ;;  %v793_v54 = vld [vmem:[%s1498_s0 + $0x3] ss:$16 sm:%s424_s4]   ;;  %s500_s25 = smov 48  ;;  %s523_s2 = smov 48 }
  0x2c   :  { %v452_v50 = vsel %vm65_vm0, %v798_v48, %v797_v47  ;;  %v799_v51 = vld [vmem:[%s1498_s0 + $0xb] ss:$16 sm:%s454_s29]   ;;  %395 = vrot.lane.b32.xlu0 %v394_v49, %s860_s5  ;;  %s469_s29 = smov 3  ;;  %s528_s8 = smov 192 }
  0x2d   :  { %v800_v52 = vld [vmem:[%s1498_s0 + $0xb] ss:$16 sm:%s459_s30]   ;;  %v457_v53 = vsel %vm70_vm1, %v799_v51, %v452_v50  ;;  %v794_v56 = vld [vmem:[%s1498_s0 + $0x3] ss:$16 sm:%s427_s10]   ;;  %s518_s30 = smov 12  ;;  %s583_s10 = smov 3 }
  0x2e   :  { %v462_v55 = vsel %vm75_vm2, %v800_v52, %v457_v53  ;;  %v795_v57 = vld [vmem:[%s1498_s0 + $0x3] ss:$16 sm:%s432_s11]   ;;  %v430_v58 = vsel %vm65_vm0, %v794_v56, %v793_v54  ;;  %v807_v61 = vld [vmem:[%s1498_s0 + $0x8b] ss:$16 sm:%s492_s18]   ;;  %s586_s11 = smov 12  ;;  %s596_s5 = smov 192 }
  0x2f   :  { %463 = vrot.lane.b32.xlu1 %v462_v55, %s861_s26  ;;  %v796_v59 = vld [vmem:[%s1498_s0 + $0x3] ss:$16 sm:%s437_s16]   ;;  %v435_v60 = vsel %vm70_vm1, %v795_v57, %v430_v58  ;;  %s540_s16 = smov 12  ;;  %s862_s17 = smov 32  }
  0x30   :  { %v808_v62 = vld [vmem:[%s1498_s0 + $0x8b] ss:$16 sm:%s495_s19]   ;;  %v440_v63 = vsel %vm75_vm2, %v796_v59, %v435_v60  ;;  %v802_v4 = vld [vmem:[%s1498_s0 + $0x83] ss:$16 sm:%s469_s29]   ;;  %s568_s27 = smov 48  ;;  %s573_s3 = smov 192 }
  0x31   :  { %v498_v0 = vsel %vm65_vm0, %v808_v62, %v807_v61  ;;  %v809_v1 = vld [vmem:[%s1498_s0 + $0x8b] ss:$16 sm:%s500_s25]   ;;  %441 = vrot.lane.b32.xlu0 %v440_v63, %s861_s26  ;;  %s515_s25 = smov 3  ;;  %s641_s13 = smov 192 }
  0x32   :  { %v810_v2 = vld [vmem:[%s1498_s0 + $0x8b] ss:$16 sm:%s505_s14]   ;;  %v503_v3 = vsel %vm70_vm1, %v809_v1, %v498_v0  ;;  %v803_v6 = vld [vmem:[%s1498_s0 + $0x83] ss:$16 sm:%s472_s23]   ;;  %s563_s14 = smov 12  ;;  %s609_s24 = smov 12 }
  0x33   :  { %v508_v5 = vsel %vm75_vm2, %v810_v2, %v503_v3  ;;  %v804_v7 = vld [vmem:[%s1498_s0 + $0x83] ss:$16 sm:%s477_s7]   ;;  %v475_v8 = vsel %vm65_vm0, %v803_v6, %v802_v4  ;;  %v816_v11 = vld [vmem:[%s1498_s0 + $0xa] ss:$16 sm:%s537_s15]   ;;  %s628_s7 = smov 3  ;;  %s677_s4 = smov 12 }
  0x34   :  { %509 = vrot.lane.b32.xlu1 %v508_v5, %s861_s26  ;;  %v805_v9 = vld [vmem:[%s1498_s0 + $0x83] ss:$16 sm:%s482_s12]   ;;  %v480_v10 = vsel %vm70_vm1, %v804_v7, %v475_v8  ;;  %s636_s12 = smov 48  ;;  %v2_v38 = vld [vmem:[%s1498_s0] ss:$8 sm:$0xf]  }
  0x35   :  { %v817_v12 = vld [vmem:[%s1498_s0 + $0xa] ss:$16 sm:%s540_s16]   ;;  %v485_v13 = vsel %vm75_vm2, %v805_v9, %v480_v10  ;;  %v812_v18 = vld [vmem:[%s1498_s0 + $0x2] ss:$16 sm:%s515_s25]   ;;  %s591_s16 = smov 48  ;;  %s614_s25 = smov 48 }
  0x36   :  { %v543_v14 = vsel %vm65_vm0, %v817_v12, %v816_v11  ;;  %v818_v15 = vld [vmem:[%s1498_s0 + $0xa] ss:$16 sm:%s545_s20]   ;;  %486 = vrot.lane.b32.xlu0 %v485_v13, %s861_s26  ;;  %s560_s20 = smov 3  ;;  %v3_v48 = vld [vmem:[%s1498_s0] ss:$8 sm:$0xf0]  }
  0x37   :  { %v819_v16 = vld [vmem:[%s1498_s0 + $0xa] ss:$16 sm:%s550_s21]   ;;  %v548_v17 = vsel %vm70_vm1, %v818_v15, %v543_v14  ;;  %v813_v20 = vld [vmem:[%s1498_s0 + $0x2] ss:$16 sm:%s518_s30]   ;;  %s619_s30 = smov 192  ;;  %v5_v52 = vsel %vm4_vm3, %v3_v48, %v2_v38  ;;  %s664_s26 = smov 192 }
  0x38   :  { %v553_v19 = vsel %vm75_vm2, %v819_v16, %v548_v17  ;;  %v814_v21 = vld [vmem:[%s1498_s0 + $0x2] ss:$16 sm:%s523_s2]   ;;  %v521_v22 = vsel %vm65_vm0, %v813_v20, %v812_v18  ;;  %v826_v25 = vld [vmem:[%s1498_s0 + $0x8a] ss:$16 sm:%s583_s10]   ;;  %s674_s2 = smov 3 }
  0x39   :  { %554 = vrot.lane.b32.xlu1 %v553_v19, %s862_s17  ;;  %v815_v23 = vld [vmem:[%s1498_s0 + $0x2] ss:$16 sm:%s528_s8]   ;;  %v526_v24 = vsel %vm70_vm1, %v814_v21, %v521_v22  ;;  %s631_s8 = smov 12  ;;  %7 = vst.msk [vmem:[%s1499_s1] ss:$8 sm:$0x3] %vm6_vm4, %v5_v52  }
  0x3a   :  { %v827_v26 = vld [vmem:[%s1498_s0 + $0x8a] ss:$16 sm:%s586_s11]   ;;  %v531_v27 = vsel %vm75_vm2, %v815_v23, %v526_v24  ;;  %v821_v32 = vld [vmem:[%s1498_s0 + $0x82] ss:$16 sm:%s560_s20]   ;;  %s682_s11 = smov 48 }
  0x3b   :  { %v589_v28 = vsel %vm65_vm0, %v827_v26, %v826_v25  ;;  %v828_v29 = vld [vmem:[%s1498_s0 + $0x8a] ss:$16 sm:%s591_s16]   ;;  %532 = vrot.lane.b32.xlu0 %v531_v27, %s862_s17  ;;  %s606_s16 = smov 3  ;;  %696 = vst.msk [vmem:[%s1499_s1 - $0xf] ss:$8 sm:$0xc] %vm6_vm4, %v5_v52  }
  0x3c   :  { %v829_v30 = vld [vmem:[%s1498_s0 + $0x8a] ss:$16 sm:%s596_s5]   ;;  %v594_v31 = vsel %vm70_vm1, %v828_v29, %v589_v28  ;;  %v822_v34 = vld [vmem:[%s1498_s0 + $0x82] ss:$16 sm:%s563_s14]  }
  0x3d   :  { %v599_v33 = vsel %vm75_vm2, %v829_v30, %v594_v31  ;;  %v823_v35 = vld [vmem:[%s1498_s0 + $0x82] ss:$16 sm:%s568_s27]   ;;  %v566_v36 = vsel %vm65_vm0, %v822_v34, %v821_v32  ;;  %v835_v40 = vld [vmem:[%s1498_s0 + $0x9] ss:$16 sm:%s628_s7]  }
  0x3e   :  { %600 = vrot.lane.b32.xlu1 %v599_v33, %s862_s17  ;;  %v824_v37 = vld [vmem:[%s1498_s0 + $0x82] ss:$16 sm:%s573_s3]   ;;  %v571_v39 = vsel %vm70_vm1, %v823_v35, %v566_v36  ;;  %697 = vst.msk [vmem:[%s1499_s1 - $0x1e] ss:$8 sm:$0x30] %vm6_vm4, %v5_v52   ;;  %s659_s3 = smov 48 }
  0x3f   :  { %v836_v41 = vld [vmem:[%s1498_s0 + $0x9] ss:$16 sm:%s631_s8]   ;;  %v576_v42 = vsel %vm75_vm2, %v824_v37, %v571_v39  ;;  %v831_v47 = vld [vmem:[%s1498_s0 + $0x1] ss:$16 sm:%s606_s16]   ;;  %s651_s16 = smov 3 }
  0x40   :  { %v634_v43 = vsel %vm65_vm0, %v836_v41, %v835_v40  ;;  %v837_v44 = vld [vmem:[%s1498_s0 + $0x9] ss:$16 sm:%s636_s12]   ;;  %577 = vrot.lane.b32.xlu0 %v576_v42, %s862_s17  ;;  %s687_s12 = smov 192  ;;  %698 = vst.msk [vmem:[%s1499_s1 - $0x2d] ss:$8 sm:$0xc0] %vm6_vm4, %v5_v52  }
  0x41   :  { %v838_v45 = vld [vmem:[%s1498_s0 + $0x9] ss:$16 sm:%s641_s13]   ;;  %v639_v46 = vsel %vm70_vm1, %v837_v44, %v634_v43  ;;  %v832_v50 = vld [vmem:[%s1498_s0 + $0x1] ss:$16 sm:%s609_s24]   ;;  %s863_s13 = smov 16   ;;  %s654_s17 = smov 12 }
  0x42   :  { %v644_v49 = vsel %vm75_vm2, %v838_v45, %v639_v46  ;;  %v833_v51 = vld [vmem:[%s1498_s0 + $0x1] ss:$16 sm:%s614_s25]   ;;  %v612_v53 = vsel %vm65_vm0, %v832_v50, %v831_v47  ;;  %v699_v55 = vld [vmem:[%s1498_s0 + $0x40] ss:$8 sm:$0xf]  }
  0x43   :  { %645 = vrot.lane.b32.xlu1 %v644_v49, %s863_s13  ;;  %v834_v54 = vld [vmem:[%s1498_s0 + $0x1] ss:$16 sm:%s619_s30]   ;;  %v617_v56 = vsel %vm70_vm1, %v833_v51, %v612_v53  ;;  %v700_v1 = vld [vmem:[%s1498_s0 + $0x40] ss:$8 sm:$0xf0]  }
  0x44   :  { %v845_v57 = vld [vmem:[%s1498_s0 + $0x89] ss:$16 sm:%s674_s2]   ;;  %v622_v59 = vsel %vm75_vm2, %v834_v54, %v617_v56  ;;  %v840_v0 = vld [vmem:[%s1498_s0 + $0x81] ss:$16 sm:%s651_s16]   ;;  %v19_v5 = vsel %vm4_vm3, %v700_v1, %v699_v55 }
  0x45   :  { %v846_v58 = vld [vmem:[%s1498_s0 + $0x89] ss:$16 sm:%s677_s4]   ;;  %623 = vrot.lane.b32.xlu0 %v622_v59, %s863_s13  ;;  %701 = vst.msk [vmem:[%s1499_s1 + $0x4] ss:$8 sm:$0x3] %vm6_vm4, %v19_v5  }
  0x46   :  { %v680_v60 = vsel %vm65_vm0, %v846_v58, %v845_v57  ;;  %v847_v61 = vld [vmem:[%s1498_s0 + $0x89] ss:$16 sm:%s682_s11]   ;;  %v841_v3 = vld [vmem:[%s1498_s0 + $0x81] ss:$16 sm:%s654_s17]  }
  0x47   :  { %v848_v62 = vld [vmem:[%s1498_s0 + $0x89] ss:$16 sm:%s687_s12]   ;;  %v685_v63 = vsel %vm70_vm1, %v847_v61, %v680_v60  ;;  %v842_v4 = vld [vmem:[%s1498_s0 + $0x81] ss:$16 sm:%s659_s3]   ;;  %v657_v6 = vsel %vm65_vm0, %v841_v3, %v840_v0 }
  0x48   :  { %v690_v2 = vsel %vm75_vm2, %v848_v62, %v685_v63  ;;  %v843_v7 = vld [vmem:[%s1498_s0 + $0x81] ss:$16 sm:%s664_s26]   ;;  %702 = vst.msk [vmem:[%s1499_s1 - $0xb] ss:$8 sm:$0xc] %vm6_vm4, %v19_v5   ;;  %v662_v9 = vsel %vm70_vm1, %v842_v4, %v657_v6 }
  0x49   :  { %691 = vrot.lane.b32.xlu1 %v690_v2, %s863_s13  ;;  %703 = vst.msk [vmem:[%s1499_s1 - $0x1a] ss:$8 sm:$0x30] %vm6_vm4, %v19_v5   ;;  %704 = vst.msk [vmem:[%s1499_s1 - $0x29] ss:$8 sm:$0xc0] %vm6_vm4, %v19_v5   ;;  %v667_v12 = vsel %vm75_vm2, %v843_v7, %v662_v9 }
  0x4a   :  { %v705_v8 = vld [vmem:[%s1498_s0 + $0x80] ss:$8 sm:$0xf]   ;;  %668 = vrot.lane.b32.xlu0 %v667_v12, %s863_s13 }
  0x4b   :  { %v706_v10 = vld [vmem:[%s1498_s0 + $0x80] ss:$8 sm:$0xf0]  }
  0x4c   :  { %v711_v11 = vld [vmem:[%s1498_s0 + $0xc0] ss:$8 sm:$0xf]   ;;  %v34_v13 = vsel %vm4_vm3, %v706_v10, %v705_v8 }
  0x4d   :  { %v712_v14 = vld [vmem:[%s1498_s0 + $0xc0] ss:$8 sm:$0xf0]   ;;  %707 = vst.msk [vmem:[%s1499_s1 + $0x10] ss:$8 sm:$0x3] %vm6_vm4, %v34_v13  }
  0x4e   :  { %708 = vst.msk [vmem:[%s1499_s1 + $0x1] ss:$8 sm:$0xc] %vm6_vm4, %v34_v13   ;;  %709 = vst.msk [vmem:[%s1499_s1 - $0xe] ss:$8 sm:$0x30] %vm6_vm4, %v34_v13   ;;  %v49_v15 = vsel %vm4_vm3, %v712_v14, %v711_v11 }
  0x4f   :  { %710 = vst.msk [vmem:[%s1499_s1 - $0x1d] ss:$8 sm:$0xc0] %vm6_vm4, %v34_v13   ;;  %713 = vst.msk [vmem:[%s1499_s1 + $0x14] ss:$8 sm:$0x3] %vm6_vm4, %v49_v15  }
  0x50   :  { %714 = vst.msk [vmem:[%s1499_s1 + $0x5] ss:$8 sm:$0xc] %vm6_vm4, %v49_v15   ;;  %715 = vst.msk [vmem:[%s1499_s1 - $0xa] ss:$8 sm:$0x30] %vm6_vm4, %v49_v15  }
  0x51   :  { %716 = vst.msk [vmem:[%s1499_s1 - $0x19] ss:$8 sm:$0xc0] %vm6_vm4, %v49_v15  }
  0x78   :  { %v123_v16 = vpop.permute.xlu1 %122  }
  0x79   :  { %730 = vst.msk [vmem:[%s1499_s1 + $0x10] sm:$0xff] %vm79_vm5, %v123_v16  }
  0x7c   :  { %v78_v17 = vpop.permute.xlu0 %77  }
  0x7d   :  { %80 = vst.msk [vmem:[%s1499_s1] sm:$0xff] %vm79_vm5, %v78_v17   ;;  %v146_v18 = vpop.permute.xlu1 %145  }
  0x7e   :  { %735 = vst.msk [vmem:[%s1499_s1 + $0x18] sm:$0xff] %vm79_vm5, %v146_v18  }
  0x81   :  { %v100_v19 = vpop.permute.xlu0 %99  }
  0x82   :  { %725 = vst.msk [vmem:[%s1499_s1 + $0x8] sm:$0xff] %vm79_vm5, %v100_v19   ;;  %v191_v20 = vpop.permute.xlu1 %190  }
  0x83   :  { %744 = vst.msk [vmem:[%s1499_s1 + $0x8] sm:$0xff] %vm170_vm6, %v191_v20  }
  0x85   :  { %v169_v21 = vpop.permute.xlu0 %168  }
  0x86   :  { %171 = vst.msk [vmem:[%s1499_s1] sm:$0xff] %vm170_vm6, %v169_v21  }
  0x88   :  { %v237_v22 = vpop.permute.xlu1 %236  }
  0x89   :  { %754 = vst.msk [vmem:[%s1499_s1 + $0x18] sm:$0xff] %vm170_vm6, %v237_v22  }
  0x8a   :  { %v214_v23 = vpop.permute.xlu0 %213  }
  0x8b   :  { %749 = vst.msk [vmem:[%s1499_s1 + $0x10] sm:$0xff] %vm170_vm6, %v214_v23  }
  0x8d   :  { %v282_v24 = vpop.permute.xlu1 %281  }
  0x8e   :  { %763 = vst.msk [vmem:[%s1499_s1 + $0x8] sm:$0xff] %vm261_vm7, %v282_v24  }
  0x8f   :  { %v260_v25 = vpop.permute.xlu0 %259  }
  0x90   :  { %262 = vst.msk [vmem:[%s1499_s1] sm:$0xff] %vm261_vm7, %v260_v25  }
  0x92   :  { %v328_v26 = vpop.permute.xlu1 %327  }
  0x93   :  { %773 = vst.msk [vmem:[%s1499_s1 + $0x18] sm:$0xff] %vm261_vm7, %v328_v26  }
  0x94   :  { %v305_v27 = vpop.permute.xlu0 %304  }
  0x95   :  { %768 = vst.msk [vmem:[%s1499_s1 + $0x10] sm:$0xff] %vm261_vm7, %v305_v27  }
  0x97   :  { %v373_v28 = vpop.permute.xlu1 %372  }
  0x98   :  { %782 = vst.msk [vmem:[%s1499_s1 + $0x8] sm:$0xff] %vm352_vm8, %v373_v28  }
  0x99   :  { %v351_v29 = vpop.permute.xlu0 %350  }
  0x9a   :  { %353 = vst.msk [vmem:[%s1499_s1] sm:$0xff] %vm352_vm8, %v351_v29  }
  0x9c   :  { %v419_v30 = vpop.permute.xlu1 %418  }
  0x9d   :  { %792 = vst.msk [vmem:[%s1499_s1 + $0x18] sm:$0xff] %vm352_vm8, %v419_v30  }
  0x9e   :  { %v396_v31 = vpop.permute.xlu0 %395  }
  0x9f   :  { %787 = vst.msk [vmem:[%s1499_s1 + $0x10] sm:$0xff] %vm352_vm8, %v396_v31  }
  0xa1   :  { %v464_v32 = vpop.permute.xlu1 %463  }
  0xa2   :  { %801 = vst.msk [vmem:[%s1499_s1 + $0x8] sm:$0xff] %vm443_vm9, %v464_v32  }
  0xa3   :  { %v442_v33 = vpop.permute.xlu0 %441  }
  0xa4   :  { %444 = vst.msk [vmem:[%s1499_s1] sm:$0xff] %vm443_vm9, %v442_v33  }
  0xa6   :  { %v510_v34 = vpop.permute.xlu1 %509  }
  0xa7   :  { %811 = vst.msk [vmem:[%s1499_s1 + $0x18] sm:$0xff] %vm443_vm9, %v510_v34  }
  0xa8   :  { %v487_v35 = vpop.permute.xlu0 %486  }
  0xa9   :  { %806 = vst.msk [vmem:[%s1499_s1 + $0x10] sm:$0xff] %vm443_vm9, %v487_v35  }
  0xab   :  { %v555_v36 = vpop.permute.xlu1 %554  }
  0xac   :  { %820 = vst.msk [vmem:[%s1499_s1 + $0x8] sm:$0xff] %vm534_vm10, %v555_v36  }
  0xad   :  { %v533_v37 = vpop.permute.xlu0 %532  }
  0xae   :  { %535 = vst.msk [vmem:[%s1499_s1] sm:$0xff] %vm534_vm10, %v533_v37  }
  0xb0   :  { %v601_v38 = vpop.permute.xlu1 %600  }
  0xb1   :  { %830 = vst.msk [vmem:[%s1499_s1 + $0x18] sm:$0xff] %vm534_vm10, %v601_v38  }
  0xb2   :  { %v578_v39 = vpop.permute.xlu0 %577  }
  0xb3   :  { %825 = vst.msk [vmem:[%s1499_s1 + $0x10] sm:$0xff] %vm534_vm10, %v578_v39  }
  0xb5   :  { %v646_v40 = vpop.permute.xlu1 %645  }
  0xb6   :  { %839 = vst.msk [vmem:[%s1499_s1 + $0x8] sm:$0xff] %vm625_vm11, %v646_v40  }
  0xb7   :  { %v624_v41 = vpop.permute.xlu0 %623  }
  0xb8   :  { %626 = vst.msk [vmem:[%s1499_s1] sm:$0xff] %vm625_vm11, %v624_v41  }
  0xbb   :  { %v692_v42 = vpop.permute.xlu1 %691  }
  0xbc   :  { %849 = vst.msk [vmem:[%s1499_s1 + $0x18] sm:$0xff] %vm625_vm11, %v692_v42   ;;  %v669_v43 = vpop.permute.xlu0 %668  }
  0xbd   :  { %844 = vst.msk [vmem:[%s1499_s1 + $0x10] sm:$0xff] %vm625_vm11, %v669_v43  }

// kernel: discriminator_forward.1
= control target key start
LH: loop header
LB: loop body
LE: loop exit
PB: predicated region body
PF: predicated region fallthrough
CT: control target
= control target key end

     0   :  { %s9215_s26 = smov 0   ;;  %s11706_s0 = inlined_call_operand.vmem [shape: bf16[2,64,256], index: 0, kind: input, shape index: {}]   ;;  %s11707_s1 = inlined_call_operand.vmem [shape: bf16[4,32,64], index: 1, kind: input, shape index: {}]   ;;  %s11708_s2 = inlined_call_operand.vmem [shape: bf16[4,256,256], index: 2, kind: input, shape index: {}]   ;;  %s11709_s3 = inlined_call_operand.vmem [shape: f32[1,256], index: 3, kind: input, shape index: {}]   ;;  %s11710_s4 = inlined_call_operand.vmem [shape: bf16[4,16,32], index: 4, kind: input, shape index: {}]   ;;  %s11711_s5 = inlined_call_operand.vmem [shape: bf16[4,256,256], index: 5, kind: input, shape index: {}]   ;;  %s11712_s6 = inlined_call_operand.vmem [shape: f32[2,16], index: 6, kind: input, shape index: {}]   ;;  %s11713_s7 = inlined_call_operand.vmem [shape: f32[256,16], index: 7, kind: input, shape index: {}]   ;;  %s11714_s8 = inlined_call_operand.vmem [shape: f32[16,256], index: 8, kind: input, shape index: {}]   ;;  %s11715_s9 = inlined_call_operand.vmem [shape: bf16[4,8,16], index: 9, kind: input, shape index: {}]   ;;  %s11716_s10 = inlined_call_operand.vmem [shape: bf16[4,256,256], index: 10, kind: input, shape index: {}]   ;;  %s11717_s11 = inlined_call_operand.vmem [shape: f32[2,32], index: 11, kind: input, shape index: {}]   ;;  %s11718_s12 = inlined_call_operand.vmem [shape: f32[256,32], index: 12, kind: input, shape index: {}]   ;;  %s11719_s13 = inlined_call_operand.vmem [shape: f32[32,256], index: 13, kind: input, shape index: {}]   ;;  %s11720_s14 = inlined_call_operand.vmem [shape: bf16[4,4,8], index: 14, kind: input, shape index: {}]   ;;  %s11721_s15 = inlined_call_operand.vmem [shape: bf16[4,256,256], index: 15, kind: input, shape index: {}]   ;;  %s11722_s16 = inlined_call_operand.vmem [shape: f32[2,64], index: 16, kind: input, shape index: {}]   ;;  %s11723_s17 = inlined_call_operand.vmem [shape: f32[256,64], index: 17, kind: input, shape index: {}]   ;;  %s11724_s18 = inlined_call_operand.vmem [shape: f32[64,256], index: 18, kind: input, shape index: {}]   ;;  %s11725_s19 = inlined_call_operand.vmem [shape: f32[4,256], index: 19, kind: input, shape index: {}]   ;;  %s11726_s20 = inlined_call_operand.<no memory space> [shape: f32[1,1], index: 20, kind: input, shape index: {}]   ;;  %s11727_s21 = inlined_call_operand.vmem [shape: f32[2,1,1], index: 21, kind: output, shape index: {}]  }
   0x1   :  { %11733 = sst [smem:[#allocation3_spill]] %s11706_s0 }
   0x2   :  { %11734 = sst [smem:[#allocation4_spill]] %s11707_s1 }
   0x3   :  { %11735 = sst [smem:[#allocation5_spill]] %s11708_s2 }
   0x4   :  { %11736 = sst [smem:[#allocation6_spill]] %s11709_s3 }
   0x5   :  { %11737 = sst [smem:[#allocation7_spill]] %s11710_s4 }
   0x6   :  { %11738 = sst [smem:[#allocation8_spill]] %s11711_s5 }
   0x7   :  { %26 = sst [smem:[#allocation2]] %s11726_s20 }
   0x8 LB: > { %s6785_s27 = sadd.s32 4294967295, %s9098_s26   ;;  %p6789_p0 = scmp.ge.s32.totalorder %s9098_s26, 1  ;;  %s9098_s26 = sphi %s9215_s26, %s32_s26  }
   0x9   : > { %p588_p1 = scmp.lt.s32.totalorder %s9098_s26, 3 }
   0xb   : > { %p589_p2 = pnand %p6789_p0, %p588_p1 }
   0xc   : > { %p646_p3 = scmp.lt.s32.totalorder (!%p589_p2), %s6785_s27, 1  ;;  %v9100_v0 = vmov (!%p589_p2), 0   ;;  %s11739_s29 = sld [smem:[#allocation3_spill]] (!%p589_p2)  ;;  %vm717_vm0 = vcmask (!%p589_p2), 523264   ;;  %vm2069_vm9 = vcmask (!%p589_p2), 261120   ;;  %vm3457_vm10 = vcmask (!%p589_p2), 130048  }
   0xd   : > { %592 = sbr.rel (%p589_p2) target bundleno = 4767 (0x129f), region = 104  ;;  %866 = vmatprep.mubr.bf16.mxu1 (!%p589_p2), %v9100_v0  ;;  %756 = vmatprep.mubr.bf16.mxu0 (!%p589_p2), %v9100_v0  ;;  %s11740_s5 = sld [smem:[#allocation5_spill]] (!%p589_p2) }
   0xe   : > { %s11741_s1 = sld [smem:[#allocation4_spill]] (!%p589_p2)  ;;  %s11743_s30 = sld [smem:[#allocation7_spill]] (!%p589_p2) }
   0xf   : > { %s11744_s24 = sld [smem:[#allocation8_spill]] (!%p589_p2)  ;;  %s6733_s22 = sld [smem:[#allocation2]] (!%p589_p2) }
  0x13   : > { %v8312_v9 = vld [vmem:[%s11740_s5 + $0x104] ss:$8 sps:$4 sm:$0xff] (!%p589_p2)   ;;  %v8310_v12 = vld [vmem:[%s11740_s5 + $0x100] ss:$8 sps:$4 sm:$0xff] (!%p589_p2)   ;;  %v8315_v13 = vld [vmem:[%s11740_s5 + $0x114] ss:$8 sps:$4 sm:$0xff] (!%p589_p2)  }
  0x14   : > { %s11746_s27 = smov (!%p646_p3, %s6785_s27), 1  ;;  %v8305_v10 = vld [vmem:[%s11741_s1 + $0x10] sm:$0xff]   ;;  %v8307_v11 = vld [vmem:[%s11741_s1] sm:$0xff]   ;;  %v8306_v14 = vld [vmem:[%s11741_s1 + $0x18] sm:$0xff]  }
  0x15   : > { %s7764_s20 = sshll.u32 %s11746_s27, 6  ;;  %v8313_v15 = vld [vmem:[%s11740_s5 + $0x110] ss:$8 sps:$4 sm:$0xff]   ;;  %v8308_v16 = vld [vmem:[%s11741_s1 + $0x8] sm:$0xff]   ;;  %v8321_v19 = vld [vmem:[%s11740_s5 + $0x134] ss:$8 sps:$4 sm:$0xff]   ;;  %s653_s25 = scalar_lea.vmem %s11727_s21, %s11746_s27 }
  0x16   : > { %s650_s0 = scalar_lea.vmem %s11739_s29, %s7764_s20  ;;  %v8318_v17 = vld [vmem:[%s11740_s5 + $0x124] ss:$8 sps:$4 sm:$0xff]   ;;  %v8316_v18 = vld [vmem:[%s11740_s5 + $0x120] ss:$8 sps:$4 sm:$0xff]   ;;  %v8319_v20 = vld [vmem:[%s11740_s5 + $0x130] ss:$8 sps:$4 sm:$0xff]  }
  0x17   : > { %v8293_v1 = vld [vmem:[%s650_s0 + $0x4] ss:$8 sps:$4 sm:$0xff]   ;;  %v9231_v2 = vld [vmem:[%s650_s0] ss:$8 sps:$4 sm:$0xff]   ;;  %v9233_v3 = vld [vmem:[%s650_s0 + $0x14] ss:$8 sps:$4 sm:$0xff]  }
  0x18   : > { %834 = vmatprep.subr.bf16.mxu1 %v8293_v1  ;;  %724 = vmatprep.subr.bf16.mxu0 %v8293_v1  ;;  %v9236_v4 = vld [vmem:[%s650_s0 + $0x10] ss:$8 sps:$4 sm:$0xff]   ;;  %v9240_v5 = vld [vmem:[%s650_s0 + $0x24] ss:$8 sps:$4 sm:$0xff]   ;;  %v9244_v6 = vld [vmem:[%s650_s0 + $0x20] ss:$8 sps:$4 sm:$0xff]  }
  0x19   : > { %835 = vmatpush1.bf16.msra.mxu1 %v9231_v2  ;;  %725 = vmatpush1.bf16.msra.mxu0 %v9231_v2  ;;  %v9248_v7 = vld [vmem:[%s650_s0 + $0x34] ss:$8 sps:$4 sm:$0xff]   ;;  %v9252_v8 = vld [vmem:[%s650_s0 + $0x30] ss:$8 sps:$4 sm:$0xff]   ;;  %v8309_v21 = vld [vmem:[%s11741_s1 + $0x20] sm:$0xff]   ;;  %s11742_s29 = sld [smem:[#allocation6_spill]] }
  0x1a   : > { %836 = vmatprep.subr.bf16.mxu1 %v9233_v3  ;;  %726 = vmatprep.subr.bf16.mxu0 %v9233_v3  ;;  %v8324_v22 = vld [vmem:[%s11740_s5 + $0x144] ss:$8 sps:$4 sm:$0xff]   ;;  %v8322_v23 = vld [vmem:[%s11740_s5 + $0x140] ss:$8 sps:$4 sm:$0xff]   ;;  %v8327_v24 = vld [vmem:[%s11740_s5 + $0x154] ss:$8 sps:$4 sm:$0xff]  }
  0x1b   : > { %v8325_v25 = vld [vmem:[%s11740_s5 + $0x150] ss:$8 sps:$4 sm:$0xff]   ;;  %v8330_v26 = vld [vmem:[%s11740_s5 + $0x164] ss:$8 sps:$4 sm:$0xff]   ;;  %v8328_v28 = vld [vmem:[%s11740_s5 + $0x160] ss:$8 sps:$4 sm:$0xff]  }
  0x1c   : > { %v8331_v27 = vld [vmem:[%s11741_s1 + $0x28] sm:$0xff]   ;;  %v8334_v29 = vld [vmem:[%s11740_s5 + $0x174] ss:$8 sps:$4 sm:$0xff]   ;;  %v8332_v30 = vld [vmem:[%s11740_s5 + $0x170] ss:$8 sps:$4 sm:$0xff]  }
  0x1d   : > { %837 = vmatpush1.bf16.msra.mxu1 %v9236_v4  ;;  %727 = vmatpush1.bf16.msra.mxu0 %v9236_v4  ;;  %v8337_v31 = vld [vmem:[%s11740_s5 + $0x184] ss:$8 sps:$4 sm:$0xff]   ;;  %v8338_v32 = vld [vmem:[%s11741_s1 + $0x30] sm:$0xff]   ;;  %v8335_v33 = vld [vmem:[%s11740_s5 + $0x180] ss:$8 sps:$4 sm:$0xff]  }
  0x1e   : > { %838 = vmatprep.subr.bf16.mxu1 %v9240_v5  ;;  %728 = vmatprep.subr.bf16.mxu0 %v9240_v5  ;;  %v8341_v34 = vld [vmem:[%s11740_s5 + $0x194] ss:$8 sps:$4 sm:$0xff]   ;;  %v8339_v35 = vld [vmem:[%s11740_s5 + $0x190] ss:$8 sps:$4 sm:$0xff]   ;;  %v8344_v36 = vld [vmem:[%s11740_s5 + $0x1a4] ss:$8 sps:$4 sm:$0xff]  }
  0x1f   : > { %v8345_v37 = vld [vmem:[%s11741_s1 + $0x38] sm:$0xff]   ;;  %v8342_v38 = vld [vmem:[%s11740_s5 + $0x1a0] ss:$8 sps:$4 sm:$0xff]   ;;  %v8351_v41 = vld [vmem:[%s11740_s5 + $0x1c4] ss:$8 sps:$4 sm:$0xff]  }
  0x20   : > { %v8348_v39 = vld [vmem:[%s11740_s5 + $0x1b4] ss:$8 sps:$4 sm:$0xff]   ;;  %v8346_v40 = vld [vmem:[%s11740_s5 + $0x1b0] ss:$8 sps:$4 sm:$0xff]   ;;  %v8349_v42 = vld [vmem:[%s11740_s5 + $0x1c0] ss:$8 sps:$4 sm:$0xff]  }
  0x21   : > { %839 = vmatpush1.bf16.msra.mxu1 %v9244_v6  ;;  %729 = vmatpush1.bf16.msra.mxu0 %v9244_v6  ;;  %v8354_v43 = vld [vmem:[%s11740_s5 + $0x1d4] ss:$8 sps:$4 sm:$0xff]   ;;  %v8352_v44 = vld [vmem:[%s11740_s5 + $0x1d0] ss:$8 sps:$4 sm:$0xff]   ;;  %v8357_v45 = vld [vmem:[%s11740_s5 + $0x1e4] ss:$8 sps:$4 sm:$0xff]  }
  0x22   : > { %840 = vmatprep.subr.bf16.mxu1 %v9248_v7  ;;  %730 = vmatprep.subr.bf16.mxu0 %v9248_v7  ;;  %v8355_v46 = vld [vmem:[%s11740_s5 + $0x1e0] ss:$8 sps:$4 sm:$0xff]   ;;  %v8360_v47 = vld [vmem:[%s11740_s5 + $0x1f4] ss:$8 sps:$4 sm:$0xff]   ;;  %v8358_v48 = vld [vmem:[%s11740_s5 + $0x1f0] ss:$8 sps:$4 sm:$0xff]  }
  0x23   : > { %v8363_v49 = vld [vmem:[%s11740_s5 + $0x4] ss:$8 sps:$4 sm:$0xff]   ;;  %v8361_v61 = vld [vmem:[%s11740_s5] ss:$8 sps:$4 sm:$0xff]   ;;  %v8366_v63 = vld [vmem:[%s11740_s5 + $0x14] ss:$8 sps:$4 sm:$0xff]  }
  0x25   : > { %841 = vmatpush1.bf16.msra.mxu1 %v9252_v8  ;;  %731 = vmatpush1.bf16.msra.mxu0 %v9252_v8 }
  0x26   : > { %1371 = vmatprep.subr.bf16.mxu1 %v8293_v1  ;;  %1084 = vmatprep.subr.bf16.mxu0 %v8312_v9 }
  0x28   : > { %6810 = vmatmul.mubr.msk.bf16.vlgmr.msra.gmra.mrb[0].mxu1 %vm717_vm0, %v8305_v10  ;;  %6802 = vmatmul.mubr.msk.bf16.vlgmr.msra.gmra.mrb[0].mxu0 %vm717_vm0, %v8307_v11 }
  0x29   : > { %876 = vmatprep.mubr.bf16.mxu1 %v9100_v0  ;;  %1372 = vmatpush1.bf16.msra.mxu1 %v9231_v2 }
  0x2a   : > { %1373 = vmatprep.subr.bf16.mxu1 %v9233_v3  ;;  %766 = vmatprep.mubr.bf16.mxu0 %v9100_v0 }
  0x2b   : > { %1085 = vmatpush1.bf16.msra.mxu0 %v8310_v12 }
  0x2c   : > { %1086 = vmatprep.subr.bf16.mxu0 %v8315_v13  ;;  %v8367_v13 = vld [vmem:[%s11740_s5 + $0x20] ss:$8 sps:$4 sm:$0xff]  }
  0x2d   : > { %1374 = vmatpush1.bf16.msra.mxu1 %v9236_v4 }
  0x2e   : > { %1375 = vmatprep.subr.bf16.mxu1 %v9240_v5 }
  0x2f   : > { %1087 = vmatpush1.bf16.msra.mxu0 %v8313_v15 }
  0x30   : > { %6811 = vmatmul.mubr.msk.bf16.gmra.mrb[4].mxu1 %vm717_vm0, %v8306_v14  ;;  %6803 = vmatmul.mubr.msk.bf16.gmra.mrb[4].mxu0 %vm717_vm0, %v8308_v16  ;;  %v8372_v16 = vld [vmem:[%s11740_s5 + $0x34] ss:$8 sps:$4 sm:$0xff]  }
  0x31   : > { %1376 = vmatpush1.bf16.msra.mxu1 %v9244_v6  ;;  %1403 = vmatprep.mubr.bf16.mxu1 %v9100_v0 }
  0x32   : > { %1377 = vmatprep.subr.bf16.mxu1 %v9248_v7  ;;  %1088 = vmatprep.subr.bf16.mxu0 %v8318_v17  ;;  %v8370_v17 = vld [vmem:[%s11740_s5 + $0x30] ss:$8 sps:$4 sm:$0xff]  }
  0x33   : > { %1089 = vmatpush1.bf16.msra.mxu0 %v8316_v18 }
  0x34   : > { %1090 = vmatprep.subr.bf16.mxu0 %v8321_v19  ;;  %v8375_v19 = vld [vmem:[%s11740_s5 + $0x44] ss:$8 sps:$4 sm:$0xff]  }
  0x35   : > { %1378 = vmatpush1.bf16.msra.mxu1 %v9252_v8 }
  0x36   : > { %1703 = vmatprep.subr.bf16.mxu1 %v8293_v1  ;;  %v8364_v1 = vld [vmem:[%s11740_s5 + $0x10] ss:$8 sps:$4 sm:$0xff]  }
  0x37   : > { %1091 = vmatpush1.bf16.msra.mxu0 %v8319_v20 }
  0x38   : > { %6914 = vmatmul.mubr.msk.bf16.vlgmr.msra.gmra.mrb[8].mxu1 %vm717_vm0, %v8309_v21  ;;  %1092 = vmatprep.subr.bf16.mxu0 %v8324_v22 }
  0x39   : > { %1704 = vmatpush1.bf16.msra.mxu1 %v9231_v2  ;;  %1413 = vmatprep.mubr.bf16.mxu1 %v9100_v0 }
  0x3a   : > { %1705 = vmatprep.subr.bf16.mxu1 %v9233_v3 }
  0x3b   : > { %1093 = vmatpush1.bf16.msra.mxu0 %v8322_v23 }
  0x3c   : > { %1094 = vmatprep.subr.bf16.mxu0 %v8327_v24  ;;  %v8373_v24 = vld [vmem:[%s11740_s5 + $0x40] ss:$8 sps:$4 sm:$0xff]  }
  0x3d   : > { %1706 = vmatpush1.bf16.msra.mxu1 %v9236_v4  ;;  %v8369_v4 = vld [vmem:[%s11740_s5 + $0x24] ss:$8 sps:$4 sm:$0xff]  }
  0x3e   : > { %1707 = vmatprep.subr.bf16.mxu1 %v9240_v5 }
  0x3f   : > { %1095 = vmatpush1.bf16.msra.mxu0 %v8325_v25 }
  0x40   : > { %1096 = vmatprep.subr.bf16.mxu0 %v8330_v26  ;;  %6915 = vmatmul.mubr.msk.bf16.gmra.mrb[12].mxu1 %vm717_vm0, %v8331_v27  ;;  %v8378_v26 = vld [vmem:[%s11740_s5 + $0x54] ss:$8 sps:$4 sm:$0xff]   ;;  %v8376_v27 = vld [vmem:[%s11740_s5 + $0x50] ss:$8 sps:$4 sm:$0xff]  }
  0x41   : > { %1708 = vmatpush1.bf16.msra.mxu1 %v9244_v6  ;;  %1735 = vmatprep.mubr.bf16.mxu1 %v9100_v0 }
  0x42   : > { %1709 = vmatprep.subr.bf16.mxu1 %v9248_v7 }
  0x43   : > { %1097 = vmatpush1.bf16.msra.mxu0 %v8328_v28  ;;  %v8381_v28 = vld [vmem:[%s11740_s5 + $0x64] ss:$8 sps:$4 sm:$0xff]  }
  0x44   : > { %1098 = vmatprep.subr.bf16.mxu0 %v8334_v29  ;;  %v8379_v29 = vld [vmem:[%s11740_s5 + $0x60] ss:$8 sps:$4 sm:$0xff]  }
  0x45   : > { %1710 = vmatpush1.bf16.msra.mxu1 %v9252_v8 }
  0x47   : > { %1099 = vmatpush1.bf16.msra.mxu0 %v8332_v30  ;;  %v8384_v30 = vld [vmem:[%s11740_s5 + $0x74] ss:$8 sps:$4 sm:$0xff]  }
  0x48   : > { %1100 = vmatprep.subr.bf16.mxu0 %v8337_v31  ;;  %6986 = vmatmul.mubr.msk.bf16.vlgmr.msra.gmra.mrb[16].mxu1 %vm717_vm0, %v8338_v32  ;;  %v8382_v31 = vld [vmem:[%s11740_s5 + $0x70] ss:$8 sps:$4 sm:$0xff]   ;;  %v8387_v32 = vld [vmem:[%s11740_s5 + $0x84] ss:$8 sps:$4 sm:$0xff]  }
  0x49   : > { %1745 = vmatprep.mubr.bf16.mxu1 %v9100_v0 }
  0x4b   : > { %1101 = vmatpush1.bf16.msra.mxu0 %v8335_v33  ;;  %v8385_v33 = vld [vmem:[%s11740_s5 + $0x80] ss:$8 sps:$4 sm:$0xff]  }
  0x4c   : > { %1102 = vmatprep.subr.bf16.mxu0 %v8341_v34  ;;  %v8390_v34 = vld [vmem:[%s11740_s5 + $0x94] ss:$8 sps:$4 sm:$0xff]  }
  0x4f   : > { %1103 = vmatpush1.bf16.msra.mxu0 %v8339_v35  ;;  %v8388_v35 = vld [vmem:[%s11740_s5 + $0x90] ss:$8 sps:$4 sm:$0xff]  }
  0x50   : > { %1104 = vmatprep.subr.bf16.mxu0 %v8344_v36  ;;  %6987 = vmatmul.mubr.msk.bf16.gmra.mrb[20].mxu1 %vm717_vm0, %v8345_v37  ;;  %v8393_v36 = vld [vmem:[%s11740_s5 + $0xa4] ss:$8 sps:$4 sm:$0xff]   ;;  %v8391_v37 = vld [vmem:[%s11740_s5 + $0xa0] ss:$8 sps:$4 sm:$0xff]  }
  0x51   : > { %2105 = vmatprep.mubr.bf16.mxu1 %v9100_v0 }
  0x53   : > { %1105 = vmatpush1.bf16.msra.mxu0 %v8342_v38  ;;  %v8396_v38 = vld [vmem:[%s11740_s5 + $0xb4] ss:$8 sps:$4 sm:$0xff]  }
  0x54   : > { %1106 = vmatprep.subr.bf16.mxu0 %v8348_v39  ;;  %v8394_v39 = vld [vmem:[%s11740_s5 + $0xb0] ss:$8 sps:$4 sm:$0xff]  }
  0x57   : > { %1107 = vmatpush1.bf16.msra.mxu0 %v8346_v40  ;;  %v8399_v40 = vld [vmem:[%s11740_s5 + $0xc4] ss:$8 sps:$4 sm:$0xff]  }
  0x58   : > { %1108 = vmatprep.subr.bf16.mxu0 %v8351_v41 }
  0x5b   : > { %1109 = vmatpush1.bf16.msra.mxu0 %v8349_v42  ;;  %v8397_v42 = vld [vmem:[%s11740_s5 + $0xc0] ss:$8 sps:$4 sm:$0xff]  }
  0x5c   : > { %1110 = vmatprep.subr.bf16.mxu0 %v8354_v43 }
  0x5f   : > { %1111 = vmatpush1.bf16.msra.mxu0 %v8352_v44  ;;  %v8402_v44 = vld [vmem:[%s11740_s5 + $0xd4] ss:$8 sps:$4 sm:$0xff]  }
  0x60   : > { %1112 = vmatprep.subr.bf16.mxu0 %v8357_v45 }
  0x63   : > { %1113 = vmatpush1.bf16.msra.mxu0 %v8355_v46 }
  0x64   : > { %1114 = vmatprep.subr.bf16.mxu0 %v8360_v47 }
  0x67   : > { %1115 = vmatpush1.bf16.msra.mxu0 %v8358_v48 }
  0x68   : > { %1297 = vmatprep.subr.bf16.mxu0 %v8363_v49  ;;  %v8400_v49 = vld [vmem:[%s11740_s5 + $0xd0] ss:$8 sps:$4 sm:$0xff]  }
  0xfb   : > { %v868_v50 = vpop.f32.mrb[0].mxu1  ;;  %v9411_v51 = vpop.f32.mrb[0].mxu0 }
  0xfc   : > { %v870_v52 = vpop.f32.mrb[1].mxu1  ;;  %v760_v53 = vpop.f32.mrb[1].mxu0 }
  0xfd   : > { %v872_v54 = vpop.f32.mrb[2].mxu1  ;;  %v9413_v55 = vpop.f32.mrb[2].mxu0 }
  0xfe   : > { %v887_v56 = vpack.c.bf16 %v872_v54, %v868_v50  ;;  %v874_v57 = vpop.f32.mrb[3].mxu1  ;;  %v777_v58 = vpack.c.bf16 %v9413_v55, %v9411_v51  ;;  %v764_v59 = vpop.f32.mrb[3].mxu0  ;;  %v8405_v50 = vld [vmem:[%s11740_s5 + $0xe4] ss:$8 sps:$4 sm:$0xff]   ;;  %v8408_v54 = vld [vmem:[%s11740_s5 + $0xf4] ss:$8 sps:$4 sm:$0xff]  }
  0xff   : > { %v888_v60 = vpack.c.bf16 %v874_v57, %v870_v52  ;;  %v778_v62 = vpack.c.bf16 %v764_v59, %v760_v53  ;;  %v8403_v52 = vld [vmem:[%s11740_s5 + $0xe0] ss:$8 sps:$4 sm:$0xff]   ;;  %v8417_v51 = vld [vmem:[%s11740_s5 + $0x224] ss:$8 sps:$4 sm:$0xff]  }
 0x100   : > { %v8415_v55 = vld [vmem:[%s11740_s5 + $0x220] ss:$8 sps:$4 sm:$0xff]  }
 0x101   : > { %1116 = vmatprep.mubr.bf16.mxu0 %v888_v60 }
 0x102   : > { %1117 = vmatmul.mubr.bf16.vlgmr.msra.gmra.mrb[8].mxu0 %v887_v56 }
 0x103   : > { %1298 = vmatpush1.bf16.msra.mxu0 %v8361_v61  ;;  %v878_v2 = vpop.f32.mrb[4].mxu1  ;;  %v9426_v3 = vpop.f32.mrb[4].mxu0  ;;  %v8406_v61 = vld [vmem:[%s11740_s5 + $0xf0] ss:$8 sps:$4 sm:$0xff]  }
 0x104   : > { %1299 = vmatprep.subr.bf16.mxu0 %v8366_v63  ;;  %v880_v5 = vpop.f32.mrb[5].mxu1  ;;  %v9431_v6 = vpop.f32.mrb[5].mxu0  ;;  %v8411_v63 = vld [vmem:[%s11740_s5 + $0x204] ss:$8 sps:$4 sm:$0xff]  }
 0x105   : > { %v882_v7 = vpop.f32.mrb[6].mxu1  ;;  %v9433_v8 = vpop.f32.mrb[6].mxu0 }
 0x106   : > { %v889_v9 = vpack.c.bf16 %v882_v7, %v878_v2  ;;  %v884_v10 = vpop.f32.mrb[7].mxu1  ;;  %v779_v11 = vpack.c.bf16 %v9433_v8, %v9426_v3  ;;  %v9437_v12 = vpop.f32.mrb[7].mxu0  ;;  %v8421_v3 = vld [vmem:[%s11740_s5 + $0x240] ss:$8 sps:$4 sm:$0xff]   ;;  %v8426_v8 = vld [vmem:[%s11740_s5 + $0x254] ss:$8 sps:$4 sm:$0xff]  }
 0x107   : > { %1300 = vmatpush1.bf16.msra.mxu0 %v8364_v1  ;;  %v890_v14 = vpack.c.bf16 %v884_v10, %v880_v5  ;;  %v780_v15 = vpack.c.bf16 %v9437_v12, %v9431_v6  ;;  %v8409_v1 = vld [vmem:[%s11740_s5 + $0x200] ss:$8 sps:$4 sm:$0xff]   ;;  %v8418_v6 = vld [vmem:[%s11740_s5 + $0x230] ss:$8 sps:$4 sm:$0xff]   ;;  %v8423_v12 = vld [vmem:[%s11740_s5 + $0x244] ss:$8 sps:$4 sm:$0xff]  }
 0x108   : > { %1301 = vmatprep.subr.bf16.mxu0 %v8369_v4  ;;  %v8414_v4 = vld [vmem:[%s11740_s5 + $0x214] ss:$8 sps:$4 sm:$0xff]  }
 0x109   : > { %1126 = vmatprep.mubr.bf16.mxu0 %v890_v14 }
 0x10a   : > { %1127 = vmatmul.mubr.bf16.gmra.mrb[12].mxu0 %v889_v9 }
 0x10b   : > { %1302 = vmatpush1.bf16.msra.mxu0 %v8367_v13  ;;  %1329 = vmatprep.mubr.bf16.mxu0 %v778_v62  ;;  %v9450_v18 = vpop.f32.mrb[8].mxu1  ;;  %v8412_v13 = vld [vmem:[%s11740_s5 + $0x210] ss:$8 sps:$4 sm:$0xff]  }
 0x10c   : > { %1303 = vmatprep.subr.bf16.mxu0 %v8372_v16  ;;  %v9455_v20 = vpop.f32.mrb[9].mxu1  ;;  %v8427_v16 = vld [vmem:[%s11740_s5 + $0x260] ss:$8 sps:$4 sm:$0xff]  }
 0x10d   : > { %v9457_v21 = vpop.f32.mrb[10].mxu1 }
 0x10e   : > { %v1424_v22 = vpack.c.bf16 %v9457_v21, %v9450_v18  ;;  %v9461_v23 = vpop.f32.mrb[11].mxu1  ;;  %v8463_v18 = vld [vmem:[%s11740_s5 + $0x320] ss:$8 sps:$4 sm:$0xff]   ;;  %v8468_v21 = vld [vmem:[%s11740_s5 + $0x334] ss:$8 sps:$4 sm:$0xff]  }
 0x10f   : > { %1304 = vmatpush1.bf16.msra.mxu0 %v8370_v17  ;;  %v1425_v25 = vpack.c.bf16 %v9461_v23, %v9455_v20  ;;  %v8432_v17 = vld [vmem:[%s11740_s5 + $0x274] ss:$8 sps:$4 sm:$0xff]   ;;  %v8435_v20 = vld [vmem:[%s11740_s5 + $0x284] ss:$8 sps:$4 sm:$0xff]   ;;  %v8433_v23 = vld [vmem:[%s11740_s5 + $0x280] ss:$8 sps:$4 sm:$0xff]  }
 0x110   : > { %1305 = vmatprep.subr.bf16.mxu0 %v8375_v19  ;;  %v8430_v19 = vld [vmem:[%s11740_s5 + $0x270] ss:$8 sps:$4 sm:$0xff]  }
 0x113   : > { %1306 = vmatpush1.bf16.msra.mxu0 %v8373_v24  ;;  %v9513_v41 = vpop.f32.mrb[12].mxu1  ;;  %v8438_v24 = vld [vmem:[%s11740_s5 + $0x294] ss:$8 sps:$4 sm:$0xff]  }
 0x114   : > { %1307 = vmatprep.subr.bf16.mxu0 %v8378_v26  ;;  %v9518_v43 = vpop.f32.mrb[13].mxu1  ;;  %v8441_v26 = vld [vmem:[%s11740_s5 + $0x2a4] ss:$8 sps:$4 sm:$0xff]  }
 0x115   : > { %v9523_v45 = vpop.f32.mrb[14].mxu1 }
 0x116   : > { %v1426_v46 = vpack.c.bf16 %v9523_v45, %v9513_v41  ;;  %v9527_v47 = vpop.f32.mrb[15].mxu1  ;;  %v8469_v41 = vld [vmem:[%s11740_s5 + $0x340] ss:$8 sps:$4 sm:$0xff]   ;;  %v8474_v45 = vld [vmem:[%s11740_s5 + $0x354] ss:$8 sps:$4 sm:$0xff]  }
 0x117   : > { %1308 = vmatpush1.bf16.msra.mxu0 %v8376_v27  ;;  %v1427_v48 = vpack.c.bf16 %v9527_v47, %v9518_v43  ;;  %v8439_v27 = vld [vmem:[%s11740_s5 + $0x2a0] ss:$8 sps:$4 sm:$0xff]   ;;  %v8471_v43 = vld [vmem:[%s11740_s5 + $0x344] ss:$8 sps:$4 sm:$0xff]  }
 0x118   : > { %1309 = vmatprep.subr.bf16.mxu0 %v8381_v28  ;;  %v8444_v28 = vld [vmem:[%s11740_s5 + $0x2b4] ss:$8 sps:$4 sm:$0xff]   ;;  %v8477_v47 = vld [vmem:[%s11740_s5 + $0x364] ss:$8 sps:$4 sm:$0xff]  }
 0x11b   : > { %1310 = vmatpush1.bf16.msra.mxu0 %v8379_v29  ;;  %v9540_v53 = vpop.f32.mrb[16].mxu1  ;;  %v8442_v29 = vld [vmem:[%s11740_s5 + $0x2b0] ss:$8 sps:$4 sm:$0xff]  }
 0x11c   : > { %1311 = vmatprep.subr.bf16.mxu0 %v8384_v30  ;;  %v9545_v56 = vpop.f32.mrb[17].mxu1  ;;  %v8447_v30 = vld [vmem:[%s11740_s5 + $0x2c4] ss:$8 sps:$4 sm:$0xff]  }
 0x11d   : > { %v9547_v57 = vpop.f32.mrb[18].mxu1 }
 0x11e   : > { %v1756_v59 = vpack.c.bf16 %v9547_v57, %v9540_v53  ;;  %v9551_v60 = vpop.f32.mrb[19].mxu1 }
 0x11f   : > { %1312 = vmatpush1.bf16.msra.mxu0 %v8382_v31  ;;  %v1757_v62 = vpack.c.bf16 %v9551_v60, %v9545_v56  ;;  %v8445_v31 = vld [vmem:[%s11740_s5 + $0x2c0] ss:$8 sps:$4 sm:$0xff]   ;;  %v8486_v56 = vld [vmem:[%s11740_s5 + $0x394] ss:$8 sps:$4 sm:$0xff]   ;;  %v8484_v60 = vld [vmem:[%s11740_s5 + $0x390] ss:$8 sps:$4 sm:$0xff]  }
 0x120   : > { %1313 = vmatprep.subr.bf16.mxu0 %v8387_v32  ;;  %v8450_v32 = vld [vmem:[%s11740_s5 + $0x2d4] ss:$8 sps:$4 sm:$0xff]  }
 0x123   : > { %1314 = vmatpush1.bf16.msra.mxu0 %v8385_v33  ;;  %v9564_v2 = vpop.f32.mrb[20].mxu1  ;;  %v8448_v33 = vld [vmem:[%s11740_s5 + $0x2d0] ss:$8 sps:$4 sm:$0xff]  }
 0x124   : > { %1315 = vmatprep.subr.bf16.mxu0 %v8390_v34  ;;  %v9569_v5 = vpop.f32.mrb[21].mxu1  ;;  %v8453_v34 = vld [vmem:[%s11740_s5 + $0x2e4] ss:$8 sps:$4 sm:$0xff]  }
 0x125   : > { %v9571_v7 = vpop.f32.mrb[22].mxu1 }
 0x126   : > { %v1758_v9 = vpack.c.bf16 %v9571_v7, %v9564_v2  ;;  %v9578_v10 = vpop.f32.mrb[23].mxu1 }
 0x127   : > { %1316 = vmatpush1.bf16.msra.mxu0 %v8388_v35  ;;  %v1759_v14 = vpack.c.bf16 %v9578_v10, %v9569_v5  ;;  %v8451_v35 = vld [vmem:[%s11740_s5 + $0x2e0] ss:$8 sps:$4 sm:$0xff]  }
 0x128   : > { %1317 = vmatprep.subr.bf16.mxu0 %v8393_v36  ;;  %v8456_v36 = vld [vmem:[%s11740_s5 + $0x2f4] ss:$8 sps:$4 sm:$0xff]  }
 0x12b   : > { %1318 = vmatpush1.bf16.msra.mxu0 %v8391_v37  ;;  %v8454_v37 = vld [vmem:[%s11740_s5 + $0x2f0] ss:$8 sps:$4 sm:$0xff]  }
 0x12c   : > { %1319 = vmatprep.subr.bf16.mxu0 %v8396_v38  ;;  %v8459_v38 = vld [vmem:[%s11740_s5 + $0x304] ss:$8 sps:$4 sm:$0xff]  }
 0x12f   : > { %1320 = vmatpush1.bf16.msra.mxu0 %v8394_v39  ;;  %v8457_v39 = vld [vmem:[%s11740_s5 + $0x300] ss:$8 sps:$4 sm:$0xff]  }
 0x130   : > { %1321 = vmatprep.subr.bf16.mxu0 %v8399_v40  ;;  %v8462_v40 = vld [vmem:[%s11740_s5 + $0x314] ss:$8 sps:$4 sm:$0xff]  }
 0x133   : > { %1322 = vmatpush1.bf16.msra.mxu0 %v8397_v42  ;;  %v8460_v42 = vld [vmem:[%s11740_s5 + $0x310] ss:$8 sps:$4 sm:$0xff]  }
 0x134   : > { %1323 = vmatprep.subr.bf16.mxu0 %v8402_v44  ;;  %v8465_v44 = vld [vmem:[%s11740_s5 + $0x324] ss:$8 sps:$4 sm:$0xff]  }
 0x137   : > { %1324 = vmatpush1.bf16.msra.mxu0 %v8400_v49  ;;  %v8480_v49 = vld [vmem:[%s11740_s5 + $0x374] ss:$8 sps:$4 sm:$0xff]  }
 0x138   : > { %1325 = vmatprep.subr.bf16.mxu0 %v8405_v50  ;;  %v8478_v50 = vld [vmem:[%s11740_s5 + $0x370] ss:$8 sps:$4 sm:$0xff]  }
 0x13b   : > { %1326 = vmatpush1.bf16.msra.mxu0 %v8403_v52  ;;  %v8483_v52 = vld [vmem:[%s11740_s5 + $0x384] ss:$8 sps:$4 sm:$0xff]  }
 0x13c   : > { %1327 = vmatprep.subr.bf16.mxu0 %v8408_v54  ;;  %v8481_v54 = vld [vmem:[%s11740_s5 + $0x380] ss:$8 sps:$4 sm:$0xff]  }
 0x13f   : > { %1328 = vmatpush1.bf16.msra.mxu0 %v8406_v61  ;;  %v8489_v61 = vld [vmem:[%s11740_s5 + $0x3a4] ss:$8 sps:$4 sm:$0xff]  }
 0x140   : > { %1621 = vmatprep.subr.bf16.mxu0 %v8411_v63  ;;  %v8492_v63 = vld [vmem:[%s11740_s5 + $0x3b4] ss:$8 sps:$4 sm:$0xff]  }
 0x142   : > { %1330 = vmatmul.mubr.bf16.vlgmr.msra.gmra.mrb[8].mxu0 %v777_v58  ;;  %v8420_v58 = vld [vmem:[%s11740_s5 + $0x234] ss:$8 sps:$4 sm:$0xff]  }
 0x143   : > { %1622 = vmatpush1.bf16.msra.mxu0 %v8409_v1  ;;  %1339 = vmatprep.mubr.bf16.mxu0 %v780_v15  ;;  %v8429_v15 = vld [vmem:[%s11740_s5 + $0x264] ss:$8 sps:$4 sm:$0xff]   ;;  %v8490_v1 = vld [vmem:[%s11740_s5 + $0x3b0] ss:$8 sps:$4 sm:$0xff]  }
 0x144   : > { %1623 = vmatprep.subr.bf16.mxu0 %v8414_v4  ;;  %v8495_v4 = vld [vmem:[%s11740_s5 + $0x3c4] ss:$8 sps:$4 sm:$0xff]  }
 0x147   : > { %1624 = vmatpush1.bf16.msra.mxu0 %v8412_v13  ;;  %v8493_v13 = vld [vmem:[%s11740_s5 + $0x3c0] ss:$8 sps:$4 sm:$0xff]  }
 0x148   : > { %1625 = vmatprep.subr.bf16.mxu0 %v8417_v51  ;;  %v8498_v51 = vld [vmem:[%s11740_s5 + $0x3d4] ss:$8 sps:$4 sm:$0xff]  }
 0x14a   : > { %1340 = vmatmul.mubr.bf16.gmra.mrb[12].mxu0 %v779_v11  ;;  %v8424_v11 = vld [vmem:[%s11740_s5 + $0x250] ss:$8 sps:$4 sm:$0xff]  }
 0x14b   : > { %1626 = vmatpush1.bf16.msra.mxu0 %v8415_v55  ;;  %1653 = vmatprep.mubr.bf16.mxu0 %v1425_v25  ;;  %v8436_v25 = vld [vmem:[%s11740_s5 + $0x290] ss:$8 sps:$4 sm:$0xff]  }
 0x14c   : > { %1627 = vmatprep.subr.bf16.mxu0 %v8420_v58  ;;  %v8496_v55 = vld [vmem:[%s11740_s5 + $0x3d0] ss:$8 sps:$4 sm:$0xff]   ;;  %v8501_v58 = vld [vmem:[%s11740_s5 + $0x3e4] ss:$8 sps:$4 sm:$0xff]  }
 0x14f   : > { %1628 = vmatpush1.bf16.msra.mxu0 %v8418_v6  ;;  %v8499_v6 = vld [vmem:[%s11740_s5 + $0x3e0] ss:$8 sps:$4 sm:$0xff]  }
 0x150   : > { %1629 = vmatprep.subr.bf16.mxu0 %v8423_v12  ;;  %v8504_v12 = vld [vmem:[%s11740_s5 + $0x3f4] ss:$8 sps:$4 sm:$0xff]  }
 0x153   : > { %1630 = vmatpush1.bf16.msra.mxu0 %v8421_v3  ;;  %v8502_v3 = vld [vmem:[%s11740_s5 + $0x3f0] ss:$8 sps:$4 sm:$0xff]  }
 0x154   : > { %1631 = vmatprep.subr.bf16.mxu0 %v8426_v8  ;;  %v2016_v8 = vlaneseq }
 0x157   : > { %1632 = vmatpush1.bf16.msra.mxu0 %v8424_v11  ;;  %v2017_v11 = vshrl.u32 %v2016_v8, 7  ;;  %v8536_v8 = vld [vmem:[%s11744_s24 + $0x194] ss:$8 sps:$4 sm:$0xff]  }
 0x158   : > { %1633 = vmatprep.subr.bf16.mxu0 %v8429_v15 }
 0x159   : > { %v9795_v15 = vsub.s32 0, %v2017_v11 }
 0x15b   : > { %1634 = vmatpush1.bf16.msra.mxu0 %v8427_v16  ;;  %v2014_v16 = vld [vmem:[%s11742_s29] sm:$0x3] }
 0x15c   : > { %1635 = vmatprep.subr.bf16.mxu0 %v8432_v17  ;;  %v2022_v17 = vsub.s32 1, %v2017_v11  ;;  %v2019_v53 = vrot.slane %v2014_v16, %v9795_v15  ;;  %v8534_v11 = vld [vmem:[%s11744_s24 + $0x190] ss:$8 sps:$4 sm:$0xff]  }
 0x15e   : > { %v2023_v57 = vrot.slane %v2014_v16, %v2022_v17  ;;  %v8539_v16 = vld [vmem:[%s11744_s24 + $0x1a4] ss:$8 sps:$4 sm:$0xff]   ;;  %v8537_v17 = vld [vmem:[%s11744_s24 + $0x1a0] ss:$8 sps:$4 sm:$0xff]  }
 0x15f   : > { %1636 = vmatpush1.bf16.msra.mxu0 %v8430_v19 }
 0x160   : > { %1637 = vmatprep.subr.bf16.mxu0 %v8435_v20 }
 0x163   : > { %1638 = vmatpush1.bf16.msra.mxu0 %v8433_v23 }
 0x164   : > { %1639 = vmatprep.subr.bf16.mxu0 %v8438_v24 }
 0x167   : > { %1640 = vmatpush1.bf16.msra.mxu0 %v8436_v25 }
 0x168   : > { %1641 = vmatprep.subr.bf16.mxu0 %v8441_v26 }
 0x16b   : > { %1642 = vmatpush1.bf16.msra.mxu0 %v8439_v27 }
 0x16c   : > { %1643 = vmatprep.subr.bf16.mxu0 %v8444_v28 }
 0x16f   : > { %1644 = vmatpush1.bf16.msra.mxu0 %v8442_v29 }
 0x170   : > { %1645 = vmatprep.subr.bf16.mxu0 %v8447_v30 }
 0x173   : > { %1646 = vmatpush1.bf16.msra.mxu0 %v8445_v31 }
 0x174   : > { %1647 = vmatprep.subr.bf16.mxu0 %v8450_v32 }
 0x177   : > { %1648 = vmatpush1.bf16.msra.mxu0 %v8448_v33 }
 0x178   : > { %1649 = vmatprep.subr.bf16.mxu0 %v8453_v34 }
 0x17b   : > { %1650 = vmatpush1.bf16.msra.mxu0 %v8451_v35 }
 0x17c   : > { %1651 = vmatprep.subr.bf16.mxu0 %v8456_v36 }
 0x17f   : > { %1652 = vmatpush1.bf16.msra.mxu0 %v8454_v37 }
 0x180   : > { %1953 = vmatprep.subr.bf16.mxu0 %v8459_v38 }
 0x182   : > { %1654 = vmatmul.mubr.bf16.vlgmr.msra.gmra.mrb[8].mxu0 %v1424_v22  ;;  %v8466_v22 = vld [vmem:[%s11740_s5 + $0x330] ss:$8 sps:$4 sm:$0xff]  }
 0x183   : > { %1954 = vmatpush1.bf16.msra.mxu0 %v8457_v39  ;;  %1663 = vmatprep.mubr.bf16.mxu0 %v1427_v48  ;;  %v8475_v48 = vld [vmem:[%s11740_s5 + $0x360] ss:$8 sps:$4 sm:$0xff]  }
 0x184   : > { %1955 = vmatprep.subr.bf16.mxu0 %v8462_v40 }
 0x187   : > { %1956 = vmatpush1.bf16.msra.mxu0 %v8460_v42 }
 0x188   : > { %1957 = vmatprep.subr.bf16.mxu0 %v8465_v44 }
 0x18a   : > { %1664 = vmatmul.mubr.bf16.gmra.mrb[12].mxu0 %v1426_v46  ;;  %v8472_v46 = vld [vmem:[%s11740_s5 + $0x350] ss:$8 sps:$4 sm:$0xff]  }
 0x18b   : > { %1958 = vmatpush1.bf16.msra.mxu0 %v8463_v18  ;;  %1985 = vmatprep.mubr.bf16.mxu0 %v1757_v62  ;;  %v8487_v62 = vld [vmem:[%s11740_s5 + $0x3a0] ss:$8 sps:$4 sm:$0xff]  }
 0x18c   : > { %1959 = vmatprep.subr.bf16.mxu0 %v8468_v21 }
 0x18f   : > { %1960 = vmatpush1.bf16.msra.mxu0 %v8466_v22 }
 0x190   : > { %1961 = vmatprep.subr.bf16.mxu0 %v8471_v43 }
 0x193   : > { %1962 = vmatpush1.bf16.msra.mxu0 %v8469_v41 }
 0x194   : > { %1963 = vmatprep.subr.bf16.mxu0 %v8474_v45 }
 0x197   : > { %1964 = vmatpush1.bf16.msra.mxu0 %v8472_v46 }
 0x198   : > { %1965 = vmatprep.subr.bf16.mxu0 %v8477_v47  ;;  %v8505_v47 = vld [vmem:[%s11743_s30] sm:$0xff]  }
 0x19b   : > { %1966 = vmatpush1.bf16.msra.mxu0 %v8475_v48  ;;  %v8509_v48 = vld [vmem:[%s11744_s24 + $0x104] ss:$8 sps:$4 sm:$0xff]  }
 0x19c   : > { %1967 = vmatprep.subr.bf16.mxu0 %v8480_v49  ;;  %v8506_v49 = vld [vmem:[%s11743_s30 + $0x8] sm:$0xff]  }
 0x19f   : > { %1968 = vmatpush1.bf16.msra.mxu0 %v8478_v50  ;;  %v8507_v50 = vld [vmem:[%s11744_s24 + $0x100] ss:$8 sps:$4 sm:$0xff]  }
 0x1a0   : > { %1969 = vmatprep.subr.bf16.mxu0 %v8483_v52  ;;  %v8512_v52 = vld [vmem:[%s11744_s24 + $0x114] ss:$8 sps:$4 sm:$0xff]  }
 0x1a3   : > { %1970 = vmatpush1.bf16.msra.mxu0 %v8481_v54  ;;  %v8510_v54 = vld [vmem:[%s11744_s24 + $0x110] ss:$8 sps:$4 sm:$0xff]  }
 0x1a4   : > { %1971 = vmatprep.subr.bf16.mxu0 %v8486_v56  ;;  %v8515_v56 = vld [vmem:[%s11744_s24 + $0x124] ss:$8 sps:$4 sm:$0xff]  }
 0x1a7   : > { %1972 = vmatpush1.bf16.msra.mxu0 %v8484_v60  ;;  %v8513_v60 = vld [vmem:[%s11744_s24 + $0x120] ss:$8 sps:$4 sm:$0xff]  }
 0x1a8   : > { %1973 = vmatprep.subr.bf16.mxu0 %v8489_v61  ;;  %v8518_v61 = vld [vmem:[%s11744_s24 + $0x134] ss:$8 sps:$4 sm:$0xff]  }
 0x1ab   : > { %1974 = vmatpush1.bf16.msra.mxu0 %v8487_v62  ;;  %v8516_v62 = vld [vmem:[%s11744_s24 + $0x130] ss:$8 sps:$4 sm:$0xff]  }
 0x1ac   : > { %1975 = vmatprep.subr.bf16.mxu0 %v8492_v63  ;;  %v8521_v63 = vld [vmem:[%s11744_s24 + $0x144] ss:$8 sps:$4 sm:$0xff]  }
 0x1af   : > { %1976 = vmatpush1.bf16.msra.mxu0 %v8490_v1  ;;  %v8519_v1 = vld [vmem:[%s11744_s24 + $0x140] ss:$8 sps:$4 sm:$0xff]  }
 0x1b0   : > { %1977 = vmatprep.subr.bf16.mxu0 %v8495_v4  ;;  %v8524_v4 = vld [vmem:[%s11744_s24 + $0x154] ss:$8 sps:$4 sm:$0xff]  }
 0x1b3   : > { %1978 = vmatpush1.bf16.msra.mxu0 %v8493_v13  ;;  %v8522_v13 = vld [vmem:[%s11744_s24 + $0x150] ss:$8 sps:$4 sm:$0xff]  }
 0x1b4   : > { %1979 = vmatprep.subr.bf16.mxu0 %v8498_v51  ;;  %v8527_v51 = vld [vmem:[%s11744_s24 + $0x164] ss:$8 sps:$4 sm:$0xff]  }
 0x1b7   : > { %1980 = vmatpush1.bf16.msra.mxu0 %v8496_v55  ;;  %v8525_v55 = vld [vmem:[%s11744_s24 + $0x160] ss:$8 sps:$4 sm:$0xff]  }
 0x1b8   : > { %1981 = vmatprep.subr.bf16.mxu0 %v8501_v58  ;;  %v8530_v58 = vld [vmem:[%s11744_s24 + $0x174] ss:$8 sps:$4 sm:$0xff]  }
 0x1bb   : > { %1982 = vmatpush1.bf16.msra.mxu0 %v8499_v6  ;;  %v8528_v6 = vld [vmem:[%s11744_s24 + $0x170] ss:$8 sps:$4 sm:$0xff]  }
 0x1bc   : > { %1983 = vmatprep.subr.bf16.mxu0 %v8504_v12  ;;  %v8533_v12 = vld [vmem:[%s11744_s24 + $0x184] ss:$8 sps:$4 sm:$0xff]  }
 0x1bf   : > { %1984 = vmatpush1.bf16.msra.mxu0 %v8502_v3  ;;  %v8531_v3 = vld [vmem:[%s11744_s24 + $0x180] ss:$8 sps:$4 sm:$0xff]  }
 0x1c2   : > { %1986 = vmatmul.mubr.bf16.vlgmr.msra.gmra.mrb[8].mxu0 %v1756_v59 }
 0x1c3   : > { %1995 = vmatprep.mubr.bf16.mxu0 %v1759_v14 }
 0x1ca   : > { %1996 = vmatmul.mubr.bf16.gmra.mrb[12].mxu0 %v1758_v9 }
 0x295   : > { %v1987_v59 = vpop.f32.mrb[8].mxu0 }
 0x296   : > { %v2026_v19 = vadd.f32 %v2019_v53, %v1987_v59  ;;  %v1989_v5 = vpop.f32.mrb[9].mxu0  ;;  %v8545_v59 = vld [vmem:[%s11744_s24 + $0x1c4] ss:$8 sps:$4 sm:$0xff]  }
 0x297   : > { %v2027_v10 = vadd.f32 %v2023_v57, %v1989_v5  ;;  %v1991_v14 = vpop.f32.mrb[10].mxu0  ;;  %v8548_v5 = vld [vmem:[%s11744_s24 + $0x1d4] ss:$8 sps:$4 sm:$0xff]  }
 0x298   : > { %v2042_v20 = vmul.f32 0.2, %v2026_v19  ;;  %v2028_v2 = vadd.f32 %v2019_v53, %v1991_v14  ;;  %v1993_v7 = vpop.f32.mrb[11].mxu0  ;;  %vm2034_vm1 = vcmp.gt.f32.partialorder %v2026_v19, 0.0  ;;  %v8549_v14 = vld [vmem:[%s11744_s24 + $0x1e0] ss:$8 sps:$4 sm:$0xff]  }
 0x299   : > { %v2043_v9 = vmul.f32 0.2, %v2027_v10  ;;  %v2029_v23 = vadd.f32 %v2023_v57, %v1993_v7  ;;  %vm2035_vm2 = vcmp.gt.f32.partialorder %v2027_v10, 0.0  ;;  %v8552_v7 = vld [vmem:[%s11744_s24 + $0x1f0] ss:$8 sps:$4 sm:$0xff]  }
 0x29a   : > { %vm2036_vm3 = vcmp.gt.f32.partialorder %v2028_v2, 0.0  ;;  %v2044_v24 = vmul.f32 0.2, %v2028_v2  ;;  %v2050_v26 = vsel %vm2034_vm1, %v2026_v19, %v2042_v20  ;;  %v8543_v19 = vld [vmem:[%s11744_s24 + $0x1c0] ss:$8 sps:$4 sm:$0xff]  }
 0x29b   : > { %vm2037_vm4 = vcmp.gt.f32.partialorder %v2029_v23, 0.0  ;;  %v2045_v25 = vmul.f32 0.2, %v2029_v23  ;;  %v2051_v28 = vsel %vm2035_vm2, %v2027_v10, %v2043_v9  ;;  %v8546_v10 = vld [vmem:[%s11744_s24 + $0x1d0] ss:$8 sps:$4 sm:$0xff]   ;;  %vm5173_vm2 = vcmask 1043456  }
 0x29c   : > { %v2052_v27 = vsel %vm2036_vm3, %v2028_v2, %v2044_v24  ;;  %v8551_v20 = vld [vmem:[%s11744_s24 + $0x1e4] ss:$8 sps:$4 sm:$0xff]   ;;  %v8554_v2 = vld [vmem:[%s11744_s24 + $0x1f4] ss:$8 sps:$4 sm:$0xff]   ;;  %vm5169_vm3 = vcmask 64512  }
 0x29d   : > { %v9801_v29 = vpack.c.bf16 %v2052_v27, %v2050_v26  ;;  %v2053_v30 = vsel %vm2037_vm4, %v2029_v23, %v2045_v25  ;;  %v1997_v31 = vpop.f32.mrb[12].mxu0  ;;  %v8557_v9 = vld [vmem:[%s11744_s24 + $0x4] ss:$8 sps:$4 sm:$0xff]  }
 0x29e   : > { %v9803_v32 = vpack.c.bf16 %v2053_v30, %v2051_v28  ;;  %v2030_v33 = vadd.f32 %v2019_v53, %v1997_v31  ;;  %v1999_v34 = vpop.f32.mrb[13].mxu0 }
 0x29f   : > { %v2031_v35 = vadd.f32 %v2023_v57, %v1999_v34  ;;  %v2001_v36 = vpop.f32.mrb[14].mxu0 }
 0x2a0   : > { %v2046_v37 = vmul.f32 0.2, %v2030_v33  ;;  %v2032_v38 = vadd.f32 %v2019_v53, %v2001_v36  ;;  %v2003_v39 = vpop.f32.mrb[15].mxu0  ;;  %2073 = vmatprep.subr.bf16.mxu1 %v9803_v32  ;;  %vm2038_vm5 = vcmp.gt.f32.partialorder %v2030_v33, 0.0  ;;  %v8542_v53 = vld [vmem:[%s11744_s24 + $0x1b4] ss:$8 sps:$4 sm:$0xff]  }
 0x2a1   : > { %v2047_v40 = vmul.f32 0.2, %v2031_v35  ;;  %v2033_v42 = vadd.f32 %v2023_v57, %v2003_v39  ;;  %2074 = vmatpush1.bf16.msra.mxu1 %v9801_v29  ;;  %vm2039_vm6 = vcmp.gt.f32.partialorder %v2031_v35, 0.0  ;;  %v8540_v57 = vld [vmem:[%s11744_s24 + $0x1b0] ss:$8 sps:$4 sm:$0xff]  }
 0x2a2   : > { %vm2040_vm7 = vcmp.gt.f32.partialorder %v2032_v38, 0.0  ;;  %v2048_v44 = vmul.f32 0.2, %v2032_v38  ;;  %v2054_v21 = vsel %vm2038_vm5, %v2030_v33, %v2046_v37  ;;  %v8555_v37 = vld [vmem:[%s11744_s24] ss:$8 sps:$4 sm:$0xff]   ;;  %vm6736_vm5 = vcmask 0  }
 0x2a3   : > { %vm2041_vm8 = vcmp.gt.f32.partialorder %v2033_v42, 0.0  ;;  %v2049_v18 = vmul.f32 0.2, %v2033_v42  ;;  %v2055_v43 = vsel %vm2039_vm6, %v2031_v35, %v2047_v40  ;;  %v8558_v39 = vld [vmem:[%s11744_s24 + $0x10] ss:$8 sps:$4 sm:$0xff]  }
 0x2a4   : > { %v2056_v22 = vsel %vm2040_vm7, %v2032_v38, %v2048_v44  ;;  %v8560_v38 = vld [vmem:[%s11744_s24 + $0x14] ss:$8 sps:$4 sm:$0xff]   ;;  %v8563_v40 = vld [vmem:[%s11744_s24 + $0x24] ss:$8 sps:$4 sm:$0xff]  }
 0x2a5   : > { %v9807_v41 = vpack.c.bf16 %v2056_v22, %v2054_v21  ;;  %v2057_v45 = vsel %vm2041_vm8, %v2033_v42, %v2049_v18  ;;  %v8561_v42 = vld [vmem:[%s11744_s24 + $0x20] ss:$8 sps:$4 sm:$0xff]   ;;  %v8566_v44 = vld [vmem:[%s11744_s24 + $0x34] ss:$8 sps:$4 sm:$0xff]   ;;  %v8564_v18 = vld [vmem:[%s11744_s24 + $0x30] ss:$8 sps:$4 sm:$0xff]  }
 0x2a6   : > { %v9809_v46 = vpack.c.bf16 %v2057_v45, %v2055_v43  ;;  %v8569_v21 = vld [vmem:[%s11744_s24 + $0x44] ss:$8 sps:$4 sm:$0xff]   ;;  %v8567_v22 = vld [vmem:[%s11744_s24 + $0x40] ss:$8 sps:$4 sm:$0xff]   ;;  %v8572_v43 = vld [vmem:[%s11744_s24 + $0x54] ss:$8 sps:$4 sm:$0xff]  }
 0x2a7   : > { %v8570_v45 = vld [vmem:[%s11744_s24 + $0x50] ss:$8 sps:$4 sm:$0xff]  }
 0x2a8   : > { %2075 = vmatprep.subr.bf16.mxu1 %v9809_v46 }
 0x2a9   : > { %2076 = vmatpush1.bf16.msra.mxu1 %v9807_v41 }
 0x2aa   : > { %2161 = vmatprep.subr.bf16.mxu1 %v9803_v32 }
 0x2ac   : > { %7053 = vmatmul.mubr.msk.bf16.vlgmr.msra.gmra.mrb[24].mxu1 %vm2069_vm9, %v8505_v47  ;;  %v8575_v47 = vld [vmem:[%s11744_s24 + $0x64] ss:$8 sps:$4 sm:$0xff]  }
 0x2ad   : > { %2162 = vmatpush1.bf16.msra.mxu1 %v9801_v29  ;;  %2193 = vmatprep.mubr.bf16.mxu1 %v9100_v0 }
 0x2ae   : > { %2163 = vmatprep.subr.bf16.mxu1 %v9809_v46 }
 0x2b1   : > { %2164 = vmatpush1.bf16.msra.mxu1 %v9807_v41 }
 0x2b2   : > { %2399 = vmatprep.subr.bf16.mxu1 %v8509_v48  ;;  %v8573_v48 = vld [vmem:[%s11744_s24 + $0x60] ss:$8 sps:$4 sm:$0xff]  }
 0x2b4   : > { %7057 = vmatmul.mubr.msk.bf16.vlgmr.msra.gmra.mrb[28].mxu1 %vm2069_vm9, %v8506_v49  ;;  %v8578_v49 = vld [vmem:[%s11744_s24 + $0x74] ss:$8 sps:$4 sm:$0xff]  }
 0x2b5   : > { %2400 = vmatpush1.bf16.msra.mxu1 %v8507_v50  ;;  %v8576_v50 = vld [vmem:[%s11744_s24 + $0x70] ss:$8 sps:$4 sm:$0xff]  }
 0x2b6   : > { %2401 = vmatprep.subr.bf16.mxu1 %v8512_v52  ;;  %v8581_v52 = vld [vmem:[%s11744_s24 + $0x84] ss:$8 sps:$4 sm:$0xff]  }
 0x2b9   : > { %2402 = vmatpush1.bf16.msra.mxu1 %v8510_v54  ;;  %v8579_v54 = vld [vmem:[%s11744_s24 + $0x80] ss:$8 sps:$4 sm:$0xff]  }
 0x2ba   : > { %2403 = vmatprep.subr.bf16.mxu1 %v8515_v56  ;;  %v8584_v56 = vld [vmem:[%s11744_s24 + $0x94] ss:$8 sps:$4 sm:$0xff]  }
 0x2bd   : > { %2404 = vmatpush1.bf16.msra.mxu1 %v8513_v60  ;;  %v8582_v60 = vld [vmem:[%s11744_s24 + $0x90] ss:$8 sps:$4 sm:$0xff]  }
 0x2be   : > { %2405 = vmatprep.subr.bf16.mxu1 %v8518_v61  ;;  %v8587_v61 = vld [vmem:[%s11744_s24 + $0xa4] ss:$8 sps:$4 sm:$0xff]  }
 0x2c1   : > { %2406 = vmatpush1.bf16.msra.mxu1 %v8516_v62  ;;  %v8585_v62 = vld [vmem:[%s11744_s24 + $0xa0] ss:$8 sps:$4 sm:$0xff]  }
 0x2c2   : > { %2407 = vmatprep.subr.bf16.mxu1 %v8521_v63  ;;  %v8590_v63 = vld [vmem:[%s11744_s24 + $0xb4] ss:$8 sps:$4 sm:$0xff]  }
 0x2c5   : > { %2408 = vmatpush1.bf16.msra.mxu1 %v8519_v1  ;;  %v8588_v1 = vld [vmem:[%s11744_s24 + $0xb0] ss:$8 sps:$4 sm:$0xff]  }
 0x2c6   : > { %2409 = vmatprep.subr.bf16.mxu1 %v8524_v4  ;;  %v8593_v4 = vld [vmem:[%s11744_s24 + $0xc4] ss:$8 sps:$4 sm:$0xff]  }
 0x2c9   : > { %2410 = vmatpush1.bf16.msra.mxu1 %v8522_v13  ;;  %v8591_v13 = vld [vmem:[%s11744_s24 + $0xc0] ss:$8 sps:$4 sm:$0xff]  }
 0x2ca   : > { %2411 = vmatprep.subr.bf16.mxu1 %v8527_v51  ;;  %v8596_v51 = vld [vmem:[%s11744_s24 + $0xd4] ss:$8 sps:$4 sm:$0xff]  }
 0x2cd   : > { %2412 = vmatpush1.bf16.msra.mxu1 %v8525_v55  ;;  %v8594_v55 = vld [vmem:[%s11744_s24 + $0xd0] ss:$8 sps:$4 sm:$0xff]  }
 0x2ce   : > { %2413 = vmatprep.subr.bf16.mxu1 %v8530_v58  ;;  %v8599_v58 = vld [vmem:[%s11744_s24 + $0xe4] ss:$8 sps:$4 sm:$0xff]  }
 0x2d1   : > { %2414 = vmatpush1.bf16.msra.mxu1 %v8528_v6  ;;  %v8597_v6 = vld [vmem:[%s11744_s24 + $0xe0] ss:$8 sps:$4 sm:$0xff]  }
 0x2d2   : > { %2415 = vmatprep.subr.bf16.mxu1 %v8533_v12  ;;  %v8602_v12 = vld [vmem:[%s11744_s24 + $0xf4] ss:$8 sps:$4 sm:$0xff]  }
 0x2d5   : > { %2416 = vmatpush1.bf16.msra.mxu1 %v8531_v3  ;;  %v8600_v3 = vld [vmem:[%s11744_s24 + $0xf0] ss:$8 sps:$4 sm:$0xff]  }
 0x2d6   : > { %2417 = vmatprep.subr.bf16.mxu1 %v8536_v8  ;;  %v8606_v8 = vld [vmem:[%s11744_s24 + $0x204] ss:$8 sps:$4 sm:$0xff]  }
 0x2d9   : > { %2418 = vmatpush1.bf16.msra.mxu1 %v8534_v11  ;;  %v8603_v11 = vld [vmem:[%s11743_s30 + $0x10] sm:$0xff]  }
 0x2da   : > { %2419 = vmatprep.subr.bf16.mxu1 %v8539_v16  ;;  %v8604_v16 = vld [vmem:[%s11744_s24 + $0x200] ss:$8 sps:$4 sm:$0xff]  }
 0x2dd   : > { %2420 = vmatpush1.bf16.msra.mxu1 %v8537_v17  ;;  %v8609_v17 = vld [vmem:[%s11744_s24 + $0x214] ss:$8 sps:$4 sm:$0xff]  }
 0x2de   : > { %2421 = vmatprep.subr.bf16.mxu1 %v8542_v53  ;;  %v8607_v53 = vld [vmem:[%s11744_s24 + $0x210] ss:$8 sps:$4 sm:$0xff]  }
 0x2e1   : > { %2422 = vmatpush1.bf16.msra.mxu1 %v8540_v57  ;;  %v8612_v57 = vld [vmem:[%s11744_s24 + $0x224] ss:$8 sps:$4 sm:$0xff]  }
 0x2e2   : > { %2423 = vmatprep.subr.bf16.mxu1 %v8545_v59  ;;  %v8610_v59 = vld [vmem:[%s11744_s24 + $0x220] ss:$8 sps:$4 sm:$0xff]  }
 0x2e5   : > { %2424 = vmatpush1.bf16.msra.mxu1 %v8543_v19  ;;  %v8615_v19 = vld [vmem:[%s11744_s24 + $0x234] ss:$8 sps:$4 sm:$0xff]  }
 0x2e6   : > { %2425 = vmatprep.subr.bf16.mxu1 %v8548_v5  ;;  %v8613_v5 = vld [vmem:[%s11744_s24 + $0x230] ss:$8 sps:$4 sm:$0xff]  }
 0x2e9   : > { %2426 = vmatpush1.bf16.msra.mxu1 %v8546_v10  ;;  %v8618_v10 = vld [vmem:[%s11744_s24 + $0x244] ss:$8 sps:$4 sm:$0xff]  }
 0x2ea   : > { %2427 = vmatprep.subr.bf16.mxu1 %v8551_v20  ;;  %v8621_v20 = vld [vmem:[%s11744_s24 + $0x254] ss:$8 sps:$4 sm:$0xff]  }
 0x2ed   : > { %2428 = vmatpush1.bf16.msra.mxu1 %v8549_v14  ;;  %v8616_v14 = vld [vmem:[%s11744_s24 + $0x240] ss:$8 sps:$4 sm:$0xff]  }
 0x2ee   : > { %2429 = vmatprep.subr.bf16.mxu1 %v8554_v2  ;;  %v8619_v2 = vld [vmem:[%s11744_s24 + $0x250] ss:$8 sps:$4 sm:$0xff]  }
 0x2f1   : > { %2430 = vmatpush1.bf16.msra.mxu1 %v8552_v7  ;;  %v8624_v7 = vld [vmem:[%s11744_s24 + $0x264] ss:$8 sps:$4 sm:$0xff]  }
 0x2f2   : > { %2602 = vmatprep.subr.bf16.mxu1 %v8557_v9  ;;  %v8622_v9 = vld [vmem:[%s11744_s24 + $0x260] ss:$8 sps:$4 sm:$0xff]  }
 0x37f   : > { %v9925_v23 = vpop.f32.mrb[24].mxu1 }
 0x380   : > { %v2109_v24 = vpop.f32.mrb[25].mxu1 }
 0x381   : > { %v9927_v25 = vpop.f32.mrb[26].mxu1 }
 0x382   : > { %v2116_v26 = vpack.c.bf16 %v9927_v25, %v9925_v23  ;;  %v2113_v27 = vpop.f32.mrb[27].mxu1  ;;  %v8627_v23 = vld [vmem:[%s11744_s24 + $0x274] ss:$8 sps:$4 sm:$0xff]   ;;  %v8630_v25 = vld [vmem:[%s11744_s24 + $0x284] ss:$8 sps:$4 sm:$0xff]  }
 0x383   : > { %v2117_v28 = vpack.c.bf16 %v2113_v27, %v2109_v24  ;;  %v8625_v24 = vld [vmem:[%s11744_s24 + $0x270] ss:$8 sps:$4 sm:$0xff]   ;;  %v8633_v27 = vld [vmem:[%s11744_s24 + $0x294] ss:$8 sps:$4 sm:$0xff]  }
 0x387   : > { %v2195_v30 = vpop.f32.mrb[28].mxu1 }
 0x388   : > { %v2197_v31 = vpop.f32.mrb[29].mxu1 }
 0x389   : > { %v2199_v33 = vpop.f32.mrb[30].mxu1 }
 0x38a   : > { %v2204_v34 = vpack.c.bf16 %v2199_v33, %v2195_v30  ;;  %v2201_v35 = vpop.f32.mrb[31].mxu1  ;;  %v8636_v30 = vld [vmem:[%s11744_s24 + $0x2a4] ss:$8 sps:$4 sm:$0xff]   ;;  %v8639_v33 = vld [vmem:[%s11744_s24 + $0x2b4] ss:$8 sps:$4 sm:$0xff]  }
 0x38b   : > { %v2205_v36 = vpack.c.bf16 %v2201_v35, %v2197_v31  ;;  %v8634_v31 = vld [vmem:[%s11744_s24 + $0x2a0] ss:$8 sps:$4 sm:$0xff]   ;;  %v8642_v35 = vld [vmem:[%s11744_s24 + $0x2c4] ss:$8 sps:$4 sm:$0xff]  }
 0x38d   : > { %2431 = vmatprep.mubr.bf16.mxu1 %v2205_v36  ;;  %v8640_v36 = vld [vmem:[%s11744_s24 + $0x2c0] ss:$8 sps:$4 sm:$0xff]  }
 0x38e   : > { %2432 = vmatmul.mubr.bf16.vlgmr.msra.gmra.mrb[32].mxu1 %v2204_v34  ;;  %v8637_v34 = vld [vmem:[%s11744_s24 + $0x2b0] ss:$8 sps:$4 sm:$0xff]  }
 0x38f   : > { %2603 = vmatpush1.bf16.msra.mxu1 %v8555_v37  ;;  %2634 = vmatprep.mubr.bf16.mxu1 %v2117_v28  ;;  %v8631_v28 = vld [vmem:[%s11744_s24 + $0x290] ss:$8 sps:$4 sm:$0xff]   ;;  %v8645_v37 = vld [vmem:[%s11744_s24 + $0x2d4] ss:$8 sps:$4 sm:$0xff]  }
 0x390   : > { %2604 = vmatprep.subr.bf16.mxu1 %v8560_v38  ;;  %v8643_v38 = vld [vmem:[%s11744_s24 + $0x2d0] ss:$8 sps:$4 sm:$0xff]  }
 0x393   : > { %2605 = vmatpush1.bf16.msra.mxu1 %v8558_v39  ;;  %v8648_v39 = vld [vmem:[%s11744_s24 + $0x2e4] ss:$8 sps:$4 sm:$0xff]  }
 0x394   : > { %2606 = vmatprep.subr.bf16.mxu1 %v8563_v40  ;;  %v8646_v40 = vld [vmem:[%s11744_s24 + $0x2e0] ss:$8 sps:$4 sm:$0xff]  }
 0x397   : > { %2607 = vmatpush1.bf16.msra.mxu1 %v8561_v42  ;;  %v8651_v42 = vld [vmem:[%s11744_s24 + $0x2f4] ss:$8 sps:$4 sm:$0xff]  }
 0x398   : > { %2608 = vmatprep.subr.bf16.mxu1 %v8566_v44  ;;  %v8649_v44 = vld [vmem:[%s11744_s24 + $0x2f0] ss:$8 sps:$4 sm:$0xff]  }
 0x39b   : > { %2609 = vmatpush1.bf16.msra.mxu1 %v8564_v18 }
 0x39c   : > { %2610 = vmatprep.subr.bf16.mxu1 %v8569_v21 }
 0x39f   : > { %2611 = vmatpush1.bf16.msra.mxu1 %v8567_v22 }
 0x3a0   : > { %2612 = vmatprep.subr.bf16.mxu1 %v8572_v43 }
 0x3a3   : > { %2613 = vmatpush1.bf16.msra.mxu1 %v8570_v45 }
 0x3a4   : > { %2614 = vmatprep.subr.bf16.mxu1 %v8575_v47 }
 0x3a7   : > { %2615 = vmatpush1.bf16.msra.mxu1 %v8573_v48  ;;  %v8655_v48 = vld [vmem:[%s11744_s24 + $0x304] ss:$8 sps:$4 sm:$0xff]  }
 0x3a8   : > { %2616 = vmatprep.subr.bf16.mxu1 %v8578_v49  ;;  %v8653_v49 = vld [vmem:[%s11744_s24 + $0x300] ss:$8 sps:$4 sm:$0xff]  }
 0x3ab   : > { %2617 = vmatpush1.bf16.msra.mxu1 %v8576_v50  ;;  %v8659_v50 = vld [vmem:[%s11744_s24 + $0x320] ss:$8 sps:$4 sm:$0xff]  }
 0x3ac   : > { %2618 = vmatprep.subr.bf16.mxu1 %v8581_v52  ;;  %v8664_v52 = vld [vmem:[%s11744_s24 + $0x334] ss:$8 sps:$4 sm:$0xff]  }
 0x3af   : > { %2619 = vmatpush1.bf16.msra.mxu1 %v8579_v54  ;;  %v8662_v54 = vld [vmem:[%s11744_s24 + $0x330] ss:$8 sps:$4 sm:$0xff]  }
 0x3b0   : > { %2620 = vmatprep.subr.bf16.mxu1 %v8584_v56  ;;  %v8667_v56 = vld [vmem:[%s11744_s24 + $0x344] ss:$8 sps:$4 sm:$0xff]  }
 0x3b3   : > { %2621 = vmatpush1.bf16.msra.mxu1 %v8582_v60  ;;  %v8665_v60 = vld [vmem:[%s11744_s24 + $0x340] ss:$8 sps:$4 sm:$0xff]  }
 0x3b4   : > { %2622 = vmatprep.subr.bf16.mxu1 %v8587_v61  ;;  %v8670_v61 = vld [vmem:[%s11744_s24 + $0x354] ss:$8 sps:$4 sm:$0xff]  }
 0x3b7   : > { %2623 = vmatpush1.bf16.msra.mxu1 %v8585_v62  ;;  %v8668_v62 = vld [vmem:[%s11744_s24 + $0x350] ss:$8 sps:$4 sm:$0xff]  }
 0x3b8   : > { %2624 = vmatprep.subr.bf16.mxu1 %v8590_v63  ;;  %v8673_v63 = vld [vmem:[%s11744_s24 + $0x364] ss:$8 sps:$4 sm:$0xff]  }
 0x3bb   : > { %2625 = vmatpush1.bf16.msra.mxu1 %v8588_v1  ;;  %v8671_v1 = vld [vmem:[%s11744_s24 + $0x360] ss:$8 sps:$4 sm:$0xff]  }
 0x3bc   : > { %2626 = vmatprep.subr.bf16.mxu1 %v8593_v4  ;;  %v8676_v4 = vld [vmem:[%s11744_s24 + $0x374] ss:$8 sps:$4 sm:$0xff]  }
 0x3bf   : > { %2627 = vmatpush1.bf16.msra.mxu1 %v8591_v13  ;;  %v8674_v13 = vld [vmem:[%s11744_s24 + $0x370] ss:$8 sps:$4 sm:$0xff]  }
 0x3c0   : > { %2628 = vmatprep.subr.bf16.mxu1 %v8596_v51  ;;  %v8679_v51 = vld [vmem:[%s11744_s24 + $0x384] ss:$8 sps:$4 sm:$0xff]  }
 0x3c3   : > { %2629 = vmatpush1.bf16.msra.mxu1 %v8594_v55  ;;  %v8677_v55 = vld [vmem:[%s11744_s24 + $0x380] ss:$8 sps:$4 sm:$0xff]  }
 0x3c4   : > { %2630 = vmatprep.subr.bf16.mxu1 %v8599_v58  ;;  %v8682_v58 = vld [vmem:[%s11744_s24 + $0x394] ss:$8 sps:$4 sm:$0xff]  }
 0x3c7   : > { %2631 = vmatpush1.bf16.msra.mxu1 %v8597_v6  ;;  %v8680_v6 = vld [vmem:[%s11744_s24 + $0x390] ss:$8 sps:$4 sm:$0xff]  }
 0x3c8   : > { %2632 = vmatprep.subr.bf16.mxu1 %v8602_v12  ;;  %v8685_v12 = vld [vmem:[%s11744_s24 + $0x3a4] ss:$8 sps:$4 sm:$0xff]  }
 0x3cb   : > { %2633 = vmatpush1.bf16.msra.mxu1 %v8600_v3  ;;  %v8683_v3 = vld [vmem:[%s11744_s24 + $0x3a0] ss:$8 sps:$4 sm:$0xff]  }
 0x3cc   : > { %2656 = vmatprep.subr.bf16.mxu1 %v9803_v32 }
 0x3ce   : > { %2635 = vmatmul.mubr.bf16.vlgmr.msra.gmra.mrb[32].mxu1 %v2116_v26  ;;  %v8628_v26 = vld [vmem:[%s11744_s24 + $0x280] ss:$8 sps:$4 sm:$0xff]  }
 0x3cf   : > { %2657 = vmatpush1.bf16.msra.mxu1 %v9801_v29  ;;  %2688 = vmatprep.mubr.bf16.mxu1 %v9100_v0 }
 0x3d0   : > { %2658 = vmatprep.subr.bf16.mxu1 %v9809_v46 }
 0x3d3   : > { %2659 = vmatpush1.bf16.msra.mxu1 %v9807_v41 }
 0x3d4   : > { %2894 = vmatprep.subr.bf16.mxu1 %v8606_v8  ;;  %v8688_v8 = vld [vmem:[%s11744_s24 + $0x3b4] ss:$8 sps:$4 sm:$0xff]  }
 0x3d6   : > { %7157 = vmatmul.mubr.msk.bf16.vlgmr.msra.gmra.mrb[36].mxu1 %vm2069_vm9, %v8603_v11  ;;  %v8686_v11 = vld [vmem:[%s11744_s24 + $0x3b0] ss:$8 sps:$4 sm:$0xff]  }
 0x3d7   : > { %2895 = vmatpush1.bf16.msra.mxu1 %v8604_v16  ;;  %v8691_v16 = vld [vmem:[%s11744_s24 + $0x3c4] ss:$8 sps:$4 sm:$0xff]  }
 0x3d8   : > { %2896 = vmatprep.subr.bf16.mxu1 %v8609_v17  ;;  %v8689_v17 = vld [vmem:[%s11744_s24 + $0x3c0] ss:$8 sps:$4 sm:$0xff]  }
 0x3db   : > { %2897 = vmatpush1.bf16.msra.mxu1 %v8607_v53  ;;  %v8694_v53 = vld [vmem:[%s11744_s24 + $0x3d4] ss:$8 sps:$4 sm:$0xff]  }
 0x3dc   : > { %2898 = vmatprep.subr.bf16.mxu1 %v8612_v57  ;;  %v8692_v57 = vld [vmem:[%s11744_s24 + $0x3d0] ss:$8 sps:$4 sm:$0xff]  }
 0x3df   : > { %2899 = vmatpush1.bf16.msra.mxu1 %v8610_v59  ;;  %v8697_v59 = vld [vmem:[%s11744_s24 + $0x3e4] ss:$8 sps:$4 sm:$0xff]  }
 0x3e0   : > { %2900 = vmatprep.subr.bf16.mxu1 %v8615_v19  ;;  %v8695_v19 = vld [vmem:[%s11744_s24 + $0x3e0] ss:$8 sps:$4 sm:$0xff]  }
 0x3e3   : > { %2901 = vmatpush1.bf16.msra.mxu1 %v8613_v5  ;;  %v8700_v5 = vld [vmem:[%s11744_s24 + $0x3f4] ss:$8 sps:$4 sm:$0xff]  }
 0x3e4   : > { %2902 = vmatprep.subr.bf16.mxu1 %v8618_v10  ;;  %v8698_v10 = vld [vmem:[%s11744_s24 + $0x3f0] ss:$8 sps:$4 sm:$0xff]  }
 0x3e7   : > { %2903 = vmatpush1.bf16.msra.mxu1 %v8616_v14  ;;  %v3253_v14 = vld [vmem:[%s11713_s7 + $0x80] sm:$0xff] }
 0x3e8   : > { %2904 = vmatprep.subr.bf16.mxu1 %v8621_v20  ;;  %v3254_v20 = vld [vmem:[%s11713_s7 + $0x88] sm:$0xff] }
 0x3eb   : > { %2905 = vmatpush1.bf16.msra.mxu1 %v8619_v2  ;;  %v3237_v2 = vld [vmem:[%s11713_s7] sm:$0xff] }
 0x3ec   : > { %2906 = vmatprep.subr.bf16.mxu1 %v8624_v7  ;;  %v10246_v7 = vpack.c.bf16 %v3254_v20, %v3253_v14 }
 0x3ee   : > { %7976 = vmatprep.subr.bf16.mxu0 %v10246_v7 }
 0x3ef   : > { %2907 = vmatpush1.bf16.msra.mxu1 %v8622_v9  ;;  %v3238_v9 = vld [vmem:[%s11713_s7 + $0x8] sm:$0xff] }
 0x3f0   : > { %2908 = vmatprep.subr.bf16.mxu1 %v8627_v23  ;;  %v3255_v23 = vld [vmem:[%s11713_s7 + $0x90] sm:$0xff] }
 0x3f3   : > { %2909 = vmatpush1.bf16.msra.mxu1 %v8625_v24  ;;  %v3256_v24 = vld [vmem:[%s11713_s7 + $0x98] sm:$0xff] }
 0x3f4   : > { %2910 = vmatprep.subr.bf16.mxu1 %v8630_v25  ;;  %v10257_v25 = vpack.c.bf16 %v3238_v9, %v3237_v2 }
 0x3f6   : > { %7978 = vmatpush3.bf16.msra.mxu0 %v10257_v25 }
 0x3f7   : > { %2911 = vmatpush1.bf16.msra.mxu1 %v8628_v26  ;;  %v10259_v26 = vpack.c.bf16 %v3256_v24, %v3255_v23 }
 0x3f8   : > { %2912 = vmatprep.subr.bf16.mxu1 %v8633_v27  ;;  %v3239_v27 = vld [vmem:[%s11713_s7 + $0x10] sm:$0xff] }
 0x3f9   : > { %7980 = vmatprep.subr.bf16.mxu0 %v10259_v26 }
 0x3fb   : > { %2913 = vmatpush1.bf16.msra.mxu1 %v8631_v28  ;;  %v3240_v28 = vld [vmem:[%s11713_s7 + $0x18] sm:$0xff] }
 0x3fc   : > { %2914 = vmatprep.subr.bf16.mxu1 %v8636_v30  ;;  %v3257_v30 = vld [vmem:[%s11713_s7 + $0xa0] sm:$0xff] }
 0x3ff   : > { %2915 = vmatpush1.bf16.msra.mxu1 %v8634_v31  ;;  %v3258_v31 = vld [vmem:[%s11713_s7 + $0xa8] sm:$0xff] }
 0x400   : > { %2916 = vmatprep.subr.bf16.mxu1 %v8639_v33  ;;  %v10275_v33 = vpack.c.bf16 %v3240_v28, %v3239_v27 }
 0x402   : > { %7982 = vmatpush3.bf16.msra.mxu0 %v10275_v33 }
 0x403   : > { %2917 = vmatpush1.bf16.msra.mxu1 %v8637_v34  ;;  %v10278_v34 = vpack.c.bf16 %v3258_v31, %v3257_v30 }
 0x404   : > { %2918 = vmatprep.subr.bf16.mxu1 %v8642_v35  ;;  %v3241_v35 = vld [vmem:[%s11713_s7 + $0x20] sm:$0xff] }
 0x405   : > { %7984 = vmatprep.subr.bf16.mxu0 %v10278_v34 }
 0x407   : > { %2919 = vmatpush1.bf16.msra.mxu1 %v8640_v36  ;;  %v3242_v36 = vld [vmem:[%s11713_s7 + $0x28] sm:$0xff] }
 0x408   : > { %2920 = vmatprep.subr.bf16.mxu1 %v8645_v37  ;;  %v3259_v37 = vld [vmem:[%s11713_s7 + $0xb0] sm:$0xff] }
 0x40b   : > { %2921 = vmatpush1.bf16.msra.mxu1 %v8643_v38  ;;  %v3260_v38 = vld [vmem:[%s11713_s7 + $0xb8] sm:$0xff] }
 0x40c   : > { %2922 = vmatprep.subr.bf16.mxu1 %v8648_v39  ;;  %v10293_v39 = vpack.c.bf16 %v3242_v36, %v3241_v35 }
 0x40e   : > { %7986 = vmatpush3.bf16.msra.mxu0 %v10293_v39 }
 0x40f   : > { %2923 = vmatpush1.bf16.msra.mxu1 %v8646_v40  ;;  %v10296_v40 = vpack.c.bf16 %v3260_v38, %v3259_v37 }
 0x410   : > { %2924 = vmatprep.subr.bf16.mxu1 %v8651_v42  ;;  %v3243_v42 = vld [vmem:[%s11713_s7 + $0x30] sm:$0xff] }
 0x411   : > { %7988 = vmatprep.subr.bf16.mxu0 %v10296_v40 }
 0x413   : > { %2925 = vmatpush1.bf16.msra.mxu1 %v8649_v44  ;;  %v3244_v44 = vld [vmem:[%s11713_s7 + $0x38] sm:$0xff] }
 0x414   : > { %2952 = vmatprep.subr.bf16.mxu1 %v9803_v32  ;;  %v8652_v32 = vld [vmem:[%s11743_s30 + $0x18] sm:$0xff]  }
 0x4a9   : > { %v2690_v18 = vpop.f32.mrb[36].mxu1 }
 0x4aa   : > { %v2692_v21 = vpop.f32.mrb[37].mxu1 }
 0x4ab   : > { %v2694_v22 = vpop.f32.mrb[38].mxu1 }
 0x4ac   : > { %v2699_v43 = vpack.c.bf16 %v2694_v22, %v2690_v18  ;;  %v2696_v45 = vpop.f32.mrb[39].mxu1  ;;  %v10305_v18 = vpack.c.bf16 %v3244_v44, %v3243_v42 }
 0x4ad   : > { %v2700_v47 = vpack.c.bf16 %v2696_v45, %v2692_v21 }
 0x4ae   : > { %7990 = vmatpush3.bf16.msra.mxu0 %v10305_v18 }
 0x4af   : > { %2926 = vmatprep.mubr.bf16.mxu1 %v2700_v47 }
 0x4b0   : > { %2927 = vmatmul.mubr.bf16.vlgmr.msra.gmra.mrb[32].mxu1 %v2699_v43 }
 0x4b1   : > { %2953 = vmatpush1.bf16.msra.mxu1 %v9801_v29  ;;  %2984 = vmatprep.mubr.bf16.mxu1 %v9100_v0  ;;  %v8658_v29 = vld [vmem:[%s11744_s24 + $0x314] ss:$8 sps:$4 sm:$0xff]  }
 0x4b2   : > { %2954 = vmatprep.subr.bf16.mxu1 %v9809_v46  ;;  %v8656_v46 = vld [vmem:[%s11744_s24 + $0x310] ss:$8 sps:$4 sm:$0xff]  }
 0x4b5   : > { %2955 = vmatpush1.bf16.msra.mxu1 %v9807_v41  ;;  %v8661_v41 = vld [vmem:[%s11744_s24 + $0x324] ss:$8 sps:$4 sm:$0xff]  }
 0x4b6   : > { %3190 = vmatprep.subr.bf16.mxu1 %v8655_v48 }
 0x4b8   : > { %7225 = vmatmul.mubr.msk.bf16.vlgmr.msra.gmra.mrb[40].mxu1 %vm2069_vm9, %v8652_v32  ;;  %v3261_v32 = vld [vmem:[%s11713_s7 + $0xc0] sm:$0xff] }
 0x4b9   : > { %3191 = vmatpush1.bf16.msra.mxu1 %v8653_v49  ;;  %v3262_v49 = vld [vmem:[%s11713_s7 + $0xc8] sm:$0xff] }
 0x4ba   : > { %3192 = vmatprep.subr.bf16.mxu1 %v8658_v29  ;;  %v10316_v29 = vpack.c.bf16 %v3262_v49, %v3261_v32 }
 0x4bc   : > { %7992 = vmatprep.subr.bf16.mxu0 %v10316_v29 }
 0x4bd   : > { %3193 = vmatpush1.bf16.msra.mxu1 %v8656_v46  ;;  %v3245_v46 = vld [vmem:[%s11713_s7 + $0x40] sm:$0xff] }
 0x4be   : > { %3194 = vmatprep.subr.bf16.mxu1 %v8661_v41  ;;  %v3246_v41 = vld [vmem:[%s11713_s7 + $0x48] sm:$0xff] }
 0x4c1   : > { %3195 = vmatpush1.bf16.msra.mxu1 %v8659_v50  ;;  %v10324_v50 = vpack.c.bf16 %v3246_v41, %v3245_v46  ;;  %v9101_v46 = vmov 0.0  }
 0x4c2   : > { %3196 = vmatprep.subr.bf16.mxu1 %v8664_v52  ;;  %v3263_v52 = vld [vmem:[%s11713_s7 + $0xd0] sm:$0xff] }
 0x4c3   : > { %7994 = vmatpush3.bf16.msra.mxu0 %v10324_v50 }
 0x4c5   : > { %3197 = vmatpush1.bf16.msra.mxu1 %v8662_v54  ;;  %v3264_v54 = vld [vmem:[%s11713_s7 + $0xd8] sm:$0xff] }
 0x4c6   : > { %3198 = vmatprep.subr.bf16.mxu1 %v8667_v56  ;;  %v10334_v56 = vpack.c.bf16 %v3264_v54, %v3263_v52 }
 0x4c8   : > { %7996 = vmatprep.subr.bf16.mxu0 %v10334_v56 }
 0x4c9   : > { %3199 = vmatpush1.bf16.msra.mxu1 %v8665_v60  ;;  %v3247_v60 = vld [vmem:[%s11713_s7 + $0x50] sm:$0xff] }
 0x4ca   : > { %3200 = vmatprep.subr.bf16.mxu1 %v8670_v61  ;;  %v3248_v61 = vld [vmem:[%s11713_s7 + $0x58] sm:$0xff] }
 0x4cd   : > { %3201 = vmatpush1.bf16.msra.mxu1 %v8668_v62  ;;  %v10342_v62 = vpack.c.bf16 %v3248_v61, %v3247_v60 }
 0x4ce   : > { %3202 = vmatprep.subr.bf16.mxu1 %v8673_v63  ;;  %v3265_v63 = vld [vmem:[%s11713_s7 + $0xe0] sm:$0xff] }
 0x4cf   : > { %7998 = vmatpush3.bf16.msra.mxu0 %v10342_v62 }
 0x4d1   : > { %3203 = vmatpush1.bf16.msra.mxu1 %v8671_v1  ;;  %v3266_v1 = vld [vmem:[%s11713_s7 + $0xe8] sm:$0xff] }
 0x4d2   : > { %3204 = vmatprep.subr.bf16.mxu1 %v8676_v4  ;;  %v7999_v4 = vpack.c.bf16 %v3266_v1, %v3265_v63 }
 0x4d4   : > { %8000 = vmatprep.subr.bf16.mxu0 %v7999_v4 }
 0x4d5   : > { %3205 = vmatpush1.bf16.msra.mxu1 %v8674_v13  ;;  %v3249_v13 = vld [vmem:[%s11713_s7 + $0x60] sm:$0xff] }
 0x4d6   : > { %3206 = vmatprep.subr.bf16.mxu1 %v8679_v51  ;;  %v3250_v51 = vld [vmem:[%s11713_s7 + $0x68] sm:$0xff] }
 0x4d9   : > { %3207 = vmatpush1.bf16.msra.mxu1 %v8677_v55  ;;  %v8001_v55 = vpack.c.bf16 %v3250_v51, %v3249_v13 }
 0x4da   : > { %3208 = vmatprep.subr.bf16.mxu1 %v8682_v58  ;;  %v3267_v58 = vld [vmem:[%s11713_s7 + $0xf0] sm:$0xff] }
 0x4db   : > { %8002 = vmatpush3.bf16.msra.mxu0 %v8001_v55 }
 0x4dd   : > { %3209 = vmatpush1.bf16.msra.mxu1 %v8680_v6  ;;  %v3268_v6 = vld [vmem:[%s11713_s7 + $0xf8] sm:$0xff] }
 0x4de   : > { %3210 = vmatprep.subr.bf16.mxu1 %v8685_v12  ;;  %v8003_v12 = vpack.c.bf16 %v3268_v6, %v3267_v58 }
 0x4e0   : > { %8004 = vmatprep.subr.bf16.mxu0 %v8003_v12 }
 0x4e1   : > { %3211 = vmatpush1.bf16.msra.mxu1 %v8683_v3  ;;  %v3251_v3 = vld [vmem:[%s11713_s7 + $0x70] sm:$0xff] }
 0x4e2   : > { %3212 = vmatprep.subr.bf16.mxu1 %v8688_v8  ;;  %v3252_v8 = vld [vmem:[%s11713_s7 + $0x78] sm:$0xff] }
 0x4e5   : > { %3213 = vmatpush1.bf16.msra.mxu1 %v8686_v11  ;;  %v8005_v11 = vpack.c.bf16 %v3252_v8, %v3251_v3 }
 0x4e6   : > { %3214 = vmatprep.subr.bf16.mxu1 %v8691_v16 }
 0x4e7   : > { %8006 = vmatpush3.bf16.msra.mxu0 %v8005_v11 }
 0x4e8   : > { %8008 = vmatprep.subr.bf16.mxu0 %v10246_v7 }
 0x4e9   : > { %3215 = vmatpush1.bf16.msra.mxu1 %v8689_v17 }
 0x4ea   : > { %3216 = vmatprep.subr.bf16.mxu1 %v8694_v53 }
 0x4ed   : > { %3217 = vmatpush1.bf16.msra.mxu1 %v8692_v57 }
 0x4ee   : > { %3218 = vmatprep.subr.bf16.mxu1 %v8697_v59 }
 0x4f1   : > { %3219 = vmatpush1.bf16.msra.mxu1 %v8695_v19 }
 0x4f2   : > { %3220 = vmatprep.subr.bf16.mxu1 %v8700_v5 }
 0x4f5   : > { %3221 = vmatpush1.bf16.msra.mxu1 %v8698_v10 }
 0x58b   : > { %v2986_v21 = vpop.f32.mrb[40].mxu1 }
 0x58c   : > { %v2988_v22 = vpop.f32.mrb[41].mxu1 }
 0x58d   : > { %v2990_v43 = vpop.f32.mrb[42].mxu1 }
 0x58e   : > { %v2995_v45 = vpack.c.bf16 %v2990_v43, %v2986_v21  ;;  %v2992_v47 = vpop.f32.mrb[43].mxu1 }
 0x58f   : > { %v2996_v48 = vpack.c.bf16 %v2992_v47, %v2988_v22 }
 0x591   : > { %3222 = vmatprep.mubr.bf16.mxu1 %v2996_v48 }
 0x592   : > { %3223 = vmatmul.mubr.bf16.vlgmr.msra.gmra.mrb[32].mxu1 %v2995_v45 }
 0x593   : > { %4243 = vmatprep.mubr.bf16.mxu1 %v9100_v0 }
 0x665   : > { %v10371_v16 = vpop.f32.mrb[32].mxu1 }
 0x666   : > { %v10373_v17 = vpop.f32.mrb[33].mxu1  ;;  %v3283_v57 = vmul.f32 %v10371_v16, %v10371_v16 }
 0x667   : > { %v10375_v53 = vpop.f32.mrb[34].mxu1  ;;  %v3284_v10 = vmul.f32 %v10373_v17, %v10373_v17 }
 0x668   : > { %v3269_v59 = vadd.f32 %v10375_v53, %v10371_v16  ;;  %v3285_v19 = vmul.f32 %v10375_v53, %v10375_v53  ;;  %v10383_v5 = vpop.f32.mrb[35].mxu1 }
 0x669   : > { %v3276_v14 = vadd.f32 %v10383_v5, %v10373_v17  ;;  %v3286_v20 = vmul.f32 %v10383_v5, %v10383_v5 }
 0x66a   : > { %v3270_v2 = vrot.slane %v3269_v59, 4  ;;  %v3287_v7 = vadd.f32 %v3285_v19, %v3283_v57 }
 0x66b   : > { %v3277_v9 = vrot.slane %v3276_v14, 4  ;;  %v3294_v23 = vadd.f32 %v3286_v20, %v3284_v10 }
 0x66c   : > { %v3271_v24 = vadd.f32 %v3270_v2, %v3269_v59  ;;  %v3288_v48 = vrot.slane %v3287_v7, 4 }
 0x66d   : > { %v3278_v27 = vadd.f32 %v3277_v9, %v3276_v14  ;;  %v3295_v28 = vrot.slane %v3294_v23, 4 }
 0x66e   : > { %v3272_v30 = vrot.slane %v3271_v24, 2  ;;  %v3289_v32 = vadd.f32 %v3288_v48, %v3287_v7  ;;  %v7457_v48 = vld [vmem:[%s11715_s9 + $0xc] sm:$0xf] }
 0x66f   : > { %v3279_v31 = vrot.slane %v3278_v27, 2  ;;  %v3296_v35 = vadd.f32 %v3295_v28, %v3294_v23 }
 0x670   : > { %v3273_v36 = vadd.f32 %v3272_v30, %v3271_v24 }
 0x671   : > { %v3280_v37 = vadd.f32 %v3279_v31, %v3278_v27  ;;  %v3297_v38 = vrot.slane %v3296_v35, 2 }
 0x672   : > { %v3274_v42 = vrot.slane %v3273_v36, 1 }
 0x673   : > { %v3281_v44 = vrot.slane %v3280_v37, 1  ;;  %v3298_v21 = vadd.f32 %v3297_v38, %v3296_v35 }
 0x674   : > { %v3275_v45 = vadd.f32 %v3274_v42, %v3273_v36 }
 0x675   : > { %v3282_v22 = vadd.f32 %v3281_v44, %v3280_v37  ;;  %v3299_v43 = vrot.slane %v3298_v21, 1 }
 0x677   : > { %3365 = vmatprep.mubr.f32.mxu0 %v3282_v22  ;;  %v3300_v47 = vadd.f32 %v3299_v43, %v3298_v21  ;;  %v3644_v21 = vld [vmem:[%s11715_s9] sm:$0xf]  ;;  %v7391_v22 = vld [vmem:[%s11715_s9 + $0x8] sm:$0xf]  ;;  %v8703_v43 = vld [vmem:[%s11716_s10 + $0x104] ss:$8 sps:$4 sm:$0xff]  }
 0x678   : > { %3366 = vmatmul.mubr.f32.vlgmr.msra.gmra.mrb[16].mxu0 %v3275_v45  ;;  %v7293_v45 = vld [vmem:[%s11715_s9 + $0x4] sm:$0xf] }
 0x679   : > { %8010 = vmatpush3.bf16.msra.mxu0 %v10257_v25  ;;  %3436 = vmatprep.mubr.f32.mxu0 %v3300_v47  ;;  %v3290_v25 = vrot.slane %v3289_v32, 2  ;;  %v8701_v47 = vld [vmem:[%s11716_s10 + $0x100] ss:$8 sps:$4 sm:$0xff]  }
 0x67a   : > { %8012 = vmatprep.subr.bf16.mxu0 %v10259_v26 }
 0x67b   : > { %v3291_v26 = vadd.f32 %v3290_v25, %v3289_v32  ;;  %v8706_v32 = vld [vmem:[%s11716_s10 + $0x114] ss:$8 sps:$4 sm:$0xff]   ;;  %v8704_v25 = vld [vmem:[%s11716_s10 + $0x110] ss:$8 sps:$4 sm:$0xff]  }
 0x67d   : > { %8014 = vmatpush3.bf16.msra.mxu0 %v10275_v33  ;;  %v3292_v33 = vrot.slane %v3291_v26, 1 }
 0x67e   : > { %8016 = vmatprep.subr.bf16.mxu0 %v10278_v34 }
 0x67f   : > { %v3293_v34 = vadd.f32 %v3292_v33, %v3291_v26  ;;  %v8709_v26 = vld [vmem:[%s11716_s10 + $0x124] ss:$8 sps:$4 sm:$0xff]   ;;  %v8707_v33 = vld [vmem:[%s11716_s10 + $0x120] ss:$8 sps:$4 sm:$0xff]  }
 0x681   : > { %8018 = vmatpush3.bf16.msra.mxu0 %v10293_v39  ;;  %v3454_v39 = vld [vmem:[%s11714_s8 + $0x8] sm:$0xff] }
 0x682   : > { %8020 = vmatprep.subr.bf16.mxu0 %v10296_v40  ;;  %v3456_v40 = vld [vmem:[%s11714_s8 + $0x18] sm:$0xff] }
 0x683   : > { %v8039_v49 = vpack.c.bf16 %v3456_v40, %v3454_v39  ;;  %v8710_v39 = vld [vmem:[%s11716_s10 + $0x130] ss:$8 sps:$4 sm:$0xff]   ;;  %v8715_v40 = vld [vmem:[%s11716_s10 + $0x144] ss:$8 sps:$4 sm:$0xff]  }
 0x685   : > { %8022 = vmatpush3.bf16.msra.mxu0 %v10305_v18  ;;  %v3453_v18 = vld [vmem:[%s11714_s8] sm:$0xff] }
 0x686   : > { %8024 = vmatprep.subr.bf16.mxu0 %v10316_v29  ;;  %v3455_v29 = vld [vmem:[%s11714_s8 + $0x10] sm:$0xff] }
 0x687   : > { %v8041_v41 = vpack.c.bf16 %v3455_v29, %v3453_v18  ;;  %v8713_v18 = vld [vmem:[%s11716_s10 + $0x140] ss:$8 sps:$4 sm:$0xff]   ;;  %v8716_v29 = vld [vmem:[%s11716_s10 + $0x150] ss:$8 sps:$4 sm:$0xff]  }
 0x689   : > { %8026 = vmatpush3.bf16.msra.mxu0 %v10324_v50 }
 0x68a   : > { %8028 = vmatprep.subr.bf16.mxu0 %v10334_v56 }
 0x68d   : > { %8030 = vmatpush3.bf16.msra.mxu0 %v10342_v62 }
 0x68e   : > { %8032 = vmatprep.subr.bf16.mxu0 %v7999_v4 }
 0x691   : > { %8034 = vmatpush3.bf16.msra.mxu0 %v8001_v55  ;;  %v3446_v55 = vld [vmem:[%s11712_s6] sm:$0x1] }
 0x692   : > { %8036 = vmatprep.subr.bf16.mxu0 %v8003_v12  ;;  %v3450_v12 = vld [vmem:[%s11712_s6 + $0x1] sm:$0x1] }
 0x695   : > { %8038 = vmatpush3.bf16.msra.mxu0 %v8005_v11 }
 0x696   : > { %8040 = vmatprep.subr.bf16.mxu0 %v8039_v49 }
 0x698   : > { %3437 = vmatmul.mubr.f32.vlgmr.msra.gmra.mrb[18].mxu0 %v3293_v34  ;;  %v8712_v34 = vld [vmem:[%s11716_s10 + $0x134] ss:$8 sps:$4 sm:$0xff]  }
 0x699   : > { %3525 = vmatprep.mubr.f32.mxu0 %v9101_v46  ;;  %8042 = vmatpush1.bf16.msra.mxu0 %v8041_v41 }
 0x69a   : > { %8044 = vmatprep.subr.bf16.mxu0 %v8039_v49  ;;  %v8718_v49 = vld [vmem:[%s11716_s10 + $0x154] ss:$8 sps:$4 sm:$0xff]  }
 0x74b   : > { %v7797_v50 = vpop.f32.mrb[16].mxu0 }
 0x74c   : > { %v7798_v52 = vpop.f32.mrb[17].mxu0 }
 0x74d   : > { %v7799_v54 = vadd.f32 %v7798_v52, %v7797_v50  ;;  %v8719_v50 = vld [vmem:[%s11716_s10 + $0x160] ss:$8 sps:$4 sm:$0xff]   ;;  %v8724_v52 = vld [vmem:[%s11716_s10 + $0x174] ss:$8 sps:$4 sm:$0xff]  }
 0x74f   : > { %v3371_v56 = vmul.f32 0.00390625, %v7799_v54  ;;  %v8722_v54 = vld [vmem:[%s11716_s10 + $0x170] ss:$8 sps:$4 sm:$0xff]  }
 0x751   : > { %v3443_v63 = vmul.f32 %v3371_v56, %v3371_v56 }
 0x76b   : > { %v7832_v60 = vpop.f32.mrb[18].mxu0 }
 0x76c   : > { %v7833_v61 = vpop.f32.mrb[19].mxu0 }
 0x76d   : > { %v7834_v62 = vadd.f32 %v7833_v61, %v7832_v60  ;;  %v8725_v60 = vld [vmem:[%s11716_s10 + $0x180] ss:$8 sps:$4 sm:$0xff]   ;;  %v8730_v61 = vld [vmem:[%s11716_s10 + $0x194] ss:$8 sps:$4 sm:$0xff]  }
 0x76f   : > { %v3442_v1 = vmul.f32 0.00390625, %v7834_v62  ;;  %v8728_v62 = vld [vmem:[%s11716_s10 + $0x190] ss:$8 sps:$4 sm:$0xff]  }
 0x771   : > { %v3444_v4 = vsub.f32 %v3442_v1, %v3443_v63  ;;  %v8733_v63 = vld [vmem:[%s11716_s10 + $0x1a4] ss:$8 sps:$4 sm:$0xff]   ;;  %v8731_v1 = vld [vmem:[%s11716_s10 + $0x1a0] ss:$8 sps:$4 sm:$0xff]  }
 0x773   : > { %v3445_v13 = vmax.f32 %v3444_v4, 0.0  ;;  %v8736_v4 = vld [vmem:[%s11716_s10 + $0x1b4] ss:$8 sps:$4 sm:$0xff]  }
 0x775   : > { %v3447_v51 = vadd.f32 1e-05, %v3445_v13  ;;  %v8734_v13 = vld [vmem:[%s11716_s10 + $0x1b0] ss:$8 sps:$4 sm:$0xff]  }
 0x777   : > { %9086 = vrsqrt.f32 %v3447_v51  ;;  %v8739_v51 = vld [vmem:[%s11716_s10 + $0x1c4] ss:$8 sps:$4 sm:$0xff]  }
 0x781   : > { %v9087_v58 = vpop.eup %9086 }
 0x782   : > { %v3449_v6 = vmul.f32 %v9087_v58, %v3446_v55  ;;  %v8737_v55 = vld [vmem:[%s11716_s10 + $0x1c0] ss:$8 sps:$4 sm:$0xff]   ;;  %v8742_v58 = vld [vmem:[%s11716_s10 + $0x1d4] ss:$8 sps:$4 sm:$0xff]  }
 0x784   : > { %7290 = vmatmul.mubr.msk.f32.vlgmr.msra.gmra.mrb[20].mxu0 %vm3457_vm10, %v3449_v6  ;;  %v3451_v3 = vmul.f32 %v3449_v6, %v3371_v56  ;;  %v8727_v56 = vld [vmem:[%s11716_s10 + $0x184] ss:$8 sps:$4 sm:$0xff]   ;;  %v8740_v6 = vld [vmem:[%s11716_s10 + $0x1d0] ss:$8 sps:$4 sm:$0xff]  }
 0x785   : > { %8046 = vmatpush1.bf16.msra.mxu0 %v8041_v41  ;;  %3611 = vmatprep.mubr.f32.mxu0 %v9101_v46  ;;  %v8721_v41 = vld [vmem:[%s11716_s10 + $0x164] ss:$8 sps:$4 sm:$0xff]  }
 0x786   : > { %v3452_v8 = vsub.f32 %v3450_v12, %v3451_v3  ;;  %v8745_v12 = vld [vmem:[%s11716_s10 + $0x1e4] ss:$8 sps:$4 sm:$0xff]   ;;  %v8743_v3 = vld [vmem:[%s11716_s10 + $0x1e0] ss:$8 sps:$4 sm:$0xff]  }
 0x788   : > { %7291 = vmatmul.mubr.msk.f32.vlgmr.msra.gmra.mrb[22].mxu0 %vm3457_vm10, %v3452_v8  ;;  %v8748_v8 = vld [vmem:[%s11716_s10 + $0x1f4] ss:$8 sps:$4 sm:$0xff]  }
 0x789   : > { %3680 = vmatprep.mubr.bf16.mxu0 %v9100_v0 }
 0x857   : > { %v3527_v11 = vpop.f32.mrb[20].mxu0 }
 0x858   : > { %v3535_v57 = vrot.slane %v3527_v11, %v9795_v15  ;;  %v3529_v59 = vpop.f32.mrb[21].mxu0  ;;  %v8746_v11 = vld [vmem:[%s11716_s10 + $0x1f0] ss:$8 sps:$4 sm:$0xff]  }
 0x859   : > { %v3539_v19 = vrot.slane %v3529_v59, %v9795_v15 }
 0x85a   : > { %v3540_v10 = vmul.f32 %v3535_v57, %v10371_v16  ;;  %v3542_v14 = vmul.f32 %v3535_v57, %v10375_v53  ;;  %v8751_v57 = vld [vmem:[%s11716_s10 + $0x4] ss:$8 sps:$4 sm:$0xff]  }
 0x85b   : > { %v3541_v20 = vmul.f32 %v3539_v19, %v10373_v17  ;;  %v3543_v2 = vmul.f32 %v3539_v19, %v10383_v5  ;;  %v3613_v7 = vpop.f32.mrb[22].mxu0 }
 0x85c   : > { %v3621_v9 = vrot.slane %v3613_v7, %v9795_v15  ;;  %v3615_v23 = vpop.f32.mrb[23].mxu0 }
 0x85d   : > { %v3625_v24 = vrot.slane %v3615_v23, %v9795_v15 }
 0x85e   : > { %v3626_v27 = vadd.f32 %v3621_v9, %v3540_v10  ;;  %v3628_v28 = vadd.f32 %v3621_v9, %v3542_v14 }
 0x85f   : > { %v3627_v30 = vadd.f32 %v3625_v24, %v3541_v20  ;;  %v3629_v31 = vadd.f32 %v3625_v24, %v3543_v2 }
 0x860   : > { %vm3630_vm11 = vcmp.gt.f32.partialorder %v3626_v27, 0.0  ;;  %vm3632_vm12 = vcmp.gt.f32.partialorder %v3628_v28, 0.0  ;;  %v3634_v35 = vmul.f32 0.2, %v3626_v27  ;;  %v3636_v16 = vmul.f32 0.2, %v3628_v28 }
 0x861   : > { %vm3631_vm13 = vcmp.gt.f32.partialorder %v3627_v30, 0.0  ;;  %vm3633_vm14 = vcmp.gt.f32.partialorder %v3629_v31, 0.0  ;;  %v3635_v53 = vmul.f32 0.2, %v3627_v30  ;;  %v3637_v17 = vmul.f32 0.2, %v3629_v31 }
 0x862   : > { %v3638_v36 = vsel %vm3630_vm11, %v3626_v27, %v3634_v35  ;;  %v3640_v5 = vsel %vm3632_vm12, %v3628_v28, %v3636_v16  ;;  %v8754_v16 = vld [vmem:[%s11716_s10 + $0x14] ss:$8 sps:$4 sm:$0xff]  }
 0x863   : > { %v3639_v37 = vsel %vm3631_vm13, %v3627_v30, %v3635_v53  ;;  %v3641_v38 = vsel %vm3633_vm14, %v3629_v31, %v3637_v17  ;;  %v3642_v42 = vpack.c.bf16 %v3640_v5, %v3638_v36  ;;  %v8749_v30 = vld [vmem:[%s11716_s10] ss:$8 sps:$4 sm:$0xff]   ;;  %v8752_v17 = vld [vmem:[%s11716_s10 + $0x10] ss:$8 sps:$4 sm:$0xff]   ;;  %v8757_v36 = vld [vmem:[%s11716_s10 + $0x24] ss:$8 sps:$4 sm:$0xff]  }
 0x864   : > { %v3643_v44 = vpack.c.bf16 %v3641_v38, %v3639_v37  ;;  %v8755_v5 = vld [vmem:[%s11716_s10 + $0x20] ss:$8 sps:$4 sm:$0xff]   ;;  %v8760_v37 = vld [vmem:[%s11716_s10 + $0x34] ss:$8 sps:$4 sm:$0xff]   ;;  %v8758_v38 = vld [vmem:[%s11716_s10 + $0x30] ss:$8 sps:$4 sm:$0xff]  }
 0x866   : > { %3648 = vmatprep.subr.bf16.mxu0 %v3643_v44  ;;  %4211 = vmatprep.subr.bf16.mxu1 %v3643_v44 }
 0x867   : > { %3649 = vmatpush1.bf16.msra.mxu0 %v3642_v42  ;;  %4212 = vmatpush1.bf16.msra.mxu1 %v3642_v42 }
 0x868   : > { %3728 = vmatprep.subr.bf16.mxu0 %v3643_v44  ;;  %4495 = vmatprep.subr.bf16.mxu1 %v3643_v44  ;;  %v8761_v44 = vld [vmem:[%s11716_s10 + $0x40] ss:$8 sps:$4 sm:$0xff]  }
 0x86a   : > { %7292 = vmatmul.mubr.msk.bf16.vlgmr.msra.gmra.mrb[24].mxu0 %vm3457_vm10, %v3644_v21  ;;  %7392 = vmatmul.mubr.msk.bf16.vlgmr.msra.gmra.mrb[44].mxu1 %vm3457_vm10, %v7391_v22  ;;  %v8766_v21 = vld [vmem:[%s11716_s10 + $0x54] ss:$8 sps:$4 sm:$0xff]   ;;  %v8764_v22 = vld [vmem:[%s11716_s10 + $0x50] ss:$8 sps:$4 sm:$0xff]  }
 0x86b   : > { %3729 = vmatpush1.bf16.msra.mxu0 %v3642_v42  ;;  %4496 = vmatpush1.bf16.msra.mxu1 %v3642_v42  ;;  %v8763_v42 = vld [vmem:[%s11716_s10 + $0x44] ss:$8 sps:$4 sm:$0xff]  }
 0x86c   : > { %3760 = vmatprep.mubr.bf16.mxu0 %v9100_v0  ;;  %3964 = vmatprep.subr.bf16.mxu0 %v8703_v43  ;;  %v8769_v43 = vld [vmem:[%s11716_s10 + $0x64] ss:$8 sps:$4 sm:$0xff]  }
 0x86d   : > { %4527 = vmatprep.mubr.bf16.mxu1 %v9100_v0 }
 0x872   : > { %7294 = vmatmul.mubr.msk.bf16.vlgmr.msra.gmra.mrb[28].mxu0 %vm3457_vm10, %v7293_v45  ;;  %7458 = vmatmul.mubr.msk.bf16.vlgmr.msra.gmra.mrb[48].mxu1 %vm3457_vm10, %v7457_v48  ;;  %v8767_v45 = vld [vmem:[%s11716_s10 + $0x60] ss:$8 sps:$4 sm:$0xff]   ;;  %v8770_v48 = vld [vmem:[%s11716_s10 + $0x70] ss:$8 sps:$4 sm:$0xff]  }
 0x873   : > { %3965 = vmatpush1.bf16.msra.mxu0 %v8701_v47  ;;  %v8772_v47 = vld [vmem:[%s11716_s10 + $0x74] ss:$8 sps:$4 sm:$0xff]  }
 0x874   : > { %3966 = vmatprep.subr.bf16.mxu0 %v8706_v32  ;;  %v8775_v32 = vld [vmem:[%s11716_s10 + $0x84] ss:$8 sps:$4 sm:$0xff]  }
 0x877   : > { %3967 = vmatpush1.bf16.msra.mxu0 %v8704_v25  ;;  %v8773_v25 = vld [vmem:[%s11716_s10 + $0x80] ss:$8 sps:$4 sm:$0xff]  }
 0x878   : > { %3968 = vmatprep.subr.bf16.mxu0 %v8709_v26  ;;  %v8778_v26 = vld [vmem:[%s11716_s10 + $0x94] ss:$8 sps:$4 sm:$0xff]  }
 0x87b   : > { %3969 = vmatpush1.bf16.msra.mxu0 %v8707_v33  ;;  %v8776_v33 = vld [vmem:[%s11716_s10 + $0x90] ss:$8 sps:$4 sm:$0xff]  }
 0x87c   : > { %3970 = vmatprep.subr.bf16.mxu0 %v8712_v34  ;;  %v8781_v34 = vld [vmem:[%s11716_s10 + $0xa4] ss:$8 sps:$4 sm:$0xff]  }
 0x87f   : > { %3971 = vmatpush1.bf16.msra.mxu0 %v8710_v39  ;;  %v8779_v39 = vld [vmem:[%s11716_s10 + $0xa0] ss:$8 sps:$4 sm:$0xff]  }
 0x880   : > { %3972 = vmatprep.subr.bf16.mxu0 %v8715_v40  ;;  %v8784_v40 = vld [vmem:[%s11716_s10 + $0xb4] ss:$8 sps:$4 sm:$0xff]  }
 0x883   : > { %3973 = vmatpush1.bf16.msra.mxu0 %v8713_v18  ;;  %v8782_v18 = vld [vmem:[%s11716_s10 + $0xb0] ss:$8 sps:$4 sm:$0xff]  }
 0x884   : > { %3974 = vmatprep.subr.bf16.mxu0 %v8718_v49  ;;  %v8787_v49 = vld [vmem:[%s11716_s10 + $0xc4] ss:$8 sps:$4 sm:$0xff]  }
 0x887   : > { %3975 = vmatpush1.bf16.msra.mxu0 %v8716_v29  ;;  %v8785_v29 = vld [vmem:[%s11716_s10 + $0xc0] ss:$8 sps:$4 sm:$0xff]  }
 0x888   : > { %3976 = vmatprep.subr.bf16.mxu0 %v8721_v41  ;;  %v8790_v41 = vld [vmem:[%s11716_s10 + $0xd4] ss:$8 sps:$4 sm:$0xff]  }
 0x88b   : > { %3977 = vmatpush1.bf16.msra.mxu0 %v8719_v50  ;;  %v8788_v50 = vld [vmem:[%s11716_s10 + $0xd0] ss:$8 sps:$4 sm:$0xff]  }
 0x88c   : > { %3978 = vmatprep.subr.bf16.mxu0 %v8724_v52  ;;  %v8793_v52 = vld [vmem:[%s11716_s10 + $0xe4] ss:$8 sps:$4 sm:$0xff]  }
 0x88f   : > { %3979 = vmatpush1.bf16.msra.mxu0 %v8722_v54  ;;  %v8791_v54 = vld [vmem:[%s11716_s10 + $0xe0] ss:$8 sps:$4 sm:$0xff]  }
 0x890   : > { %3980 = vmatprep.subr.bf16.mxu0 %v8727_v56  ;;  %v8796_v56 = vld [vmem:[%s11716_s10 + $0xf4] ss:$8 sps:$4 sm:$0xff]  }
 0x893   : > { %3981 = vmatpush1.bf16.msra.mxu0 %v8725_v60 }
 0x894   : > { %3982 = vmatprep.subr.bf16.mxu0 %v8730_v61  ;;  %v8794_v61 = vld [vmem:[%s11716_s10 + $0xf0] ss:$8 sps:$4 sm:$0xff]  }
 0x897   : > { %3983 = vmatpush1.bf16.msra.mxu0 %v8728_v62 }
 0x898   : > { %3984 = vmatprep.subr.bf16.mxu0 %v8733_v63  ;;  %v8799_v63 = vld [vmem:[%s11716_s10 + $0x204] ss:$8 sps:$4 sm:$0xff]  }
 0x89b   : > { %3985 = vmatpush1.bf16.msra.mxu0 %v8731_v1 }
 0x89c   : > { %3986 = vmatprep.subr.bf16.mxu0 %v8736_v4 }
 0x89f   : > { %3987 = vmatpush1.bf16.msra.mxu0 %v8734_v13  ;;  %v8797_v13 = vld [vmem:[%s11716_s10 + $0x200] ss:$8 sps:$4 sm:$0xff]  }
 0x8a0   : > { %3988 = vmatprep.subr.bf16.mxu0 %v8739_v51 }
 0x8a3   : > { %3989 = vmatpush1.bf16.msra.mxu0 %v8737_v55 }
 0x8a4   : > { %3990 = vmatprep.subr.bf16.mxu0 %v8742_v58  ;;  %v8802_v58 = vld [vmem:[%s11716_s10 + $0x214] ss:$8 sps:$4 sm:$0xff]  }
 0x8a7   : > { %3991 = vmatpush1.bf16.msra.mxu0 %v8740_v6  ;;  %v8800_v6 = vld [vmem:[%s11716_s10 + $0x210] ss:$8 sps:$4 sm:$0xff]  }
 0x8a8   : > { %3992 = vmatprep.subr.bf16.mxu0 %v8745_v12  ;;  %v8805_v12 = vld [vmem:[%s11716_s10 + $0x224] ss:$8 sps:$4 sm:$0xff]  }
 0x8ab   : > { %3993 = vmatpush1.bf16.msra.mxu0 %v8743_v3  ;;  %v4790_v3 = vld [vmem:[%s11718_s12 + $0x80] sm:$0xff] }
 0x8ac   : > { %3994 = vmatprep.subr.bf16.mxu0 %v8748_v8  ;;  %v4791_v8 = vld [vmem:[%s11718_s12 + $0x88] sm:$0xff] }
 0x8af   : > { %3995 = vmatpush1.bf16.msra.mxu0 %v8746_v11  ;;  %v4774_v11 = vld [vmem:[%s11718_s12] sm:$0xff] }
 0x8b0   : > { %4165 = vmatprep.subr.bf16.mxu0 %v8751_v57  ;;  %v10681_v57 = vpack.c.bf16 %v4791_v8, %v4790_v3  ;;  %v8845_v8 = vld [vmem:[%s11716_s10 + $0x300] ss:$8 sps:$4 sm:$0xff]  }
 0x8b2   : > { %8048 = vmatprep.subr.bf16.mxu1 %v10681_v57 }
 0x93d   : > { %v10550_v59 = vpop.f32.mrb[24].mxu0  ;;  %v10552_v20 = vpop.f32.mrb[44].mxu1 }
 0x93e   : > { %v3684_v19 = vpop.f32.mrb[25].mxu0  ;;  %v10554_v2 = vpop.f32.mrb[45].mxu1  ;;  %v3689_v55 = vpack.c.bf16 %v10550_v59, %v10550_v59  ;;  %v4775_v59 = vld [vmem:[%s11718_s12 + $0x8] sm:$0xff]  ;;  %v4252_v3 = vpack.c.bf16 %v10552_v20, %v10552_v20 }
 0x93f   : > { %v3686_v10 = vpop.f32.mrb[26].mxu0  ;;  %v4249_v9 = vpop.f32.mrb[46].mxu1  ;;  %v3690_v53 = vpack.c.bf16 %v3684_v19, %v3684_v19  ;;  %v4253_v51 = vpack.c.bf16 %v10554_v2, %v10554_v2  ;;  %v4792_v19 = vld [vmem:[%s11718_s12 + $0x90] sm:$0xff]  ;;  %v8853_v20 = vld [vmem:[%s11716_s10 + $0x324] ss:$8 sps:$4 sm:$0xff]  }
 0x940   : > { %v3687_v14 = vpop.f32.mrb[27].mxu0  ;;  %v4250_v24 = vpop.f32.mrb[47].mxu1  ;;  %v4793_v10 = vld [vmem:[%s11718_s12 + $0x98] sm:$0xff] }
 0x941   : > { %v10692_v14 = vpack.c.bf16 %v4775_v59, %v4774_v11  ;;  %v10694_v2 = vpack.c.bf16 %v4793_v10, %v4792_v19  ;;  %v4777_v9 = vld [vmem:[%s11718_s12 + $0x18] sm:$0xff]  ;;  %v4795_v24 = vld [vmem:[%s11718_s12 + $0xa8] sm:$0xff] }
 0x942   : > { %v8850_v59 = vld [vmem:[%s11716_s10 + $0x314] ss:$8 sps:$4 sm:$0xff]   ;;  %v8848_v19 = vld [vmem:[%s11716_s10 + $0x310] ss:$8 sps:$4 sm:$0xff]  }
 0x943   : > { %8050 = vmatpush3.bf16.msra.mxu1 %v10692_v14  ;;  %v8856_v10 = vld [vmem:[%s11716_s10 + $0x334] ss:$8 sps:$4 sm:$0xff]  }
 0x944   : > { %8052 = vmatprep.subr.bf16.mxu1 %v10694_v2 }
 0x945   : > { %v3762_v7 = vpop.f32.mrb[28].mxu0  ;;  %v10646_v60 = vpop.f32.mrb[48].mxu1 }
 0x946   : > { %v3764_v23 = vpop.f32.mrb[29].mxu0  ;;  %v3769_v31 = vpack.c.bf16 %v3762_v7, %v3762_v7  ;;  %v10651_v62 = vpop.f32.mrb[49].mxu1  ;;  %v4776_v7 = vld [vmem:[%s11718_s12 + $0x10] sm:$0xff] }
 0x947   : > { %v3770_v27 = vpack.c.bf16 %v3764_v23, %v3764_v23  ;;  %v3766_v28 = vpop.f32.mrb[30].mxu0  ;;  %v4533_v1 = vpop.f32.mrb[50].mxu1  ;;  %v4794_v23 = vld [vmem:[%s11718_s12 + $0xa0] sm:$0xff]  ;;  %v4537_v11 = vpack.c.bf16 %v10651_v62, %v10651_v62 }
 0x948   : > { %v3767_v35 = vpop.f32.mrb[31].mxu0  ;;  %v4534_v4 = vpop.f32.mrb[51].mxu1  ;;  %v8803_v28 = vld [vmem:[%s11716_s10 + $0x220] ss:$8 sps:$4 sm:$0xff]  }
 0x949   : > { %3996 = vmatprep.mubr.bf16.mxu0 %v3770_v27  ;;  %v10710_v27 = vpack.c.bf16 %v4777_v9, %v4776_v7  ;;  %v4779_v35 = vld [vmem:[%s11718_s12 + $0x28] sm:$0xff]  ;;  %v8838_v4 = vld [vmem:[%s11716_s10 + $0x2d4] ss:$8 sps:$4 sm:$0xff]   ;;  %v8854_v7 = vld [vmem:[%s11716_s10 + $0x330] ss:$8 sps:$4 sm:$0xff]  }
 0x94a   : > { %3997 = vmatmul.mubr.bf16.vlgmr.msra.gmra.mrb[32].mxu0 %v3769_v31  ;;  %v4778_v31 = vld [vmem:[%s11718_s12 + $0x20] sm:$0xff] }
 0x94b   : > { %4166 = vmatpush1.bf16.msra.mxu0 %v8749_v30  ;;  %4197 = vmatprep.mubr.bf16.mxu0 %v3690_v53  ;;  %v10716_v30 = vpack.c.bf16 %v4795_v24, %v4794_v23  ;;  %v4796_v53 = vld [vmem:[%s11718_s12 + $0xb0] sm:$0xff]  ;;  %v8833_v1 = vld [vmem:[%s11716_s10 + $0x2c0] ss:$8 sps:$4 sm:$0xff]   ;;  %v8859_v9 = vld [vmem:[%s11716_s10 + $0x344] ss:$8 sps:$4 sm:$0xff]  }
 0x94c   : > { %4167 = vmatprep.subr.bf16.mxu0 %v8754_v16  ;;  %v8808_v16 = vld [vmem:[%s11716_s10 + $0x234] ss:$8 sps:$4 sm:$0xff]   ;;  %8054 = vmatpush3.bf16.msra.mxu1 %v10710_v27  ;;  %v8851_v62 = vld [vmem:[%s11716_s10 + $0x320] ss:$8 sps:$4 sm:$0xff]  }
 0x94d   : > { %8056 = vmatprep.subr.bf16.mxu1 %v10716_v30  ;;  %v8857_v23 = vld [vmem:[%s11716_s10 + $0x340] ss:$8 sps:$4 sm:$0xff]   ;;  %v8862_v24 = vld [vmem:[%s11716_s10 + $0x354] ss:$8 sps:$4 sm:$0xff]  }
 0x94f   : > { %4168 = vmatpush1.bf16.msra.mxu0 %v8752_v17  ;;  %v4797_v17 = vld [vmem:[%s11718_s12 + $0xb8] sm:$0xff] }
 0x950   : > { %4169 = vmatprep.subr.bf16.mxu0 %v8757_v36  ;;  %v10734_v36 = vpack.c.bf16 %v4779_v35, %v4778_v31  ;;  %v8865_v31 = vld [vmem:[%s11716_s10 + $0x364] ss:$8 sps:$4 sm:$0xff]   ;;  %v8863_v35 = vld [vmem:[%s11716_s10 + $0x360] ss:$8 sps:$4 sm:$0xff]  }
 0x952   : > { %8058 = vmatpush3.bf16.msra.mxu1 %v10734_v36 }
 0x953   : > { %4170 = vmatpush1.bf16.msra.mxu0 %v8755_v5  ;;  %v8806_v5 = vld [vmem:[%s11716_s10 + $0x230] ss:$8 sps:$4 sm:$0xff]  }
 0x954   : > { %4171 = vmatprep.subr.bf16.mxu0 %v8760_v37  ;;  %v10740_v37 = vpack.c.bf16 %v4797_v17, %v4796_v53  ;;  %v8866_v53 = vld [vmem:[%s11716_s10 + $0x370] ss:$8 sps:$4 sm:$0xff]   ;;  %v8871_v17 = vld [vmem:[%s11716_s10 + $0x384] ss:$8 sps:$4 sm:$0xff]  }
 0x956   : > { %8060 = vmatprep.subr.bf16.mxu1 %v10740_v37 }
 0x957   : > { %4172 = vmatpush1.bf16.msra.mxu0 %v8758_v38  ;;  %v4780_v38 = vld [vmem:[%s11718_s12 + $0x30] sm:$0xff] }
 0x958   : > { %4173 = vmatprep.subr.bf16.mxu0 %v8763_v42  ;;  %v4781_v42 = vld [vmem:[%s11718_s12 + $0x38] sm:$0xff] }
 0x95b   : > { %4174 = vmatpush1.bf16.msra.mxu0 %v8761_v44  ;;  %v8811_v44 = vld [vmem:[%s11716_s10 + $0x244] ss:$8 sps:$4 sm:$0xff]  }
 0x95c   : > { %4175 = vmatprep.subr.bf16.mxu0 %v8766_v21  ;;  %v4798_v21 = vld [vmem:[%s11718_s12 + $0xc0] sm:$0xff] }
 0x95f   : > { %4176 = vmatpush1.bf16.msra.mxu0 %v8764_v22  ;;  %v4799_v22 = vld [vmem:[%s11718_s12 + $0xc8] sm:$0xff] }
 0x960   : > { %4177 = vmatprep.subr.bf16.mxu0 %v8769_v43  ;;  %v10758_v43 = vpack.c.bf16 %v4781_v42, %v4780_v38  ;;  %v8874_v38 = vld [vmem:[%s11716_s10 + $0x394] ss:$8 sps:$4 sm:$0xff]   ;;  %v8872_v42 = vld [vmem:[%s11716_s10 + $0x390] ss:$8 sps:$4 sm:$0xff]  }
 0x962   : > { %8062 = vmatpush3.bf16.msra.mxu1 %v10758_v43 }
 0x963   : > { %4178 = vmatpush1.bf16.msra.mxu0 %v8767_v45  ;;  %v8809_v45 = vld [vmem:[%s11716_s10 + $0x240] ss:$8 sps:$4 sm:$0xff]  }
 0x964   : > { %4179 = vmatprep.subr.bf16.mxu0 %v8772_v47  ;;  %v10764_v47 = vpack.c.bf16 %v4799_v22, %v4798_v21  ;;  %v8875_v21 = vld [vmem:[%s11716_s10 + $0x3a0] ss:$8 sps:$4 sm:$0xff]   ;;  %v8880_v22 = vld [vmem:[%s11716_s10 + $0x3b4] ss:$8 sps:$4 sm:$0xff]  }
 0x966   : > { %8064 = vmatprep.subr.bf16.mxu1 %v10764_v47 }
 0x967   : > { %4180 = vmatpush1.bf16.msra.mxu0 %v8770_v48  ;;  %v4782_v48 = vld [vmem:[%s11718_s12 + $0x40] sm:$0xff] }
 0x968   : > { %4181 = vmatprep.subr.bf16.mxu0 %v8775_v32  ;;  %v4783_v32 = vld [vmem:[%s11718_s12 + $0x48] sm:$0xff] }
 0x96b   : > { %4182 = vmatpush1.bf16.msra.mxu0 %v8773_v25  ;;  %v8814_v25 = vld [vmem:[%s11716_s10 + $0x254] ss:$8 sps:$4 sm:$0xff]  }
 0x96c   : > { %4183 = vmatprep.subr.bf16.mxu0 %v8778_v26  ;;  %v10776_v26 = vpack.c.bf16 %v4783_v32, %v4782_v48  ;;  %v8883_v48 = vld [vmem:[%s11716_s10 + $0x3c4] ss:$8 sps:$4 sm:$0xff]   ;;  %v8881_v32 = vld [vmem:[%s11716_s10 + $0x3c0] ss:$8 sps:$4 sm:$0xff]  }
 0x96e   : > { %8066 = vmatpush3.bf16.msra.mxu1 %v10776_v26 }
 0x96f   : > { %4184 = vmatpush1.bf16.msra.mxu0 %v8776_v33  ;;  %v8812_v33 = vld [vmem:[%s11716_s10 + $0x250] ss:$8 sps:$4 sm:$0xff]  }
 0x970   : > { %4185 = vmatprep.subr.bf16.mxu0 %v8781_v34  ;;  %v8817_v34 = vld [vmem:[%s11716_s10 + $0x264] ss:$8 sps:$4 sm:$0xff]  }
 0x973   : > { %4186 = vmatpush1.bf16.msra.mxu0 %v8779_v39  ;;  %v8815_v39 = vld [vmem:[%s11716_s10 + $0x260] ss:$8 sps:$4 sm:$0xff]  }
 0x974   : > { %4187 = vmatprep.subr.bf16.mxu0 %v8784_v40  ;;  %v8820_v40 = vld [vmem:[%s11716_s10 + $0x274] ss:$8 sps:$4 sm:$0xff]  }
 0x977   : > { %4188 = vmatpush1.bf16.msra.mxu0 %v8782_v18  ;;  %v8818_v18 = vld [vmem:[%s11716_s10 + $0x270] ss:$8 sps:$4 sm:$0xff]  }
 0x978   : > { %4189 = vmatprep.subr.bf16.mxu0 %v8787_v49  ;;  %v8823_v49 = vld [vmem:[%s11716_s10 + $0x284] ss:$8 sps:$4 sm:$0xff]  }
 0x97b   : > { %4190 = vmatpush1.bf16.msra.mxu0 %v8785_v29  ;;  %v8821_v29 = vld [vmem:[%s11716_s10 + $0x280] ss:$8 sps:$4 sm:$0xff]  }
 0x97c   : > { %4191 = vmatprep.subr.bf16.mxu0 %v8790_v41  ;;  %v8826_v41 = vld [vmem:[%s11716_s10 + $0x294] ss:$8 sps:$4 sm:$0xff]  }
 0x97f   : > { %4192 = vmatpush1.bf16.msra.mxu0 %v8788_v50  ;;  %v8824_v50 = vld [vmem:[%s11716_s10 + $0x290] ss:$8 sps:$4 sm:$0xff]  }
 0x980   : > { %4193 = vmatprep.subr.bf16.mxu0 %v8793_v52  ;;  %v8829_v52 = vld [vmem:[%s11716_s10 + $0x2a4] ss:$8 sps:$4 sm:$0xff]  }
 0x983   : > { %4194 = vmatpush1.bf16.msra.mxu0 %v8791_v54  ;;  %v8827_v54 = vld [vmem:[%s11716_s10 + $0x2a0] ss:$8 sps:$4 sm:$0xff]  }
 0x984   : > { %4195 = vmatprep.subr.bf16.mxu0 %v8796_v56  ;;  %v8832_v56 = vld [vmem:[%s11716_s10 + $0x2b4] ss:$8 sps:$4 sm:$0xff]  }
 0x987   : > { %4196 = vmatpush1.bf16.msra.mxu0 %v8794_v61  ;;  %v8830_v61 = vld [vmem:[%s11716_s10 + $0x2b0] ss:$8 sps:$4 sm:$0xff]  }
 0x988   : > { %4447 = vmatprep.subr.bf16.mxu0 %v8799_v63  ;;  %v8835_v63 = vld [vmem:[%s11716_s10 + $0x2c4] ss:$8 sps:$4 sm:$0xff]  }
 0x98a   : > { %4198 = vmatmul.mubr.bf16.vlgmr.msra.gmra.mrb[32].mxu0 %v3689_v55  ;;  %v8839_v55 = vld [vmem:[%s11716_s10 + $0x2e0] ss:$8 sps:$4 sm:$0xff]  }
 0x98b   : > { %4448 = vmatpush1.bf16.msra.mxu0 %v8797_v13  ;;  %4479 = vmatprep.mubr.bf16.mxu0 %v4253_v51  ;;  %v8836_v13 = vld [vmem:[%s11716_s10 + $0x2d0] ss:$8 sps:$4 sm:$0xff]   ;;  %v8841_v51 = vld [vmem:[%s11716_s10 + $0x2e4] ss:$8 sps:$4 sm:$0xff]  }
 0x98c   : > { %4449 = vmatprep.subr.bf16.mxu0 %v8802_v58  ;;  %v8844_v58 = vld [vmem:[%s11716_s10 + $0x2f4] ss:$8 sps:$4 sm:$0xff]  }
 0x98f   : > { %4450 = vmatpush1.bf16.msra.mxu0 %v8800_v6  ;;  %v8842_v6 = vld [vmem:[%s11716_s10 + $0x2f0] ss:$8 sps:$4 sm:$0xff]  }
 0x990   : > { %4451 = vmatprep.subr.bf16.mxu0 %v8805_v12  ;;  %v8847_v12 = vld [vmem:[%s11716_s10 + $0x304] ss:$8 sps:$4 sm:$0xff]  }
 0x993   : > { %4452 = vmatpush1.bf16.msra.mxu0 %v8803_v28  ;;  %v8860_v28 = vld [vmem:[%s11716_s10 + $0x350] ss:$8 sps:$4 sm:$0xff]  }
 0x994   : > { %4453 = vmatprep.subr.bf16.mxu0 %v8808_v16  ;;  %v8868_v16 = vld [vmem:[%s11716_s10 + $0x374] ss:$8 sps:$4 sm:$0xff]  }
 0x997   : > { %4454 = vmatpush1.bf16.msra.mxu0 %v8806_v5  ;;  %v8869_v5 = vld [vmem:[%s11716_s10 + $0x380] ss:$8 sps:$4 sm:$0xff]  }
 0x998   : > { %4455 = vmatprep.subr.bf16.mxu0 %v8811_v44  ;;  %v8877_v44 = vld [vmem:[%s11716_s10 + $0x3a4] ss:$8 sps:$4 sm:$0xff]  }
 0x99b   : > { %4456 = vmatpush1.bf16.msra.mxu0 %v8809_v45  ;;  %v8878_v45 = vld [vmem:[%s11716_s10 + $0x3b0] ss:$8 sps:$4 sm:$0xff]  }
 0x99c   : > { %4457 = vmatprep.subr.bf16.mxu0 %v8814_v25  ;;  %v8886_v25 = vld [vmem:[%s11716_s10 + $0x3d4] ss:$8 sps:$4 sm:$0xff]  }
 0x99f   : > { %4458 = vmatpush1.bf16.msra.mxu0 %v8812_v33  ;;  %v8884_v33 = vld [vmem:[%s11716_s10 + $0x3d0] ss:$8 sps:$4 sm:$0xff]  }
 0x9a0   : > { %4459 = vmatprep.subr.bf16.mxu0 %v8817_v34  ;;  %v8889_v34 = vld [vmem:[%s11716_s10 + $0x3e4] ss:$8 sps:$4 sm:$0xff]  }
 0x9a3   : > { %4460 = vmatpush1.bf16.msra.mxu0 %v8815_v39  ;;  %v8887_v39 = vld [vmem:[%s11716_s10 + $0x3e0] ss:$8 sps:$4 sm:$0xff]  }
 0x9a4   : > { %4461 = vmatprep.subr.bf16.mxu0 %v8820_v40  ;;  %v8892_v40 = vld [vmem:[%s11716_s10 + $0x3f4] ss:$8 sps:$4 sm:$0xff]  }
 0x9a7   : > { %4462 = vmatpush1.bf16.msra.mxu0 %v8818_v18  ;;  %v8890_v18 = vld [vmem:[%s11716_s10 + $0x3f0] ss:$8 sps:$4 sm:$0xff]  }
 0x9a8   : > { %4463 = vmatprep.subr.bf16.mxu0 %v8823_v49  ;;  %v4536_v49 = vpack.c.bf16 %v10646_v60, %v10646_v60  ;;  %v4785_v60 = vld [vmem:[%s11718_s12 + $0x58] sm:$0xff] }
 0x9ab   : > { %4464 = vmatpush1.bf16.msra.mxu0 %v8821_v29  ;;  %v4800_v29 = vld [vmem:[%s11718_s12 + $0xd0] sm:$0xff] }
 0x9ac   : > { %4465 = vmatprep.subr.bf16.mxu0 %v8826_v41  ;;  %v4801_v41 = vld [vmem:[%s11718_s12 + $0xd8] sm:$0xff] }
 0x9af   : > { %4466 = vmatpush1.bf16.msra.mxu0 %v8824_v50  ;;  %v8067_v50 = vpack.c.bf16 %v4801_v41, %v4800_v29 }
 0x9b0   : > { %4467 = vmatprep.subr.bf16.mxu0 %v8829_v52  ;;  %v4784_v52 = vld [vmem:[%s11718_s12 + $0x50] sm:$0xff] }
 0x9b1   : > { %8068 = vmatprep.subr.bf16.mxu1 %v8067_v50 }
 0x9b3   : > { %4468 = vmatpush1.bf16.msra.mxu0 %v8827_v54  ;;  %v8069_v54 = vpack.c.bf16 %v4785_v60, %v4784_v52 }
 0x9b4   : > { %4469 = vmatprep.subr.bf16.mxu0 %v8832_v56  ;;  %v4802_v56 = vld [vmem:[%s11718_s12 + $0xe0] sm:$0xff] }
 0x9b5   : > { %8070 = vmatpush3.bf16.msra.mxu1 %v8069_v54 }
 0x9b7   : > { %4470 = vmatpush1.bf16.msra.mxu0 %v8830_v61  ;;  %v4803_v61 = vld [vmem:[%s11718_s12 + $0xe8] sm:$0xff] }
 0x9b8   : > { %4471 = vmatprep.subr.bf16.mxu0 %v8835_v63  ;;  %v8071_v63 = vpack.c.bf16 %v4803_v61, %v4802_v56 }
 0x9ba   : > { %8072 = vmatprep.subr.bf16.mxu1 %v8071_v63 }
 0x9bb   : > { %4472 = vmatpush1.bf16.msra.mxu0 %v8833_v1  ;;  %v4786_v1 = vld [vmem:[%s11718_s12 + $0x60] sm:$0xff] }
 0x9bc   : > { %4473 = vmatprep.subr.bf16.mxu0 %v8838_v4  ;;  %v4787_v4 = vld [vmem:[%s11718_s12 + $0x68] sm:$0xff] }
 0x9bf   : > { %4474 = vmatpush1.bf16.msra.mxu0 %v8836_v13  ;;  %v8073_v13 = vpack.c.bf16 %v4787_v4, %v4786_v1 }
 0x9c0   : > { %4475 = vmatprep.subr.bf16.mxu0 %v8841_v51  ;;  %v4804_v51 = vld [vmem:[%s11718_s12 + $0xf0] sm:$0xff] }
 0x9c1   : > { %8074 = vmatpush3.bf16.msra.mxu1 %v8073_v13 }
 0x9c3   : > { %4476 = vmatpush1.bf16.msra.mxu0 %v8839_v55  ;;  %v4805_v55 = vld [vmem:[%s11718_s12 + $0xf8] sm:$0xff] }
 0x9c4   : > { %4477 = vmatprep.subr.bf16.mxu0 %v8844_v58  ;;  %v4788_v58 = vld [vmem:[%s11718_s12 + $0x70] sm:$0xff] }
 0x9c7   : > { %4478 = vmatpush1.bf16.msra.mxu0 %v8842_v6  ;;  %v8075_v6 = vpack.c.bf16 %v4805_v55, %v4804_v51 }
 0x9c8   : > { %4731 = vmatprep.subr.bf16.mxu0 %v8847_v12  ;;  %v4789_v12 = vld [vmem:[%s11718_s12 + $0x78] sm:$0xff] }
 0x9c9   : > { %8076 = vmatprep.subr.bf16.mxu1 %v8075_v6 }
 0x9ca   : > { %4480 = vmatmul.mubr.bf16.vlgmr.msra.gmra.mrb[32].mxu0 %v4252_v3  ;;  %v8077_v3 = vpack.c.bf16 %v4789_v12, %v4788_v58 }
 0x9cb   : > { %4732 = vmatpush1.bf16.msra.mxu0 %v8845_v8  ;;  %4763 = vmatprep.mubr.bf16.mxu0 %v4537_v11 }
 0x9cc   : > { %4733 = vmatprep.subr.bf16.mxu0 %v8850_v59  ;;  %8078 = vmatpush3.bf16.msra.mxu1 %v8077_v3 }
 0x9cd   : > { %8080 = vmatprep.subr.bf16.mxu1 %v10681_v57 }
 0x9cf   : > { %4734 = vmatpush1.bf16.msra.mxu0 %v8848_v19 }
 0x9d0   : > { %4735 = vmatprep.subr.bf16.mxu0 %v8853_v20 }
 0x9d3   : > { %4736 = vmatpush1.bf16.msra.mxu0 %v8851_v62 }
 0x9d4   : > { %4737 = vmatprep.subr.bf16.mxu0 %v8856_v10 }
 0x9d7   : > { %4738 = vmatpush1.bf16.msra.mxu0 %v8854_v7 }
 0x9d8   : > { %4739 = vmatprep.subr.bf16.mxu0 %v8859_v9 }
 0x9db   : > { %4740 = vmatpush1.bf16.msra.mxu0 %v8857_v23 }
 0x9dc   : > { %4741 = vmatprep.subr.bf16.mxu0 %v8862_v24 }
 0x9df   : > { %4742 = vmatpush1.bf16.msra.mxu0 %v8860_v28 }
 0x9e0   : > { %4743 = vmatprep.subr.bf16.mxu0 %v8865_v31 }
 0x9e3   : > { %4744 = vmatpush1.bf16.msra.mxu0 %v8863_v35 }
 0x9e4   : > { %4745 = vmatprep.subr.bf16.mxu0 %v8868_v16 }
 0x9e7   : > { %4746 = vmatpush1.bf16.msra.mxu0 %v8866_v53 }
 0x9e8   : > { %4747 = vmatprep.subr.bf16.mxu0 %v8871_v17 }
 0x9eb   : > { %4748 = vmatpush1.bf16.msra.mxu0 %v8869_v5 }
 0x9ec   : > { %4749 = vmatprep.subr.bf16.mxu0 %v8874_v38 }
 0x9ef   : > { %4750 = vmatpush1.bf16.msra.mxu0 %v8872_v42 }
 0x9f0   : > { %4751 = vmatprep.subr.bf16.mxu0 %v8877_v44 }
 0x9f3   : > { %4752 = vmatpush1.bf16.msra.mxu0 %v8875_v21 }
 0x9f4   : > { %4753 = vmatprep.subr.bf16.mxu0 %v8880_v22 }
 0x9f7   : > { %4754 = vmatpush1.bf16.msra.mxu0 %v8878_v45 }
 0x9f8   : > { %4755 = vmatprep.subr.bf16.mxu0 %v8883_v48 }
 0x9fb   : > { %4756 = vmatpush1.bf16.msra.mxu0 %v8881_v32  ;;  %v4989_v32 = vld [vmem:[%s11719_s13 + $0x28] sm:$0xff] }
 0x9fc   : > { %4757 = vmatprep.subr.bf16.mxu0 %v8886_v25  ;;  %v4991_v25 = vld [vmem:[%s11719_s13 + $0x38] sm:$0xff] }
 0x9ff   : > { %4758 = vmatpush1.bf16.msra.mxu0 %v8884_v33 }
 0xa00   : > { %4759 = vmatprep.subr.bf16.mxu0 %v8889_v34  ;;  %v8115_v34 = vpack.c.bf16 %v4991_v25, %v4989_v32  ;;  %v8914_v32 = vld [vmem:[%s11721_s15 + $0x170] ss:$8 sps:$4 sm:$0xff]   ;;  %v8919_v25 = vld [vmem:[%s11721_s15 + $0x184] ss:$8 sps:$4 sm:$0xff]  }
 0xa03   : > { %4760 = vmatpush1.bf16.msra.mxu0 %v8887_v39  ;;  %v4988_v39 = vld [vmem:[%s11719_s13 + $0x20] sm:$0xff] }
 0xa04   : > { %4761 = vmatprep.subr.bf16.mxu0 %v8892_v40  ;;  %v4990_v40 = vld [vmem:[%s11719_s13 + $0x30] sm:$0xff] }
 0xa07   : > { %4762 = vmatpush1.bf16.msra.mxu0 %v8890_v18  ;;  %v8117_v18 = vpack.c.bf16 %v4990_v40, %v4988_v39  ;;  %v8920_v39 = vld [vmem:[%s11721_s15 + $0x190] ss:$8 sps:$4 sm:$0xff]   ;;  %v8925_v40 = vld [vmem:[%s11721_s15 + $0x1a4] ss:$8 sps:$4 sm:$0xff]  }
 0xa0a   : > { %4764 = vmatmul.mubr.bf16.vlgmr.msra.gmra.mrb[32].mxu0 %v4536_v49 }
 0xa0b   : > { %6059 = vmatprep.mubr.bf16.mxu0 %v9100_v0 }
 0xadd   : > { %v10983_v8 = vpop.f32.mrb[32].mxu0 }
 0xade   : > { %v4806_v11 = vrot.slane %v10983_v8, 4  ;;  %v10986_v59 = vpop.f32.mrb[33].mxu0  ;;  %v4818_v22 = vmul.f32 %v10983_v8, %v10983_v8 }
 0xadf   : > { %v4812_v19 = vrot.slane %v10986_v59, 4  ;;  %v4819_v20 = vmul.f32 %v10986_v59, %v10986_v59  ;;  %v4769_v62 = vpop.f32.mrb[34].mxu0 }
 0xae0   : > { %v4807_v10 = vadd.f32 %v4806_v11, %v10983_v8  ;;  %v4770_v7 = vpop.f32.mrb[35].mxu0  ;;  %v4820_v45 = vrot.slane %v4818_v22, 4 }
 0xae1   : > { %v4813_v9 = vadd.f32 %v4812_v19, %v10986_v59  ;;  %v4826_v23 = vrot.slane %v4819_v20, 4 }
 0xae2   : > { %v4808_v24 = vrot.slane %v4807_v10, 2  ;;  %v4821_v48 = vadd.f32 %v4820_v45, %v4818_v22  ;;  %v8896_v22 = vld [vmem:[%s11721_s15 + $0x110] ss:$8 sps:$4 sm:$0xff]   ;;  %v8901_v45 = vld [vmem:[%s11721_s15 + $0x124] ss:$8 sps:$4 sm:$0xff]  }
 0xae3   : > { %v4814_v57 = vrot.slane %v4813_v9, 2  ;;  %v4827_v28 = vadd.f32 %v4826_v23, %v4819_v20 }
 0xae4   : > { %v4809_v31 = vadd.f32 %v4808_v24, %v4807_v10 }
 0xae5   : > { %v4815_v35 = vadd.f32 %v4814_v57, %v4813_v9  ;;  %v4828_v16 = vrot.slane %v4827_v28, 2 }
 0xae6   : > { %v4810_v53 = vrot.slane %v4809_v31, 1 }
 0xae7   : > { %v4816_v17 = vrot.slane %v4815_v35, 1  ;;  %v4829_v5 = vadd.f32 %v4828_v16, %v4827_v28 }
 0xae8   : > { %v4811_v44 = vadd.f32 %v4810_v53, %v4809_v31 }
 0xae9   : > { %v4817_v38 = vadd.f32 %v4816_v17, %v4815_v35  ;;  %v4830_v42 = vrot.slane %v4829_v5, 1 }
 0xaeb   : > { %4896 = vmatprep.mubr.f32.mxu1 %v4817_v38  ;;  %v4831_v21 = vadd.f32 %v4830_v42, %v4829_v5  ;;  %v8895_v38 = vld [vmem:[%s11721_s15 + $0x104] ss:$8 sps:$4 sm:$0xff]   ;;  %v7527_v42 = vld [vmem:[%s11720_s14 + $0x2] sm:$0x3] }
 0xaec   : > { %4897 = vmatmul.mubr.f32.vlgmr.msra.gmra.mrb[52].mxu1 %v4811_v44  ;;  %v8893_v44 = vld [vmem:[%s11721_s15 + $0x100] ss:$8 sps:$4 sm:$0xff]  }
 0xaed   : > { %8082 = vmatpush3.bf16.msra.mxu1 %v10692_v14  ;;  %4967 = vmatprep.mubr.f32.mxu1 %v4831_v21  ;;  %v4822_v14 = vrot.slane %v4821_v48, 2  ;;  %v8898_v21 = vld [vmem:[%s11721_s15 + $0x114] ss:$8 sps:$4 sm:$0xff]  }
 0xaee   : > { %8084 = vmatprep.subr.bf16.mxu1 %v10694_v2 }
 0xaef   : > { %v4823_v2 = vadd.f32 %v4822_v14, %v4821_v48  ;;  %v8899_v48 = vld [vmem:[%s11721_s15 + $0x120] ss:$8 sps:$4 sm:$0xff]   ;;  %v8904_v14 = vld [vmem:[%s11721_s15 + $0x134] ss:$8 sps:$4 sm:$0xff]  }
 0xaf1   : > { %8086 = vmatpush3.bf16.msra.mxu1 %v10710_v27  ;;  %v4824_v27 = vrot.slane %v4823_v2, 1 }
 0xaf2   : > { %8088 = vmatprep.subr.bf16.mxu1 %v10716_v30 }
 0xaf3   : > { %v4825_v30 = vadd.f32 %v4824_v27, %v4823_v2  ;;  %v8902_v2 = vld [vmem:[%s11721_s15 + $0x130] ss:$8 sps:$4 sm:$0xff]   ;;  %v8907_v27 = vld [vmem:[%s11721_s15 + $0x144] ss:$8 sps:$4 sm:$0xff]  }
 0xaf5   : > { %8090 = vmatpush3.bf16.msra.mxu1 %v10734_v36  ;;  %v4985_v36 = vld [vmem:[%s11719_s13 + $0x8] sm:$0xff] }
 0xaf6   : > { %8092 = vmatprep.subr.bf16.mxu1 %v10740_v37  ;;  %v4987_v37 = vld [vmem:[%s11719_s13 + $0x18] sm:$0xff] }
 0xaf9   : > { %8094 = vmatpush3.bf16.msra.mxu1 %v10758_v43  ;;  %v4984_v43 = vld [vmem:[%s11719_s13] sm:$0xff] }
 0xafa   : > { %8096 = vmatprep.subr.bf16.mxu1 %v10764_v47  ;;  %v8111_v47 = vpack.c.bf16 %v4987_v37, %v4985_v36  ;;  %v8910_v36 = vld [vmem:[%s11721_s15 + $0x154] ss:$8 sps:$4 sm:$0xff]   ;;  %v8908_v37 = vld [vmem:[%s11721_s15 + $0x150] ss:$8 sps:$4 sm:$0xff]  }
 0xafd   : > { %8098 = vmatpush3.bf16.msra.mxu1 %v10776_v26  ;;  %v4986_v26 = vld [vmem:[%s11719_s13 + $0x10] sm:$0xff] }
 0xafe   : > { %8100 = vmatprep.subr.bf16.mxu1 %v8067_v50  ;;  %v8113_v33 = vpack.c.bf16 %v4986_v26, %v4984_v43  ;;  %v8913_v43 = vld [vmem:[%s11721_s15 + $0x164] ss:$8 sps:$4 sm:$0xff]   ;;  %v8916_v26 = vld [vmem:[%s11721_s15 + $0x174] ss:$8 sps:$4 sm:$0xff]  }
 0xb01   : > { %8102 = vmatpush3.bf16.msra.mxu1 %v8069_v54 }
 0xb02   : > { %8104 = vmatprep.subr.bf16.mxu1 %v8071_v63 }
 0xb05   : > { %8106 = vmatpush3.bf16.msra.mxu1 %v8073_v13  ;;  %v4977_v13 = vld [vmem:[%s11717_s11] sm:$0x1] }
 0xb06   : > { %8108 = vmatprep.subr.bf16.mxu1 %v8075_v6  ;;  %v4981_v6 = vld [vmem:[%s11717_s11 + $0x1] sm:$0x1] }
 0xb09   : > { %8110 = vmatpush3.bf16.msra.mxu1 %v8077_v3 }
 0xb0a   : > { %8112 = vmatprep.subr.bf16.mxu1 %v8111_v47 }
 0xb0c   : > { %4968 = vmatmul.mubr.f32.vlgmr.msra.gmra.mrb[54].mxu1 %v4825_v30  ;;  %v8905_v30 = vld [vmem:[%s11721_s15 + $0x140] ss:$8 sps:$4 sm:$0xff]  }
 0xb0d   : > { %5059 = vmatprep.mubr.f32.mxu1 %v9101_v46  ;;  %8114 = vmatpush1.bf16.msra.mxu1 %v8113_v33 }
 0xb0e   : > { %8116 = vmatprep.subr.bf16.mxu1 %v8115_v34 }
 0xb11   : > { %8118 = vmatpush1.bf16.msra.mxu1 %v8117_v18 }
 0xb12   : > { %8120 = vmatprep.subr.bf16.mxu1 %v8111_v47  ;;  %v8911_v47 = vld [vmem:[%s11721_s15 + $0x160] ss:$8 sps:$4 sm:$0xff]  }
 0xbbf   : > { %v7867_v49 = vpop.f32.mrb[52].mxu1 }
 0xbc0   : > { %v7868_v29 = vpop.f32.mrb[53].mxu1 }
 0xbc1   : > { %v7869_v41 = vadd.f32 %v7868_v29, %v7867_v49  ;;  %v8928_v49 = vld [vmem:[%s11721_s15 + $0x1b4] ss:$8 sps:$4 sm:$0xff]   ;;  %v8926_v29 = vld [vmem:[%s11721_s15 + $0x1b0] ss:$8 sps:$4 sm:$0xff]  }
 0xbc3   : > { %v4902_v50 = vmul.f32 0.015625, %v7869_v41  ;;  %v8931_v41 = vld [vmem:[%s11721_s15 + $0x1c4] ss:$8 sps:$4 sm:$0xff]  }
 0xbc5   : > { %v4974_v56 = vmul.f32 %v4902_v50, %v4902_v50 }
 0xbdf   : > { %v7902_v52 = vpop.f32.mrb[54].mxu1 }
 0xbe0   : > { %v7903_v60 = vpop.f32.mrb[55].mxu1 }
 0xbe1   : > { %v7904_v54 = vadd.f32 %v7903_v60, %v7902_v52  ;;  %v8934_v52 = vld [vmem:[%s11721_s15 + $0x1d4] ss:$8 sps:$4 sm:$0xff]   ;;  %v8932_v60 = vld [vmem:[%s11721_s15 + $0x1d0] ss:$8 sps:$4 sm:$0xff]  }
 0xbe3   : > { %v4973_v61 = vmul.f32 0.015625, %v7904_v54  ;;  %v8937_v54 = vld [vmem:[%s11721_s15 + $0x1e4] ss:$8 sps:$4 sm:$0xff]  }
 0xbe5   : > { %v4975_v63 = vsub.f32 %v4973_v61, %v4974_v56  ;;  %v8935_v56 = vld [vmem:[%s11721_s15 + $0x1e0] ss:$8 sps:$4 sm:$0xff]   ;;  %v8940_v61 = vld [vmem:[%s11721_s15 + $0x1f4] ss:$8 sps:$4 sm:$0xff]  }
 0xbe7   : > { %v4976_v1 = vmax.f32 %v4975_v63, 0.0  ;;  %v8938_v63 = vld [vmem:[%s11721_s15 + $0x1f0] ss:$8 sps:$4 sm:$0xff]  }
 0xbe9   : > { %v4978_v4 = vadd.f32 1e-05, %v4976_v1  ;;  %v8943_v1 = vld [vmem:[%s11721_s15 + $0x4] ss:$8 sps:$4 sm:$0xff]  }
 0xbeb   : > { %9088 = vrsqrt.f32 %v4978_v4  ;;  %v7693_v4 = vld [vmem:[%s11720_s14 + $0x6] sm:$0x3] }
 0xbf5   : > { %v9089_v51 = vpop.eup %9088 }
 0xbf6   : > { %v4980_v55 = vmul.f32 %v9089_v51, %v4977_v13 }
 0xbf8   : > { %7523 = vmatmul.mubr.msk.f32.vlgmr.msra.gmra.mrb[56].mxu1 %vm2069_vm9, %v4980_v55  ;;  %v4982_v58 = vmul.f32 %v4980_v55, %v4902_v50  ;;  %v8929_v50 = vld [vmem:[%s11721_s15 + $0x1c0] ss:$8 sps:$4 sm:$0xff]  }
 0xbf9   : > { %8122 = vmatpush1.bf16.msra.mxu1 %v8113_v33  ;;  %5143 = vmatprep.mubr.f32.mxu1 %v9101_v46  ;;  %v8917_v33 = vld [vmem:[%s11721_s15 + $0x180] ss:$8 sps:$4 sm:$0xff]  }
 0xbfa   : > { %8124 = vmatprep.subr.bf16.mxu1 %v8115_v34  ;;  %v4983_v12 = vsub.f32 %v4981_v6, %v4982_v58  ;;  %v8922_v34 = vld [vmem:[%s11721_s15 + $0x194] ss:$8 sps:$4 sm:$0xff]  }
 0xbfd   : > { %8126 = vmatpush1.bf16.msra.mxu1 %v8117_v18  ;;  %v8923_v18 = vld [vmem:[%s11721_s15 + $0x1a0] ss:$8 sps:$4 sm:$0xff]  }
 0xc00   : > { %7524 = vmatmul.mubr.msk.f32.vlgmr.msra.gmra.mrb[58].mxu1 %vm2069_vm9, %v4983_v12 }
 0xc01   : > { %5212 = vmatprep.mubr.bf16.mxu1 %v9100_v0 }
 0xccb   : > { %v5061_v3 = vpop.f32.mrb[56].mxu1 }
 0xccc   : > { %v5069_v11 = vrot.slane %v5061_v3, %v9795_v15  ;;  %v5063_v19 = vpop.f32.mrb[57].mxu1 }
 0xccd   : > { %v5073_v20 = vrot.slane %v5063_v19, %v9795_v15  ;;  %v8941_v19 = vld [vmem:[%s11721_s15] ss:$8 sps:$4 sm:$0xff]  }
 0xcce   : > { %v5074_v62 = vmul.f32 %v5069_v11, %v10983_v8 }
 0xccf   : > { %v5075_v10 = vmul.f32 %v5073_v20, %v10986_v59  ;;  %v5168_v59 = vld [vmem:[%s11720_s14] sm:$0x3] }
 0xcd3   : > { %v5145_v7 = vpop.f32.mrb[58].mxu1 }
 0xcd4   : > { %v5153_v9 = vrot.slane %v5145_v7, %v9795_v15  ;;  %v5147_v23 = vpop.f32.mrb[59].mxu1 }
 0xcd5   : > { %v5157_v24 = vrot.slane %v5147_v23, %v9795_v15  ;;  %v8949_v23 = vld [vmem:[%s11721_s15 + $0x24] ss:$8 sps:$4 sm:$0xff]  }
 0xcd6   : > { %v5158_v57 = vadd.f32 %v5153_v9, %v5074_v62  ;;  %v8944_v9 = vld [vmem:[%s11721_s15 + $0x10] ss:$8 sps:$4 sm:$0xff]  }
 0xcd7   : > { %v5159_v28 = vadd.f32 %v5157_v24, %v5075_v10  ;;  %v8946_v10 = vld [vmem:[%s11721_s15 + $0x14] ss:$8 sps:$4 sm:$0xff]   ;;  %v8947_v24 = vld [vmem:[%s11721_s15 + $0x20] ss:$8 sps:$4 sm:$0xff]  }
 0xcd8   : > { %vm5160_vm15 = vcmp.gt.f32.partialorder %v5158_v57, 0.0  ;;  %v5162_v31 = vmul.f32 0.2, %v5158_v57 }
 0xcd9   : > { %vm5161_vm1 = vcmp.gt.f32.partialorder %v5159_v28, 0.0  ;;  %v5163_v35 = vmul.f32 0.2, %v5159_v28 }
 0xcda   : > { %v5164_v16 = vsel %vm5160_vm15, %v5158_v57, %v5162_v31  ;;  %v8952_v57 = vld [vmem:[%s11721_s15 + $0x34] ss:$8 sps:$4 sm:$0xff]   ;;  %v8955_v31 = vld [vmem:[%s11721_s15 + $0x44] ss:$8 sps:$4 sm:$0xff]  }
 0xcdb   : > { %v5165_v53 = vsel %vm5161_vm1, %v5159_v28, %v5163_v35  ;;  %v5166_v17 = vpack.c.bf16 %v5164_v16, %v5164_v16  ;;  %v8950_v28 = vld [vmem:[%s11721_s15 + $0x30] ss:$8 sps:$4 sm:$0xff]   ;;  %v8953_v35 = vld [vmem:[%s11721_s15 + $0x40] ss:$8 sps:$4 sm:$0xff]   ;;  %v8958_v16 = vld [vmem:[%s11721_s15 + $0x54] ss:$8 sps:$4 sm:$0xff]  }
 0xcdc   : > { %v11045_v5 = vpack.c.bf16 %v5165_v53, %v5165_v53  ;;  %v8956_v53 = vld [vmem:[%s11721_s15 + $0x50] ss:$8 sps:$4 sm:$0xff]  }
 0xcdd   : > { %v11048_v8 = vsel %vm5173_vm2, %v5166_v17, 0  ;;  %v8961_v17 = vld [vmem:[%s11721_s15 + $0x64] ss:$8 sps:$4 sm:$0xff]  }
 0xcde   : > { %7525 = vmatprep.subr.msk.bf16.mxu1 %vm5173_vm2, %v11045_v5  ;;  %7694 = vmatprep.subr.msk.bf16.mxu0 %vm5173_vm2, %v11045_v5 }
 0xcdf   : > { %5181 = vmatpush1.bf16.msra.mxu1 %v11048_v8  ;;  %6028 = vmatpush1.bf16.msra.mxu0 %v11048_v8 }
 0xce0   : > { %7528 = vmatprep.subr.msk.bf16.mxu1 %vm5173_vm2, %v11045_v5 }
 0xce2   : > { %7526 = vmatmul.mubr.msk.bf16.vlgmr.msra.gmra.mrb[60].mxu1 %vm5169_vm3, %v5168_v59  ;;  %7695 = vmatmul.mubr.msk.bf16.vlgmr.msra.gmra.mrb[36].mxu0 %vm5169_vm3, %v7693_v4  ;;  %v8959_v59 = vld [vmem:[%s11721_s15 + $0x60] ss:$8 sps:$4 sm:$0xff]  }
 0xce3   : > { %5261 = vmatpush1.bf16.msra.mxu1 %v11048_v8  ;;  %5292 = vmatprep.mubr.bf16.mxu1 %v9100_v0  ;;  %v9013_v4 = vld [vmem:[%s11721_s15 + $0x280] ss:$8 sps:$4 sm:$0xff]  }
 0xce4   : > { %5496 = vmatprep.subr.bf16.mxu1 %v8895_v38  ;;  %v8964_v38 = vld [vmem:[%s11721_s15 + $0x74] ss:$8 sps:$4 sm:$0xff]  }
 0xcea   : > { %7529 = vmatmul.mubr.msk.bf16.vlgmr.msra.gmra.mrb[64].mxu1 %vm5169_vm3, %v7527_v42  ;;  %v8962_v42 = vld [vmem:[%s11721_s15 + $0x70] ss:$8 sps:$4 sm:$0xff]  }
 0xceb   : > { %5497 = vmatpush1.bf16.msra.mxu1 %v8893_v44  ;;  %v8967_v44 = vld [vmem:[%s11721_s15 + $0x84] ss:$8 sps:$4 sm:$0xff]  }
 0xcec   : > { %5498 = vmatprep.subr.bf16.mxu1 %v8898_v21  ;;  %v8965_v21 = vld [vmem:[%s11721_s15 + $0x80] ss:$8 sps:$4 sm:$0xff]  }
 0xcef   : > { %5499 = vmatpush1.bf16.msra.mxu1 %v8896_v22  ;;  %v8970_v22 = vld [vmem:[%s11721_s15 + $0x94] ss:$8 sps:$4 sm:$0xff]  }
 0xcf0   : > { %5500 = vmatprep.subr.bf16.mxu1 %v8901_v45  ;;  %v8968_v45 = vld [vmem:[%s11721_s15 + $0x90] ss:$8 sps:$4 sm:$0xff]  }
 0xcf3   : > { %5501 = vmatpush1.bf16.msra.mxu1 %v8899_v48  ;;  %v8973_v48 = vld [vmem:[%s11721_s15 + $0xa4] ss:$8 sps:$4 sm:$0xff]  }
 0xcf4   : > { %5502 = vmatprep.subr.bf16.mxu1 %v8904_v14  ;;  %v8971_v14 = vld [vmem:[%s11721_s15 + $0xa0] ss:$8 sps:$4 sm:$0xff]  }
 0xcf7   : > { %5503 = vmatpush1.bf16.msra.mxu1 %v8902_v2  ;;  %v8976_v2 = vld [vmem:[%s11721_s15 + $0xb4] ss:$8 sps:$4 sm:$0xff]  }
 0xcf8   : > { %5504 = vmatprep.subr.bf16.mxu1 %v8907_v27  ;;  %v8974_v27 = vld [vmem:[%s11721_s15 + $0xb0] ss:$8 sps:$4 sm:$0xff]  }
 0xcfb   : > { %5505 = vmatpush1.bf16.msra.mxu1 %v8905_v30  ;;  %v8979_v30 = vld [vmem:[%s11721_s15 + $0xc4] ss:$8 sps:$4 sm:$0xff]  }
 0xcfc   : > { %5506 = vmatprep.subr.bf16.mxu1 %v8910_v36  ;;  %v8977_v36 = vld [vmem:[%s11721_s15 + $0xc0] ss:$8 sps:$4 sm:$0xff]  }
 0xcff   : > { %5507 = vmatpush1.bf16.msra.mxu1 %v8908_v37  ;;  %v8982_v37 = vld [vmem:[%s11721_s15 + $0xd4] ss:$8 sps:$4 sm:$0xff]  }
 0xd00   : > { %5508 = vmatprep.subr.bf16.mxu1 %v8913_v43  ;;  %v8980_v43 = vld [vmem:[%s11721_s15 + $0xd0] ss:$8 sps:$4 sm:$0xff]  }
 0xd03   : > { %5509 = vmatpush1.bf16.msra.mxu1 %v8911_v47  ;;  %v8985_v47 = vld [vmem:[%s11721_s15 + $0xe4] ss:$8 sps:$4 sm:$0xff]  }
 0xd04   : > { %5510 = vmatprep.subr.bf16.mxu1 %v8916_v26  ;;  %v8983_v26 = vld [vmem:[%s11721_s15 + $0xe0] ss:$8 sps:$4 sm:$0xff]  }
 0xd07   : > { %5511 = vmatpush1.bf16.msra.mxu1 %v8914_v32  ;;  %v8988_v32 = vld [vmem:[%s11721_s15 + $0xf4] ss:$8 sps:$4 sm:$0xff]  }
 0xd08   : > { %5512 = vmatprep.subr.bf16.mxu1 %v8919_v25  ;;  %v8986_v25 = vld [vmem:[%s11721_s15 + $0xf0] ss:$8 sps:$4 sm:$0xff]  }
 0xd0b   : > { %5513 = vmatpush1.bf16.msra.mxu1 %v8917_v33 }
 0xd0c   : > { %5514 = vmatprep.subr.bf16.mxu1 %v8922_v34  ;;  %v8991_v34 = vld [vmem:[%s11721_s15 + $0x204] ss:$8 sps:$4 sm:$0xff]  }
 0xd0f   : > { %5515 = vmatpush1.bf16.msra.mxu1 %v8920_v39  ;;  %v7626_v39 = vld [vmem:[%s11720_s14 + $0x4] sm:$0x3] }
 0xd10   : > { %5516 = vmatprep.subr.bf16.mxu1 %v8925_v40  ;;  %v8989_v40 = vld [vmem:[%s11721_s15 + $0x200] ss:$8 sps:$4 sm:$0xff]  }
 0xd13   : > { %5517 = vmatpush1.bf16.msra.mxu1 %v8923_v18  ;;  %v8995_v18 = vld [vmem:[%s11721_s15 + $0x220] ss:$8 sps:$4 sm:$0xff]  }
 0xd14   : > { %5518 = vmatprep.subr.bf16.mxu1 %v8928_v49  ;;  %v9000_v49 = vld [vmem:[%s11721_s15 + $0x234] ss:$8 sps:$4 sm:$0xff]  }
 0xd17   : > { %5519 = vmatpush1.bf16.msra.mxu1 %v8926_v29  ;;  %v8998_v29 = vld [vmem:[%s11721_s15 + $0x230] ss:$8 sps:$4 sm:$0xff]  }
 0xd18   : > { %5520 = vmatprep.subr.bf16.mxu1 %v8931_v41  ;;  %v9003_v41 = vld [vmem:[%s11721_s15 + $0x244] ss:$8 sps:$4 sm:$0xff]  }
 0xd1b   : > { %5521 = vmatpush1.bf16.msra.mxu1 %v8929_v50  ;;  %v9001_v50 = vld [vmem:[%s11721_s15 + $0x240] ss:$8 sps:$4 sm:$0xff]  }
 0xd1c   : > { %5522 = vmatprep.subr.bf16.mxu1 %v8934_v52  ;;  %v9006_v52 = vld [vmem:[%s11721_s15 + $0x254] ss:$8 sps:$4 sm:$0xff]  }
 0xd1f   : > { %5523 = vmatpush1.bf16.msra.mxu1 %v8932_v60  ;;  %v9004_v60 = vld [vmem:[%s11721_s15 + $0x250] ss:$8 sps:$4 sm:$0xff]  }
 0xd20   : > { %5524 = vmatprep.subr.bf16.mxu1 %v8937_v54  ;;  %v9009_v54 = vld [vmem:[%s11721_s15 + $0x264] ss:$8 sps:$4 sm:$0xff]  }
 0xd23   : > { %5525 = vmatpush1.bf16.msra.mxu1 %v8935_v56  ;;  %v9007_v56 = vld [vmem:[%s11721_s15 + $0x260] ss:$8 sps:$4 sm:$0xff]  }
 0xd24   : > { %5526 = vmatprep.subr.bf16.mxu1 %v8940_v61  ;;  %v9012_v61 = vld [vmem:[%s11721_s15 + $0x274] ss:$8 sps:$4 sm:$0xff]  }
 0xd27   : > { %5527 = vmatpush1.bf16.msra.mxu1 %v8938_v63  ;;  %v9010_v63 = vld [vmem:[%s11721_s15 + $0x270] ss:$8 sps:$4 sm:$0xff]  }
 0xd28   : > { %5697 = vmatprep.subr.bf16.mxu1 %v8943_v1  ;;  %v9015_v1 = vld [vmem:[%s11721_s15 + $0x284] ss:$8 sps:$4 sm:$0xff]  }
 0xdb5   : > { %v11171_v13 = vpop.f32.mrb[60].mxu1 }
 0xdb6   : > { %v5216_v51 = vpop.f32.mrb[61].mxu1  ;;  %v5221_v33 = vpack.c.bf16 %v11171_v13, %v11171_v13  ;;  %v9018_v13 = vld [vmem:[%s11721_s15 + $0x294] ss:$8 sps:$4 sm:$0xff]  }
 0xdb7   : > { %v5218_v55 = vpop.f32.mrb[62].mxu1  ;;  %v5222_v7 = vpack.c.bf16 %v5216_v51, %v5216_v51  ;;  %v9016_v51 = vld [vmem:[%s11721_s15 + $0x290] ss:$8 sps:$4 sm:$0xff]  }
 0xdb8   : > { %v5219_v58 = vpop.f32.mrb[63].mxu1  ;;  %v9021_v55 = vld [vmem:[%s11721_s15 + $0x2a4] ss:$8 sps:$4 sm:$0xff]  }
 0xdb9   : > { %v9019_v58 = vld [vmem:[%s11721_s15 + $0x2a0] ss:$8 sps:$4 sm:$0xff]  }
 0xdbd   : > { %v5294_v6 = vpop.f32.mrb[64].mxu1 }
 0xdbe   : > { %v5296_v12 = vpop.f32.mrb[65].mxu1  ;;  %v5301_v20 = vpack.c.bf16 %v5294_v6, %v5294_v6  ;;  %v9024_v6 = vld [vmem:[%s11721_s15 + $0x2b4] ss:$8 sps:$4 sm:$0xff]  }
 0xdbf   : > { %v5302_v3 = vpack.c.bf16 %v5296_v12, %v5296_v12  ;;  %v5298_v11 = vpop.f32.mrb[66].mxu1  ;;  %v9022_v12 = vld [vmem:[%s11721_s15 + $0x2b0] ss:$8 sps:$4 sm:$0xff]  }
 0xdc0   : > { %v5299_v62 = vpop.f32.mrb[67].mxu1  ;;  %v9025_v11 = vld [vmem:[%s11721_s15 + $0x2c0] ss:$8 sps:$4 sm:$0xff]  }
 0xdc1   : > { %5528 = vmatprep.mubr.bf16.mxu1 %v5302_v3  ;;  %v9027_v3 = vld [vmem:[%s11721_s15 + $0x2c4] ss:$8 sps:$4 sm:$0xff]  }
 0xdc2   : > { %5529 = vmatmul.mubr.bf16.vlgmr.msra.gmra.mrb[68].mxu1 %v5301_v20  ;;  %v9028_v20 = vld [vmem:[%s11721_s15 + $0x2d0] ss:$8 sps:$4 sm:$0xff]   ;;  %v9033_v62 = vld [vmem:[%s11721_s15 + $0x2e4] ss:$8 sps:$4 sm:$0xff]  }
 0xdc3   : > { %5698 = vmatpush1.bf16.msra.mxu1 %v8941_v19  ;;  %5729 = vmatprep.mubr.bf16.mxu1 %v5222_v7  ;;  %v9030_v19 = vld [vmem:[%s11721_s15 + $0x2d4] ss:$8 sps:$4 sm:$0xff]  }
 0xdc4   : > { %5699 = vmatprep.subr.bf16.mxu1 %v8946_v10  ;;  %v9031_v10 = vld [vmem:[%s11721_s15 + $0x2e0] ss:$8 sps:$4 sm:$0xff]   ;;  %v9036_v7 = vld [vmem:[%s11721_s15 + $0x2f4] ss:$8 sps:$4 sm:$0xff]  }
 0xdc7   : > { %5700 = vmatpush1.bf16.msra.mxu1 %v8944_v9  ;;  %v9034_v9 = vld [vmem:[%s11721_s15 + $0x2f0] ss:$8 sps:$4 sm:$0xff]  }
 0xdc8   : > { %5701 = vmatprep.subr.bf16.mxu1 %v8949_v23  ;;  %v9039_v23 = vld [vmem:[%s11721_s15 + $0x304] ss:$8 sps:$4 sm:$0xff]  }
 0xdcb   : > { %5702 = vmatpush1.bf16.msra.mxu1 %v8947_v24  ;;  %v11375_v24 = vpop.f32.mrb[36].mxu0 }
 0xdcc   : > { %5703 = vmatprep.subr.bf16.mxu1 %v8952_v57  ;;  %v6063_v57 = vpop.f32.mrb[37].mxu0 }
 0xdcf   : > { %5704 = vmatpush1.bf16.msra.mxu1 %v8950_v28  ;;  %v6065_v28 = vpop.f32.mrb[38].mxu0 }
 0xdd0   : > { %5705 = vmatprep.subr.bf16.mxu1 %v8955_v31  ;;  %v6066_v31 = vpop.f32.mrb[39].mxu0  ;;  %v9078_v28 = vld [vmem:[%s11721_s15 + $0x3d4] ss:$8 sps:$4 sm:$0xff]  }
 0xdd1   : > { %v9076_v31 = vld [vmem:[%s11721_s15 + $0x3d0] ss:$8 sps:$4 sm:$0xff]  }
 0xdd3   : > { %5706 = vmatpush1.bf16.msra.mxu1 %v8953_v35  ;;  %v6322_v35 = vld [vmem:[%s11723_s17 + $0x80] sm:$0xff] }
 0xdd4   : > { %5707 = vmatprep.subr.bf16.mxu1 %v8958_v16  ;;  %v6323_v16 = vld [vmem:[%s11723_s17 + $0x88] sm:$0xff] }
 0xdd7   : > { %5708 = vmatpush1.bf16.msra.mxu1 %v8956_v53  ;;  %v6306_v53 = vld [vmem:[%s11723_s17] sm:$0xff] }
 0xdd8   : > { %5709 = vmatprep.subr.bf16.mxu1 %v8961_v17  ;;  %v11386_v17 = vpack.c.bf16 %v6323_v16, %v6322_v35  ;;  %v9081_v35 = vld [vmem:[%s11721_s15 + $0x3e4] ss:$8 sps:$4 sm:$0xff]   ;;  %v9079_v16 = vld [vmem:[%s11721_s15 + $0x3e0] ss:$8 sps:$4 sm:$0xff]  }
 0xdda   : > { %8128 = vmatprep.subr.bf16.mxu0 %v11386_v17 }
 0xddb   : > { %5710 = vmatpush1.bf16.msra.mxu1 %v8959_v59  ;;  %v6307_v59 = vld [vmem:[%s11723_s17 + $0x8] sm:$0xff] }
 0xddc   : > { %5711 = vmatprep.subr.bf16.mxu1 %v8964_v38  ;;  %v6324_v38 = vld [vmem:[%s11723_s17 + $0x90] sm:$0xff] }
 0xddf   : > { %5712 = vmatpush1.bf16.msra.mxu1 %v8962_v42  ;;  %v6325_v42 = vld [vmem:[%s11723_s17 + $0x98] sm:$0xff] }
 0xde0   : > { %5713 = vmatprep.subr.bf16.mxu1 %v8967_v44  ;;  %v11397_v44 = vpack.c.bf16 %v6307_v59, %v6306_v53  ;;  %v9084_v53 = vld [vmem:[%s11721_s15 + $0x3f4] ss:$8 sps:$4 sm:$0xff]   ;;  %v9082_v59 = vld [vmem:[%s11721_s15 + $0x3f0] ss:$8 sps:$4 sm:$0xff]  }
 0xde2   : > { %8130 = vmatpush3.bf16.msra.mxu0 %v11397_v44 }
 0xde3   : > { %5714 = vmatpush1.bf16.msra.mxu1 %v8965_v21  ;;  %v11399_v21 = vpack.c.bf16 %v6325_v42, %v6324_v38  ;;  %v6068_v38 = vpack.c.bf16 %v11375_v24, %v11375_v24  ;;  %v6314_v42 = vld [vmem:[%s11723_s17 + $0x40] sm:$0xff]  ;;  %v6333_v24 = vld [vmem:[%s11723_s17 + $0xd8] sm:$0xff] }
 0xde4   : > { %5715 = vmatprep.subr.bf16.mxu1 %v8970_v22  ;;  %v6308_v22 = vld [vmem:[%s11723_s17 + $0x10] sm:$0xff] }
 0xde5   : > { %8132 = vmatprep.subr.bf16.mxu0 %v11399_v21 }
 0xde7   : > { %5716 = vmatpush1.bf16.msra.mxu1 %v8968_v45  ;;  %v6309_v45 = vld [vmem:[%s11723_s17 + $0x18] sm:$0xff] }
 0xde8   : > { %5717 = vmatprep.subr.bf16.mxu1 %v8973_v48  ;;  %v6326_v48 = vld [vmem:[%s11723_s17 + $0xa0] sm:$0xff] }
 0xdeb   : > { %5718 = vmatpush1.bf16.msra.mxu1 %v8971_v14  ;;  %v6327_v14 = vld [vmem:[%s11723_s17 + $0xa8] sm:$0xff] }
 0xdec   : > { %5719 = vmatprep.subr.bf16.mxu1 %v8976_v2  ;;  %v11415_v2 = vpack.c.bf16 %v6309_v45, %v6308_v22  ;;  %v6315_v22 = vld [vmem:[%s11723_s17 + $0x48] sm:$0xff] }
 0xded   : > { %v11559_v45 = vpack.c.bf16 %v6315_v22, %v6314_v42  ;;  %v6527_v42 = vld [vmem:[%s11724_s18 + $0x38] sm:$0xff] }
 0xdee   : > { %8134 = vmatpush3.bf16.msra.mxu0 %v11415_v2 }
 0xdef   : > { %5720 = vmatpush1.bf16.msra.mxu1 %v8974_v27  ;;  %v11418_v27 = vpack.c.bf16 %v6327_v14, %v6326_v48  ;;  %v6332_v48 = vld [vmem:[%s11723_s17 + $0xd0] sm:$0xff] }
 0xdf0   : > { %5721 = vmatprep.subr.bf16.mxu1 %v8979_v30  ;;  %v6310_v30 = vld [vmem:[%s11723_s17 + $0x20] sm:$0xff]  ;;  %v11568_v14 = vpack.c.bf16 %v6333_v24, %v6332_v48  ;;  %v6526_v48 = vld [vmem:[%s11724_s18 + $0x30] sm:$0xff] }
 0xdf1   : > { %8136 = vmatprep.subr.bf16.mxu0 %v11418_v27 }
 0xdf3   : > { %5722 = vmatpush1.bf16.msra.mxu1 %v8977_v36  ;;  %v6311_v36 = vld [vmem:[%s11723_s17 + $0x28] sm:$0xff] }
 0xdf4   : > { %5723 = vmatprep.subr.bf16.mxu1 %v8982_v37  ;;  %v6328_v37 = vld [vmem:[%s11723_s17 + $0xb0] sm:$0xff] }
 0xdf7   : > { %5724 = vmatpush1.bf16.msra.mxu1 %v8980_v43  ;;  %v6329_v43 = vld [vmem:[%s11723_s17 + $0xb8] sm:$0xff] }
 0xdf8   : > { %5725 = vmatprep.subr.bf16.mxu1 %v8985_v47  ;;  %v11433_v47 = vpack.c.bf16 %v6311_v36, %v6310_v30  ;;  %v6316_v30 = vld [vmem:[%s11723_s17 + $0x50] sm:$0xff]  ;;  %v6317_v36 = vld [vmem:[%s11723_s17 + $0x58] sm:$0xff] }
 0xdfa   : > { %8138 = vmatpush3.bf16.msra.mxu0 %v11433_v47 }
 0xdfb   : > { %5726 = vmatpush1.bf16.msra.mxu1 %v8983_v26  ;;  %v11436_v26 = vpack.c.bf16 %v6329_v43, %v6328_v37  ;;  %v11576_v37 = vpack.c.bf16 %v6317_v36, %v6316_v30  ;;  %v6334_v43 = vld [vmem:[%s11723_s17 + $0xe0] sm:$0xff]  ;;  %v6531_v30 = vld [vmem:[%s11724_s18 + $0x58] sm:$0xff] }
 0xdfc   : > { %5727 = vmatprep.subr.bf16.mxu1 %v8988_v32  ;;  %v6312_v32 = vld [vmem:[%s11723_s17 + $0x30] sm:$0xff]  ;;  %v6528_v36 = vld [vmem:[%s11724_s18 + $0x40] sm:$0xff] }
 0xdfd   : > { %8140 = vmatprep.subr.bf16.mxu0 %v11436_v26 }
 0xdff   : > { %5728 = vmatpush1.bf16.msra.mxu1 %v8986_v25  ;;  %v6313_v25 = vld [vmem:[%s11723_s17 + $0x38] sm:$0xff] }
 0xe00   : > { %7627 = vmatprep.subr.msk.bf16.mxu1 %vm5173_vm2, %v11045_v5  ;;  %v8994_v5 = vld [vmem:[%s11721_s15 + $0x214] ss:$8 sps:$4 sm:$0xff]  }
 0xe02   : > { %5730 = vmatmul.mubr.bf16.vlgmr.msra.gmra.mrb[68].mxu1 %v5221_v33  ;;  %v6330_v33 = vld [vmem:[%s11723_s17 + $0xc0] sm:$0xff] }
 0xe03   : > { %5744 = vmatpush1.bf16.msra.mxu1 %v11048_v8  ;;  %5775 = vmatprep.mubr.bf16.mxu1 %v9100_v0  ;;  %v8992_v0 = vld [vmem:[%s11721_s15 + $0x210] ss:$8 sps:$4 sm:$0xff]   ;;  %v8997_v8 = vld [vmem:[%s11721_s15 + $0x224] ss:$8 sps:$4 sm:$0xff]  }
 0xe04   : > { %5979 = vmatprep.subr.bf16.mxu1 %v8991_v34  ;;  %v6331_v34 = vld [vmem:[%s11723_s17 + $0xc8] sm:$0xff] }
 0xe0a   : > { %7628 = vmatmul.mubr.msk.bf16.vlgmr.msra.gmra.mrb[72].mxu1 %vm5169_vm3, %v7626_v39  ;;  %v11451_v39 = vpack.c.bf16 %v6313_v25, %v6312_v32  ;;  %v6335_v32 = vld [vmem:[%s11723_s17 + $0xe8] sm:$0xff] }
 0xe0b   : > { %5980 = vmatpush1.bf16.msra.mxu1 %v8989_v40  ;;  %v11454_v40 = vpack.c.bf16 %v6331_v34, %v6330_v33  ;;  %v8151_v25 = vpack.c.bf16 %v6335_v32, %v6334_v43  ;;  %v6318_v33 = vld [vmem:[%s11723_s17 + $0x60] sm:$0xff]  ;;  %v6319_v34 = vld [vmem:[%s11723_s17 + $0x68] sm:$0xff]  ;;  %v6530_v43 = vld [vmem:[%s11724_s18 + $0x50] sm:$0xff] }
 0xe0c   : > { %5981 = vmatprep.subr.bf16.mxu1 %v8994_v5  ;;  %8142 = vmatpush3.bf16.msra.mxu0 %v11451_v39  ;;  %v6533_v32 = vld [vmem:[%s11724_s18 + $0x68] sm:$0xff] }
 0xe0d   : > { %8144 = vmatprep.subr.bf16.mxu0 %v11454_v40 }
 0xe0f   : > { %5982 = vmatpush1.bf16.msra.mxu1 %v8992_v0 }
 0xe10   : > { %5983 = vmatprep.subr.bf16.mxu1 %v8997_v8  ;;  %8146 = vmatpush3.bf16.msra.mxu0 %v11559_v45 }
 0xe11   : > { %8148 = vmatprep.subr.bf16.mxu0 %v11568_v14 }
 0xe13   : > { %5984 = vmatpush1.bf16.msra.mxu1 %v8995_v18 }
 0xe14   : > { %5985 = vmatprep.subr.bf16.mxu1 %v9000_v49  ;;  %v9037_v49 = vld [vmem:[%s11721_s15 + $0x300] ss:$8 sps:$4 sm:$0xff]   ;;  %8150 = vmatpush3.bf16.msra.mxu0 %v11576_v37 }
 0xe15   : > { %8152 = vmatprep.subr.bf16.mxu0 %v8151_v25 }
 0xe17   : > { %5986 = vmatpush1.bf16.msra.mxu1 %v8998_v29  ;;  %v6069_v29 = vpack.c.bf16 %v6063_v57, %v6063_v57  ;;  %v9073_v57 = vld [vmem:[%s11721_s15 + $0x3c0] ss:$8 sps:$4 sm:$0xff]  }
 0xe18   : > { %5987 = vmatprep.subr.bf16.mxu1 %v9003_v41 }
 0xe1b   : > { %5988 = vmatpush1.bf16.msra.mxu1 %v9001_v50 }
 0xe1c   : > { %5989 = vmatprep.subr.bf16.mxu1 %v9006_v52  ;;  %v9042_v52 = vld [vmem:[%s11721_s15 + $0x314] ss:$8 sps:$4 sm:$0xff]  }
 0xe1f   : > { %5990 = vmatpush1.bf16.msra.mxu1 %v9004_v60  ;;  %v9040_v60 = vld [vmem:[%s11721_s15 + $0x310] ss:$8 sps:$4 sm:$0xff]  }
 0xe20   : > { %5991 = vmatprep.subr.bf16.mxu1 %v9009_v54  ;;  %v9045_v54 = vld [vmem:[%s11721_s15 + $0x324] ss:$8 sps:$4 sm:$0xff]  }
 0xe23   : > { %5992 = vmatpush1.bf16.msra.mxu1 %v9007_v56  ;;  %v9043_v56 = vld [vmem:[%s11721_s15 + $0x320] ss:$8 sps:$4 sm:$0xff]  }
 0xe24   : > { %5993 = vmatprep.subr.bf16.mxu1 %v9012_v61  ;;  %v9048_v61 = vld [vmem:[%s11721_s15 + $0x334] ss:$8 sps:$4 sm:$0xff]  }
 0xe27   : > { %5994 = vmatpush1.bf16.msra.mxu1 %v9010_v63  ;;  %v9046_v63 = vld [vmem:[%s11721_s15 + $0x330] ss:$8 sps:$4 sm:$0xff]  }
 0xe28   : > { %5995 = vmatprep.subr.bf16.mxu1 %v9015_v1  ;;  %v9051_v1 = vld [vmem:[%s11721_s15 + $0x344] ss:$8 sps:$4 sm:$0xff]  }
 0xe2b   : > { %5996 = vmatpush1.bf16.msra.mxu1 %v9013_v4  ;;  %v9049_v4 = vld [vmem:[%s11721_s15 + $0x340] ss:$8 sps:$4 sm:$0xff]  }
 0xe2c   : > { %5997 = vmatprep.subr.bf16.mxu1 %v9018_v13  ;;  %v9054_v13 = vld [vmem:[%s11721_s15 + $0x354] ss:$8 sps:$4 sm:$0xff]  }
 0xe2f   : > { %5998 = vmatpush1.bf16.msra.mxu1 %v9016_v51  ;;  %v9052_v51 = vld [vmem:[%s11721_s15 + $0x350] ss:$8 sps:$4 sm:$0xff]  }
 0xe30   : > { %5999 = vmatprep.subr.bf16.mxu1 %v9021_v55  ;;  %v9057_v55 = vld [vmem:[%s11721_s15 + $0x364] ss:$8 sps:$4 sm:$0xff]  }
 0xe33   : > { %6000 = vmatpush1.bf16.msra.mxu1 %v9019_v58  ;;  %v9055_v58 = vld [vmem:[%s11721_s15 + $0x360] ss:$8 sps:$4 sm:$0xff]  }
 0xe34   : > { %6001 = vmatprep.subr.bf16.mxu1 %v9024_v6  ;;  %v9060_v6 = vld [vmem:[%s11721_s15 + $0x374] ss:$8 sps:$4 sm:$0xff]  }
 0xe37   : > { %6002 = vmatpush1.bf16.msra.mxu1 %v9022_v12  ;;  %v9058_v12 = vld [vmem:[%s11721_s15 + $0x370] ss:$8 sps:$4 sm:$0xff]  }
 0xe38   : > { %6003 = vmatprep.subr.bf16.mxu1 %v9027_v3  ;;  %v9063_v3 = vld [vmem:[%s11721_s15 + $0x384] ss:$8 sps:$4 sm:$0xff]  }
 0xe3b   : > { %6004 = vmatpush1.bf16.msra.mxu1 %v9025_v11  ;;  %v9061_v11 = vld [vmem:[%s11721_s15 + $0x380] ss:$8 sps:$4 sm:$0xff]  }
 0xe3c   : > { %6005 = vmatprep.subr.bf16.mxu1 %v9030_v19  ;;  %v9066_v19 = vld [vmem:[%s11721_s15 + $0x394] ss:$8 sps:$4 sm:$0xff]  }
 0xe3f   : > { %6006 = vmatpush1.bf16.msra.mxu1 %v9028_v20  ;;  %v9064_v20 = vld [vmem:[%s11721_s15 + $0x390] ss:$8 sps:$4 sm:$0xff]  }
 0xe40   : > { %6007 = vmatprep.subr.bf16.mxu1 %v9033_v62  ;;  %v9069_v62 = vld [vmem:[%s11721_s15 + $0x3a4] ss:$8 sps:$4 sm:$0xff]  }
 0xe43   : > { %6008 = vmatpush1.bf16.msra.mxu1 %v9031_v10  ;;  %v9067_v10 = vld [vmem:[%s11721_s15 + $0x3a0] ss:$8 sps:$4 sm:$0xff]  }
 0xe44   : > { %6009 = vmatprep.subr.bf16.mxu1 %v9036_v7  ;;  %v9072_v7 = vld [vmem:[%s11721_s15 + $0x3b4] ss:$8 sps:$4 sm:$0xff]  }
 0xe47   : > { %6010 = vmatpush1.bf16.msra.mxu1 %v9034_v9  ;;  %v9070_v9 = vld [vmem:[%s11721_s15 + $0x3b0] ss:$8 sps:$4 sm:$0xff]  }
 0xe48   : > { %6263 = vmatprep.subr.bf16.mxu1 %v9039_v23  ;;  %v9075_v23 = vld [vmem:[%s11721_s15 + $0x3c4] ss:$8 sps:$4 sm:$0xff]  }
 0xedd   : > { %v5777_v5 = vpop.f32.mrb[72].mxu1 }
 0xede   : > { %v5779_v0 = vpop.f32.mrb[73].mxu1  ;;  %v5784_v41 = vpack.c.bf16 %v5777_v5, %v5777_v5  ;;  %v8153_v5 = vpack.c.bf16 %v6319_v34, %v6318_v33  ;;  %v8201_v33 = vpack.c.bf16 %v6530_v43, %v6528_v36 }
 0xedf   : > { %v5785_v8 = vpack.c.bf16 %v5779_v0, %v5779_v0  ;;  %v5781_v18 = vpop.f32.mrb[74].mxu1  ;;  %v6336_v0 = vld [vmem:[%s11723_s17 + $0xf0] sm:$0xff] }
 0xee0   : > { %v5782_v50 = vpop.f32.mrb[75].mxu1  ;;  %8154 = vmatpush3.bf16.msra.mxu0 %v8153_v5 }
 0xee1   : > { %6011 = vmatprep.mubr.bf16.mxu1 %v5785_v8  ;;  %v6337_v8 = vld [vmem:[%s11723_s17 + $0xf8] sm:$0xff] }
 0xee2   : > { %6012 = vmatmul.mubr.bf16.vlgmr.msra.gmra.mrb[68].mxu1 %v5784_v41  ;;  %v8155_v18 = vpack.c.bf16 %v6337_v8, %v6336_v0  ;;  %v6534_v0 = vld [vmem:[%s11724_s18 + $0x70] sm:$0xff] }
 0xee3   : > { %6264 = vmatpush1.bf16.msra.mxu1 %v9037_v49  ;;  %6295 = vmatprep.mubr.bf16.mxu1 %v6069_v29  ;;  %v6320_v49 = vld [vmem:[%s11723_s17 + $0x70] sm:$0xff]  ;;  %v6321_v29 = vld [vmem:[%s11723_s17 + $0x78] sm:$0xff] }
 0xee4   : > { %6265 = vmatprep.subr.bf16.mxu1 %v9042_v52  ;;  %v8157_v41 = vpack.c.bf16 %v6321_v29, %v6320_v49  ;;  %8156 = vmatprep.subr.bf16.mxu0 %v8155_v18 }
 0xee6   : > { %8158 = vmatpush3.bf16.msra.mxu0 %v8157_v41 }
 0xee7   : > { %6266 = vmatpush1.bf16.msra.mxu1 %v9040_v60  ;;  %8160 = vmatprep.subr.bf16.mxu0 %v11386_v17 }
 0xee8   : > { %6267 = vmatprep.subr.bf16.mxu1 %v9045_v54 }
 0xeeb   : > { %6268 = vmatpush1.bf16.msra.mxu1 %v9043_v56 }
 0xeec   : > { %6269 = vmatprep.subr.bf16.mxu1 %v9048_v61 }
 0xeef   : > { %6270 = vmatpush1.bf16.msra.mxu1 %v9046_v63 }
 0xef0   : > { %6271 = vmatprep.subr.bf16.mxu1 %v9051_v1 }
 0xef3   : > { %6272 = vmatpush1.bf16.msra.mxu1 %v9049_v4 }
 0xef4   : > { %6273 = vmatprep.subr.bf16.mxu1 %v9054_v13 }
 0xef7   : > { %6274 = vmatpush1.bf16.msra.mxu1 %v9052_v51 }
 0xef8   : > { %6275 = vmatprep.subr.bf16.mxu1 %v9057_v55 }
 0xefb   : > { %6276 = vmatpush1.bf16.msra.mxu1 %v9055_v58 }
 0xefc   : > { %6277 = vmatprep.subr.bf16.mxu1 %v9060_v6 }
 0xeff   : > { %6278 = vmatpush1.bf16.msra.mxu1 %v9058_v12 }
 0xf00   : > { %6279 = vmatprep.subr.bf16.mxu1 %v9063_v3 }
 0xf03   : > { %6280 = vmatpush1.bf16.msra.mxu1 %v9061_v11 }
 0xf04   : > { %6281 = vmatprep.subr.bf16.mxu1 %v9066_v19 }
 0xf07   : > { %6282 = vmatpush1.bf16.msra.mxu1 %v9064_v20 }
 0xf08   : > { %6283 = vmatprep.subr.bf16.mxu1 %v9069_v62 }
 0xf0b   : > { %6284 = vmatpush1.bf16.msra.mxu1 %v9067_v10 }
 0xf0c   : > { %6285 = vmatprep.subr.bf16.mxu1 %v9072_v7 }
 0xf0f   : > { %6286 = vmatpush1.bf16.msra.mxu1 %v9070_v9 }
 0xf10   : > { %6287 = vmatprep.subr.bf16.mxu1 %v9075_v23 }
 0xf13   : > { %6288 = vmatpush1.bf16.msra.mxu1 %v9073_v57 }
 0xf14   : > { %6289 = vmatprep.subr.bf16.mxu1 %v9078_v28 }
 0xf17   : > { %6290 = vmatpush1.bf16.msra.mxu1 %v9076_v31 }
 0xf18   : > { %6291 = vmatprep.subr.bf16.mxu1 %v9081_v35 }
 0xf1b   : > { %6292 = vmatpush1.bf16.msra.mxu1 %v9079_v16  ;;  %v6520_v16 = vld [vmem:[%s11724_s18] sm:$0xff] }
 0xf1c   : > { %6293 = vmatprep.subr.bf16.mxu1 %v9084_v53  ;;  %v6522_v53 = vld [vmem:[%s11724_s18 + $0x10] sm:$0xff] }
 0xf1f   : > { %6294 = vmatpush1.bf16.msra.mxu1 %v9082_v59  ;;  %v8193_v59 = vpack.c.bf16 %v6522_v53, %v6520_v16 }
 0xf22   : > { %6296 = vmatmul.mubr.bf16.vlgmr.msra.gmra.mrb[68].mxu1 %v6068_v38  ;;  %v6525_v38 = vld [vmem:[%s11724_s18 + $0x28] sm:$0xff] }
 0xf23   : > { %v8195_v22 = vpack.c.bf16 %v6527_v42, %v6525_v38 }
 0xff5   : > { %v11605_v50 = vpop.f32.mrb[68].mxu1 }
 0xff6   : > { %v6338_v52 = vsel %vm5173_vm2, %v11605_v50, 0.0  ;;  %v11609_v60 = vpop.f32.mrb[69].mxu1  ;;  %v6352_v28 = vmul.f32 %v11605_v50, %v11605_v50 }
 0xff7   : > { %v6339_v54 = vrot.slane %v6338_v52, 4  ;;  %v6345_v56 = vsel %vm5173_vm2, %v11609_v60, 0.0  ;;  %v6353_v61 = vmul.f32 %v11609_v60, %v11609_v60  ;;  %v6301_v63 = vpop.f32.mrb[70].mxu1 }
 0xff8   : > { %v6346_v1 = vrot.slane %v6345_v56, 4  ;;  %v6302_v4 = vpop.f32.mrb[71].mxu1  ;;  %v6354_v31 = vsel %vm5173_vm2, %v6352_v28, 0.0 }
 0xff9   : > { %v6340_v13 = vadd.f32 %v6339_v54, %v6338_v52  ;;  %v6361_v17 = vsel %vm5173_vm2, %v6353_v61, 0.0  ;;  %v6355_v35 = vrot.slane %v6354_v31, 4 }
 0xffa   : > { %v6347_v51 = vadd.f32 %v6346_v1, %v6345_v56  ;;  %v6362_v55 = vrot.slane %v6361_v17, 4 }
 0xffb   : > { %v6341_v58 = vrot.slane %v6340_v13, 2 }
 0xffc   : > { %v6348_v6 = vrot.slane %v6347_v51, 2  ;;  %v6363_v12 = vadd.f32 %v6362_v55, %v6361_v17  ;;  %v6513_v17 = vld [vmem:[%s11722_s16] sm:$0x1] }
 0xffd   : > { %v6342_v3 = vadd.f32 %v6341_v58, %v6340_v13 }
 0xffe   : > { %v6349_v11 = vadd.f32 %v6348_v6, %v6347_v51  ;;  %v6364_v19 = vrot.slane %v6363_v12, 2  ;;  %v6517_v6 = vld [vmem:[%s11722_s16 + $0x1] sm:$0x1] }
 0xfff   : > { %v6343_v20 = vrot.slane %v6342_v3, 1 }
0x1000   : > { %v6350_v62 = vrot.slane %v6349_v11, 1  ;;  %v6365_v10 = vadd.f32 %v6364_v19, %v6363_v12 }
0x1001   : > { %v6344_v23 = vadd.f32 %v6343_v20, %v6342_v3 }
0x1002   : > { %v6351_v7 = vadd.f32 %v6350_v62, %v6349_v11  ;;  %v6366_v9 = vrot.slane %v6365_v10, 1 }
0x1004   : > { %6432 = vmatprep.mubr.f32.mxu0 %v6351_v7  ;;  %v6367_v57 = vadd.f32 %v6366_v9, %v6365_v10 }
0x1005   : > { %6433 = vmatmul.mubr.f32.vlgmr.msra.gmra.mrb[40].mxu0 %v6344_v23  ;;  %v6710_v23 = vld [vmem:[%s11725_s19] sm:$0xff] }
0x1006   : > { %8162 = vmatpush3.bf16.msra.mxu0 %v11397_v44  ;;  %6503 = vmatprep.mubr.f32.mxu0 %v6367_v57  ;;  %v6356_v44 = vadd.f32 %v6355_v35, %v6354_v31 }
0x1007   : > { %8164 = vmatprep.subr.bf16.mxu0 %v11399_v21 }
0x1008   : > { %v6357_v21 = vrot.slane %v6356_v44, 2 }
0x100a   : > { %8166 = vmatpush3.bf16.msra.mxu0 %v11415_v2  ;;  %v6358_v2 = vadd.f32 %v6357_v21, %v6356_v44  ;;  %v6712_v44 = vcombine.high %v6710_v23, %v6710_v23 }
0x100b   : > { %8168 = vmatprep.subr.bf16.mxu0 %v11418_v27 }
0x100c   : > { %v6359_v27 = vrot.slane %v6358_v2, 1 }
0x100e   : > { %8170 = vmatpush3.bf16.msra.mxu0 %v11433_v47  ;;  %v6360_v47 = vadd.f32 %v6359_v27, %v6358_v2 }
0x100f   : > { %8172 = vmatprep.subr.bf16.mxu0 %v11436_v26  ;;  %v6521_v26 = vld [vmem:[%s11724_s18 + $0x8] sm:$0xff] }
0x1012   : > { %8174 = vmatpush3.bf16.msra.mxu0 %v11451_v39  ;;  %v6523_v39 = vld [vmem:[%s11724_s18 + $0x18] sm:$0xff] }
0x1013   : > { %8176 = vmatprep.subr.bf16.mxu0 %v11454_v40  ;;  %v8191_v40 = vpack.c.bf16 %v6523_v39, %v6521_v26 }
0x1016   : > { %8178 = vmatpush3.bf16.msra.mxu0 %v11559_v45  ;;  %v6524_v45 = vld [vmem:[%s11724_s18 + $0x20] sm:$0xff] }
0x1017   : > { %8180 = vmatprep.subr.bf16.mxu0 %v11568_v14  ;;  %v8197_v24 = vpack.c.bf16 %v6526_v48, %v6524_v45  ;;  %v6529_v14 = vld [vmem:[%s11724_s18 + $0x48] sm:$0xff] }
0x101a   : > { %8182 = vmatpush3.bf16.msra.mxu0 %v11576_v37  ;;  %v8199_v37 = vpack.c.bf16 %v6531_v30, %v6529_v14  ;;  %v6734_v30 = vstv %s6733_s22 }
0x101b   : > { %8184 = vmatprep.subr.bf16.mxu0 %v8151_v25  ;;  %v6535_v25 = vld [vmem:[%s11724_s18 + $0x78] sm:$0xff] }
0x101c   : > { %v8203_v34 = vpack.c.bf16 %v6535_v25, %v6533_v32 }
0x101e   : > { %8186 = vmatpush3.bf16.msra.mxu0 %v8153_v5  ;;  %v6532_v5 = vld [vmem:[%s11724_s18 + $0x60] sm:$0xff] }
0x101f   : > { %8188 = vmatprep.subr.bf16.mxu0 %v8155_v18  ;;  %v8205_v8 = vpack.c.bf16 %v6534_v0, %v6532_v5 }
0x1022   : > { %8190 = vmatpush3.bf16.msra.mxu0 %v8157_v41 }
0x1023   : > { %8192 = vmatprep.subr.bf16.mxu0 %v8191_v40 }
0x1025   : > { %6504 = vmatmul.mubr.f32.vlgmr.msra.gmra.mrb[42].mxu0 %v6360_v47 }
0x1026   : > { %6603 = vmatprep.mubr.f32.mxu0 %v9101_v46  ;;  %8194 = vmatpush1.bf16.msra.mxu0 %v8193_v59 }
0x1027   : > { %8196 = vmatprep.subr.bf16.mxu0 %v8195_v22 }
0x102a   : > { %8198 = vmatpush1.bf16.msra.mxu0 %v8197_v24 }
0x102b   : > { %8200 = vmatprep.subr.bf16.mxu0 %v8199_v37 }
0x102e   : > { %8202 = vmatpush1.bf16.msra.mxu0 %v8201_v33 }
0x102f   : > { %8204 = vmatprep.subr.bf16.mxu0 %v8203_v34 }
0x1032   : > { %8206 = vmatpush1.bf16.msra.mxu0 %v8205_v8 }
0x1033   : > { %8208 = vmatprep.subr.bf16.mxu0 %v8191_v40 }
0x10d8   : > { %v7937_v18 = vpop.f32.mrb[40].mxu0 }
0x10d9   : > { %v7938_v49 = vpop.f32.mrb[41].mxu0 }
0x10da   : > { %v7939_v29 = vadd.f32 %v7938_v49, %v7937_v18 }
0x10dc   : > { %v6438_v41 = vmul.f32 0.0625, %v7939_v29 }
0x10de   : > { %v6510_v61 = vmul.f32 %v6438_v41, %v6438_v41 }
0x10f8   : > { %v7972_v52 = vpop.f32.mrb[42].mxu0 }
0x10f9   : > { %v7973_v54 = vpop.f32.mrb[43].mxu0 }
0x10fa   : > { %v7974_v56 = vadd.f32 %v7973_v54, %v7972_v52 }
0x10fc   : > { %v6509_v63 = vmul.f32 0.0625, %v7974_v56 }
0x10fe   : > { %v6511_v1 = vsub.f32 %v6509_v63, %v6510_v61 }
0x1100   : > { %v6512_v4 = vmax.f32 %v6511_v1, 0.0 }
0x1102   : > { %v6514_v13 = vadd.f32 1e-05, %v6512_v4 }
0x1104   : > { %9090 = vrsqrt.f32 %v6514_v13 }
0x110e   : > { %v9091_v51 = vpop.eup %9090 }
0x110f   : > { %v6516_v55 = vmul.f32 %v9091_v51, %v6513_v17 }
0x1111   : > { %7760 = vmatmul.mubr.msk.f32.vlgmr.msra.gmra.mrb[44].mxu0 %vm717_vm0, %v6516_v55  ;;  %v6518_v58 = vmul.f32 %v6516_v55, %v6438_v41 }
0x1112   : > { %8210 = vmatpush1.bf16.msra.mxu0 %v8193_v59  ;;  %6687 = vmatprep.mubr.f32.mxu0 %v9101_v46 }
0x1113   : > { %8212 = vmatprep.subr.bf16.mxu0 %v8195_v22  ;;  %v6519_v12 = vsub.f32 %v6517_v6, %v6518_v58 }
0x1116   : > { %8214 = vmatpush1.bf16.msra.mxu0 %v8197_v24 }
0x1117   : > { %8216 = vmatprep.subr.bf16.mxu0 %v8199_v37 }
0x111a   : > { %8218 = vmatpush1.bf16.msra.mxu0 %v8201_v33 }
0x111b   : > { %8220 = vmatprep.subr.bf16.mxu0 %v8203_v34 }
0x111e   : > { %8222 = vmatpush1.bf16.msra.mxu0 %v8205_v8 }
0x1121   : > { %7761 = vmatmul.mubr.msk.f32.vlgmr.msra.gmra.mrb[46].mxu0 %vm717_vm0, %v6519_v12 }
0x11e4   : > { %v6605_v3 = vpop.f32.mrb[44].mxu0 }
0x11e5   : > { %v6613_v11 = vrot.slane %v6605_v3, %v9795_v15  ;;  %v6607_v19 = vpop.f32.mrb[45].mxu0 }
0x11e6   : > { %v6617_v20 = vrot.slane %v6607_v19, %v9795_v15 }
0x11e7   : > { %v6618_v46 = vmul.f32 %v6613_v11, %v11605_v50 }
0x11e8   : > { %v6619_v62 = vmul.f32 %v6617_v20, %v11609_v60 }
0x11f4   : > { %v6689_v10 = vpop.f32.mrb[46].mxu0 }
0x11f5   : > { %v6697_v7 = vrot.slane %v6689_v10, %v9795_v15  ;;  %v6691_v9 = vpop.f32.mrb[47].mxu0 }
0x11f6   : > { %v6701_v57 = vrot.slane %v6691_v9, %v9795_v15 }
0x11f7   : > { %v6702_v28 = vadd.f32 %v6697_v7, %v6618_v46 }
0x11f8   : > { %v6703_v31 = vadd.f32 %v6701_v57, %v6619_v62 }
0x11f9   : > { %vm6704_vm0 = vcmp.gt.f32.partialorder %v6702_v28, 0.0  ;;  %v6706_v35 = vmul.f32 0.2, %v6702_v28 }
0x11fa   : > { %vm6705_vm4 = vcmp.gt.f32.partialorder %v6703_v31, 0.0  ;;  %v6707_v21 = vmul.f32 0.2, %v6703_v31 }
0x11fb   : > { %v6708_v50 = vsel %vm6704_vm0, %v6702_v28, %v6706_v35 }
0x11fc   : > { %v6714_v2 = vmul.f32 %v6710_v23, %v6708_v50  ;;  %v6709_v60 = vsel %vm6705_vm4, %v6703_v31, %v6707_v21 }
0x11fd   : > { %v6715_v27 = vmul.f32 %v6712_v44, %v6709_v60 }
0x11fe   : > { %v6716_v47 = vsel %vm5173_vm2, %v6714_v2, 0.0 }
0x11ff   : > { %v6717_v26 = vrot.slane %v6716_v47, 4  ;;  %v6723_v39 = vsel %vm5173_vm2, %v6715_v27, 0.0 }
0x1200   : > { %v6724_v40 = vrot.slane %v6723_v39, 4 }
0x1201   : > { %v6718_v16 = vadd.f32 %v6717_v26, %v6716_v47 }
0x1202   : > { %v6725_v15 = vadd.f32 %v6724_v40, %v6723_v39 }
0x1203   : > { %v6719_v53 = vrot.slane %v6718_v16, 2 }
0x1204   : > { %v6726_v59 = vrot.slane %v6725_v15, 2 }
0x1205   : > { %v6720_v38 = vadd.f32 %v6719_v53, %v6718_v16 }
0x1206   : > { %v6727_v42 = vadd.f32 %v6726_v59, %v6725_v15 }
0x1207   : > { %v6721_v22 = vrot.slane %v6720_v38, 1 }
0x1208   : > { %v6728_v45 = vrot.slane %v6727_v42, 1 }
0x1209   : > { %v6722_v48 = vadd.f32 %v6721_v22, %v6720_v38 }
0x120a   : > { %v6729_v24 = vadd.f32 %v6728_v45, %v6727_v42 }
0x120c   : > { %v6730_v14 = vadd.f32 %v6729_v24, %v6722_v48 }
0x120e   : > { %6731 = vadd.xlane.f32.xlu0 %v6730_v14 }
0x129b   : > { %v6732_v36 = vpop.xlane.xlu0 %6731 }
0x129c   : > { %v6735_v37 = vadd.f32 %v6734_v30, %v6732_v36 }
0x129e   : > { %6737 = vst.msk [vmem:[%s653_s25] sm:$0x1] %vm6736_vm5, %v6735_v37 }
0x129f PF: > { %s32_s26 = sadd.s32 1, %s9098_s26  }
0x12a0   : > { %p29_p4 = scmp.ge.s32.totalorder %s32_s26, 4  }
0x12a2   :  { %31 = sbr.rel (!%p29_p4) target bundleno = 8 (0x8), region = 158 }

</bundles_post_ra>
